<compile_context>
chip_gen: v5e
topology: v5e:2x2
jax: 0.10.0
libtpu: 0.0.40
codegen_flags: <defaults>
</compile_context>

<pallas_src>
import functools

import numpy as np
import jax
import jax.numpy as jnp
from jax.experimental import pallas as pl
from jax.experimental.pallas import tpu as pltpu


# Zero extension (in flattened-pixel lanes) on each side of the hidden-state
# buffer.  Any tap offset |dh*W + dw| <= rad*(W+1) stays inside the buffer and
# 128 keeps the interior state-update store lane-aligned.
_LANE_PAD = 128


# ----------------------------------------------------------------------------
# Fused kernel: runs the full (cell x timestep) recurrence for one batch slot.
# ----------------------------------------------------------------------------
def _convlstm_seq_kernel(xcol_ref, wx_ref, wh_ref, bias_ref, mask_ref,
                         out_c_ref, out_h_ref, c_state, h_state,
                         *, width, ksize):
    # Grid: (batch b [parallel], cell n [arbitrary], timestep i [arbitrary]).
    n = pl.program_id(1)
    i = pl.program_id(2)
    num_cells = pl.num_programs(1)
    seq_len = pl.num_programs(2)

    ic = c_state.shape[0]
    hw = c_state.shape[1]
    rad = ksize // 2

    # BaseConvRNN._get_states never re-assigns prev_state for cell 0 (its
    # `else` branch builds -- but does not raise -- NotImplementedError), so
    # cell 0 runs *every* timestep from the zero state.  Reset once per batch
    # element; this also establishes the permanent zero halo of h_state.
    @pl.when(jnp.logical_and(n == 0, i == 0))
    def _():
        c_state[...] = jnp.zeros_like(c_state)
        h_state[...] = jnp.zeros_like(h_state)

    # ---- conv_x over cat([x, h]), channel-major (4*IC, H*W) ----------------
    # x part: one im2col matmul (patch matrix prebuilt in the wrapper).
    z = jnp.dot(wx_ref[0], xcol_ref[0, 0],
                preferred_element_type=jnp.float32)            # (4IC, HW)

    # h part: K*K statically shifted views of the zero-extended flat hidden
    # map, masked at the spatial boundary, stacked into a single (K*K*IC, HW)
    # patch matrix -> one MXU matmul.
    hbuf = h_state[...]                                        # (IC, PAD+HW+PAD)
    taps = []
    t = 0
    for dh in range(-rad, rad + 1):
        for dw in range(-rad, rad + 1):
            off = dh * width + dw
            piece = hbuf[:, _LANE_PAD + off:_LANE_PAD + off + hw]
            taps.append(piece * mask_ref[t])
            t += 1
    hcat = jnp.concatenate(taps, axis=0)                       # (K*K*IC, HW)
    z = z + jnp.dot(wh_ref[0], hcat, preferred_element_type=jnp.float32)
    z = z + bias_ref[0]                                        # (4IC, 1) bcast

    # ---- LSTM gates (torch.split order: a, b, g, d). ------------------------
    a = jax.nn.sigmoid(z[0 * ic:1 * ic])
    b = jax.nn.sigmoid(z[1 * ic:2 * ic])
    g = jax.nn.sigmoid(z[2 * ic:3 * ic])
    d = jnp.tanh(z[3 * ic:4 * ic])

    c_new = a * c_state[...] + g * d
    h_new = b * jnp.tanh(c_new)

    # State handoff reproducing the module's quirky indexing:
    #   cell 0            : always the zero state (never advanced in time)
    #   cell n>0, i == 0  : consumes cell n-1's LAST-timestep output
    #   cell n>0, i  > 0  : consumes cell n's OWN timestep-0 output
    # so the scratch is refreshed only at (n==0, i==S-1) and (n>0, i==0).
    do_update = jnp.logical_or(
        jnp.logical_and(n == 0, i == seq_len - 1),
        jnp.logical_and(n > 0, i == 0))

    @pl.when(do_update)
    def _():
        c_state[...] = c_new
        h_state[:, _LANE_PAD:_LANE_PAD + hw] = h_new

    # Module output (return_sequence=False): states[-1][-1] == (c, h) of the
    # last cell at the last timestep.
    @pl.when(jnp.logical_and(n == num_cells - 1, i == seq_len - 1))
    def _():
        out_c_ref[0] = c_new
        out_h_ref[0] = h_new


# ----------------------------------------------------------------------------
# Wrapper: layout plumbing + single pallas_call.
# ----------------------------------------------------------------------------
def convlstm_forward_pallas(x, weights, biases):
    """Fused ConvLSTM forward.

    x       : (B, S, Cin, H, W) float32 -- same layout the torch module eats.
    weights : list (len == num_cells) of (4*IC, Cin+IC, K, K) conv_x weights.
    biases  : list of (4*IC,) conv_x biases.
    Returns the module output states[-1][-1] as (c, h), each (B, IC, H, W).
    """
    B, S, Cin, H, W = x.shape
    num_cells = len(weights)
    C4 = weights[0].shape[0]
    IC = C4 // 4
    K = weights[0].shape[-1]
    rad = K // 2
    HW = H * W
    KK = K * K

    assert K % 2 == 1, "torch uses padding=k//2; only odd k matches SAME"
    assert weights[0].shape[1] == Cin + IC
    assert rad * W + rad <= _LANE_PAD
    # TODO(synk): num_cells > 2 is not supported -- the reference PyTorch module
    # itself raises IndexError there (seq_states[n-1] read before it exists),
    # so only the well-defined 1- and 2-cell configurations are implemented.
    assert num_cells in (1, 2)

    f32 = jnp.float32
    x = x.astype(f32)

    # ---- x patches (im2col), built once for the whole batch/sequence. ------
    xpad = jnp.pad(x, ((0, 0), (0, 0), (0, 0), (rad, rad), (rad, rad)))
    patches = [xpad[:, :, :, kh:kh + H, kw:kw + W]
               for kh in range(K) for kw in range(K)]
    xcol = jnp.stack(patches, axis=2).reshape(B, S, KK * Cin, HW)

    # ---- weights / bias reshaped into their final matmul layout. -----------
    w_all = jnp.stack([w.astype(f32) for w in weights])   # (NC, 4IC, Cin+IC, K, K)
    wx_mat = w_all[:, :, :Cin].transpose(0, 1, 3, 4, 2).reshape(
        num_cells, C4, KK * Cin)
    wh_mat = w_all[:, :, Cin:].transpose(0, 1, 3, 4, 2).reshape(
        num_cells, C4, KK * IC)
    bias_mat = jnp.stack([b.astype(f32) for b in biases]).reshape(
        num_cells, C4, 1)

    # ---- per-tap boundary masks over the flattened pixel index. ------------
    pix = np.arange(HW)
    rr, ww = pix // W, pix % W
    masks = []
    for dh in range(-rad, rad + 1):
        for dw in range(-rad, rad + 1):
            ok = ((rr + dh >= 0) & (rr + dh < H) &
                  (ww + dw >= 0) & (ww + dw < W))
            masks.append(ok)
    mask_arr = jnp.asarray(np.stack(masks)[:, None, :], dtype=f32)  # (KK,1,HW)

    kernel = functools.partial(_convlstm_seq_kernel, width=W, ksize=K)

    out_c, out_h = pl.pallas_call(
        kernel,
        out_shape=(jax.ShapeDtypeStruct((B, IC, HW), f32),
                   jax.ShapeDtypeStruct((B, IC, HW), f32)),
        grid_spec=pltpu.PrefetchScalarGridSpec(
            num_scalar_prefetch=0,
            grid=(B, num_cells, S),
            in_specs=[
                pl.BlockSpec((1, 1, KK * Cin, HW), lambda b, n, i: (b, i, 0, 0)),
                pl.BlockSpec((1, C4, KK * Cin), lambda b, n, i: (n, 0, 0)),
                pl.BlockSpec((1, C4, KK * IC), lambda b, n, i: (n, 0, 0)),
                pl.BlockSpec((1, C4, 1), lambda b, n, i: (n, 0, 0)),
                pl.BlockSpec((KK, 1, HW), lambda b, n, i: (0, 0, 0)),
            ],
            out_specs=(
                pl.BlockSpec((1, IC, HW), lambda b, n, i: (b, 0, 0)),
                pl.BlockSpec((1, IC, HW), lambda b, n, i: (b, 0, 0)),
            ),
            scratch_shapes=[
                pltpu.VMEM((IC, HW), f32),                     # c state
                pltpu.VMEM((IC, 2 * _LANE_PAD + HW), f32),     # zero-extended h
            ],
        ),
        compiler_params=pltpu.CompilerParams(
            dimension_semantics=("parallel", "arbitrary", "arbitrary")),
    )(xcol, wx_mat, wh_mat, bias_mat, mask_arr)

    return out_c.reshape(B, IC, H, W), out_h.reshape(B, IC, H, W)


# ----------------------------------------------------------------------------
# Pure-JAX reference (literal transcription of the torch module) for checking.
# ----------------------------------------------------------------------------
def _convlstm_cell_ref(x, c, h, w, bias):
    xin = jnp.concatenate([x, h], axis=1)
    z = jax.lax.conv_general_dilated(
        xin, w, window_strides=(1, 1), padding="SAME",
        dimension_numbers=("NCHW", "OIHW", "NCHW"),
        precision=jax.lax.Precision.HIGHEST) + bias[None, :, None, None]
    ic = c.shape[1]
    a = jax.nn.sigmoid(z[:, 0 * ic:1 * ic])
    b = jax.nn.sigmoid(z[:, 1 * ic:2 * ic])
    g = jax.nn.sigmoid(z[:, 2 * ic:3 * ic])
    d = jnp.tanh(z[:, 3 * ic:4 * ic])
    c_new = a * c + g * d
    h_new = b * jnp.tanh(c_new)
    return c_new, h_new


def convlstm_forward_ref(x, weights, biases):
    B, S, _, H, W = x.shape
    IC = weights[0].shape[0] // 4
    num_cells = len(weights)
    cell_states = []
    prev = None
    for n in range(num_cells):
        seq_states = []
        for i in range(S):
            if i == 0 and n == 0:
                prev = (jnp.zeros((B, IC, H, W), jnp.float32),
                        jnp.zeros((B, IC, H, W), jnp.float32))
            elif n > 0 and i > 0:
                prev = seq_states[n - 1]
            elif n > 0 and i == 0:
                prev = cell_states[i - 1][-1]
            # else: torch evaluates NotImplementedError() without raising, so
            # prev_state silently stays the zero init for cell 0.  Reproduced.
            c, h = _convlstm_cell_ref(x[:, i], prev[0], prev[1],
                                      weights[n], biases[n])
            seq_states.append((c, h))
        cell_states.append(seq_states)
    return cell_states[-1][-1]         # states[-1][-1] == (c, h)


if __name__ == "__main__":
    key = jax.random.PRNGKey(0)

    B, S, CIN, H, W = 2, 8, 3, 16, 16
    IC, KSIZE, NUM_CELLS = 32, 3, 2

    key, kx = jax.random.split(key)
    x = jax.random.normal(kx, (B, S, CIN, H, W), jnp.float32)

    weights, biases = [], []
    for _ in range(NUM_CELLS):
        key, kw_, kb_ = jax.random.split(key, 3)
        weights.append(0.1 * jax.random.normal(
            kw_, (4 * IC, CIN + IC, KSIZE, KSIZE), jnp.float32))
        biases.append(0.1 * jax.random.normal(kb_, (4 * IC,), jnp.float32))

    pallas_fwd = jax.jit(convlstm_forward_pallas)
    ref_fwd = jax.jit(convlstm_forward_ref)

    c_pl, h_pl = jax.block_until_ready(pallas_fwd(x, weights, biases))
    c_rf, h_rf = jax.block_until_ready(ref_fwd(x, weights, biases))

    assert c_pl.shape == (B, IC, H, W), c_pl.shape
    assert h_pl.shape == (B, IC, H, W), h_pl.shape

    err_c = float(jnp.max(jnp.abs(c_pl - c_rf)))
    err_h = float(jnp.max(jnp.abs(h_pl - h_rf)))
    if not (jnp.allclose(c_pl, c_rf, atol=2e-3, rtol=2e-3) and
            jnp.allclose(h_pl, h_rf, atol=2e-3, rtol=2e-3)):
        raise SystemExit(
            f"mismatch vs reference: max|dc|={err_c:.3e} max|dh|={err_h:.3e}")

    print("KERNEL_OK")
</pallas_src>

<mosaic_0001>
module attributes {stable_mosaic.version = 11 : i64} {
  func.func @_convlstm_seq_kernel(%arg0: i32, %arg1: i32, %arg2: i32, %arg3: memref<1x1x27x256xf32, #tpu.memory_space<vmem>>, %arg4: memref<1x128x27xf32, #tpu.memory_space<vmem>>, %arg5: memref<1x128x288xf32, #tpu.memory_space<vmem>>, %arg6: memref<1x128x1xf32, #tpu.memory_space<vmem>>, %arg7: memref<9x1x256xf32, #tpu.memory_space<vmem>>, %arg8: memref<1x32x256xf32, #tpu.memory_space<vmem>>, %arg9: memref<1x32x256xf32, #tpu.memory_space<vmem>>, %arg10: memref<32x256xf32, #tpu.memory_space<vmem>>, %arg11: memref<32x512xf32, #tpu.memory_space<vmem>>) attributes {dimension_semantics = [#tpu.dimension_semantics<parallel>, #tpu.dimension_semantics<arbitrary>, #tpu.dimension_semantics<arbitrary>], iteration_bounds = array<i64: 2, 2, 8>, scalar_prefetch = 0 : i64, scratch_operands = 2 : i64, tpu.core_type = #tpu.core_type<tc>, window_params = [{transform_indices = @transform_0, window_bounds = array<i64: 1, 1, 27, 256>}, {transform_indices = @transform_1, window_bounds = array<i64: 1, 128, 27>}, {transform_indices = @transform_2, window_bounds = array<i64: 1, 128, 288>}, {transform_indices = @transform_3, window_bounds = array<i64: 1, 128, 1>}, {pipeline_mode = #tpu.pipeline_mode<synchronous>, transform_indices = @transform_4, window_bounds = array<i64: 9, 1, 256>}, {transform_indices = @transform_5, window_bounds = array<i64: 1, 32, 256>}, {transform_indices = @transform_6, window_bounds = array<i64: 1, 32, 256>}]} {
    %c0_i32 = arith.constant 0 : i32
    %0 = arith.cmpi eq, %arg1, %c0_i32 : i32
    %c0_i32_0 = arith.constant 0 : i32
    %1 = arith.cmpi eq, %arg2, %c0_i32_0 : i32
    %2 = arith.andi %0, %1 : i1
    %3 = arith.extui %2 : i1 to i32
    %c0_i32_1 = arith.constant 0 : i32
    %4 = arith.cmpi ne, %3, %c0_i32_1 : i32
    scf.if %4 {
      %cst_47 = arith.constant 0.000000e+00 : f32
      %105 = vector.broadcast %cst_47 : f32 to vector<32x256xf32>
      %c0_48 = arith.constant 0 : index
      %c0_49 = arith.constant 0 : index
      %106 = vector.load %arg10[%c0_48, %c0_49] : memref<32x256xf32, #tpu.memory_space<vmem>>, vector<32x256xf32>
      tpu.vector_store %arg10[%c0_48, %c0_49], %105 {strides = array<i32>} : memref<32x256xf32, #tpu.memory_space<vmem>>, vector<32x256xf32>,
      %cst_50 = arith.constant 0.000000e+00 : f32
      %107 = vector.broadcast %cst_50 : f32 to vector<32x512xf32>
      %c0_51 = arith.constant 0 : index
      %c0_52 = arith.constant 0 : index
      %108 = vector.load %arg11[%c0_51, %c0_52] : memref<32x512xf32, #tpu.memory_space<vmem>>, vector<32x512xf32>
      tpu.vector_store %arg11[%c0_51, %c0_52], %107 {strides = array<i32>} : memref<32x512xf32, #tpu.memory_space<vmem>>, vector<32x512xf32>,
    } else {
    }
    %c0 = arith.constant 0 : index
    %c0_2 = arith.constant 0 : index
    %c0_3 = arith.constant 0 : index
    %5 = vector.load %arg4[%c0, %c0_2, %c0_3] : memref<1x128x27xf32, #tpu.memory_space<vmem>>, vector<1x128x27xf32>
    %6 = vector.shape_cast %5 : vector<1x128x27xf32> to vector<128x27xf32>
    %c0_4 = arith.constant 0 : index
    %c0_5 = arith.constant 0 : index
    %c0_6 = arith.constant 0 : index
    %c0_7 = arith.constant 0 : index
    %7 = vector.load %arg3[%c0_4, %c0_5, %c0_6, %c0_7] : memref<1x1x27x256xf32, #tpu.memory_space<vmem>>, vector<1x1x27x256xf32>
    %8 = vector.shape_cast %7 : vector<1x1x27x256xf32> to vector<27x256xf32>
    %cst = arith.constant dense<0.000000e+00> : vector<128x256xf32>
    %9 = tpu.matmul %6, %8, %cst {dimension_numbers = #tpu.dot_dimension_numbers<[1], [0], [0], [1], [0, 0, 1, 1], [], []>} : vector<128x27xf32>, vector<27x256xf32>, vector<128x256xf32> -> vector<128x256xf32>
    %c0_8 = arith.constant 0 : index
    %c0_9 = arith.constant 0 : index
    %10 = vector.load %arg11[%c0_8, %c0_9] : memref<32x512xf32, #tpu.memory_space<vmem>>, vector<32x512xf32>
    %11 = vector.extract_strided_slice %10 {offsets = [0, 111], sizes = [32, 256], strides = [1, 1]} : vector<32x512xf32> to vector<32x256xf32>
    %c0_10 = arith.constant 0 : index
    %c0_11 = arith.constant 0 : index
    %c0_12 = arith.constant 0 : index
    %12 = vector.load %arg7[%c0_10, %c0_11, %c0_12] : memref<9x1x256xf32, #tpu.memory_space<vmem>>, vector<1x1x256xf32>
    %13 = vector.shape_cast %12 : vector<1x1x256xf32> to vector<1x256xf32>
    %14 = vector.broadcast %13 : vector<1x256xf32> to vector<32x256xf32>
    %15 = arith.mulf %11, %14 : vector<32x256xf32>
    %16 = vector.extract_strided_slice %10 {offsets = [0, 112], sizes = [32, 256], strides = [1, 1]} : vector<32x512xf32> to vector<32x256xf32>
    %c1 = arith.constant 1 : index
    %c0_13 = arith.constant 0 : index
    %c0_14 = arith.constant 0 : index
    %17 = vector.load %arg7[%c1, %c0_13, %c0_14] : memref<9x1x256xf32, #tpu.memory_space<vmem>>, vector<1x1x256xf32>
    %18 = vector.shape_cast %17 : vector<1x1x256xf32> to vector<1x256xf32>
    %19 = vector.broadcast %18 : vector<1x256xf32> to vector<32x256xf32>
    %20 = arith.mulf %16, %19 : vector<32x256xf32>
    %21 = vector.extract_strided_slice %10 {offsets = [0, 113], sizes = [32, 256], strides = [1, 1]} : vector<32x512xf32> to vector<32x256xf32>
    %c2 = arith.constant 2 : index
    %c0_15 = arith.constant 0 : index
    %c0_16 = arith.constant 0 : index
    %22 = vector.load %arg7[%c2, %c0_15, %c0_16] : memref<9x1x256xf32, #tpu.memory_space<vmem>>, vector<1x1x256xf32>
    %23 = vector.shape_cast %22 : vector<1x1x256xf32> to vector<1x256xf32>
    %24 = vector.broadcast %23 : vector<1x256xf32> to vector<32x256xf32>
    %25 = arith.mulf %21, %24 : vector<32x256xf32>
    %26 = vector.extract_strided_slice %10 {offsets = [0, 127], sizes = [32, 256], strides = [1, 1]} : vector<32x512xf32> to vector<32x256xf32>
    %c3 = arith.constant 3 : index
    %c0_17 = arith.constant 0 : index
    %c0_18 = arith.constant 0 : index
    %27 = vector.load %arg7[%c3, %c0_17, %c0_18] : memref<9x1x256xf32, #tpu.memory_space<vmem>>, vector<1x1x256xf32>
    %28 = vector.shape_cast %27 : vector<1x1x256xf32> to vector<1x256xf32>
    %29 = vector.broadcast %28 : vector<1x256xf32> to vector<32x256xf32>
    %30 = arith.mulf %26, %29 : vector<32x256xf32>
    %31 = vector.extract_strided_slice %10 {offsets = [0, 128], sizes = [32, 256], strides = [1, 1]} : vector<32x512xf32> to vector<32x256xf32>
    %c4 = arith.constant 4 : index
    %c0_19 = arith.constant 0 : index
    %c0_20 = arith.constant 0 : index
    %32 = vector.load %arg7[%c4, %c0_19, %c0_20] : memref<9x1x256xf32, #tpu.memory_space<vmem>>, vector<1x1x256xf32>
    %33 = vector.shape_cast %32 : vector<1x1x256xf32> to vector<1x256xf32>
    %34 = vector.broadcast %33 : vector<1x256xf32> to vector<32x256xf32>
    %35 = arith.mulf %31, %34 : vector<32x256xf32>
    %36 = vector.extract_strided_slice %10 {offsets = [0, 129], sizes = [32, 256], strides = [1, 1]} : vector<32x512xf32> to vector<32x256xf32>
    %c5 = arith.constant 5 : index
    %c0_21 = arith.constant 0 : index
    %c0_22 = arith.constant 0 : index
    %37 = vector.load %arg7[%c5, %c0_21, %c0_22] : memref<9x1x256xf32, #tpu.memory_space<vmem>>, vector<1x1x256xf32>
    %38 = vector.shape_cast %37 : vector<1x1x256xf32> to vector<1x256xf32>
    %39 = vector.broadcast %38 : vector<1x256xf32> to vector<32x256xf32>
    %40 = arith.mulf %36, %39 : vector<32x256xf32>
    %41 = vector.extract_strided_slice %10 {offsets = [0, 143], sizes = [32, 256], strides = [1, 1]} : vector<32x512xf32> to vector<32x256xf32>
    %c6 = arith.constant 6 : index
    %c0_23 = arith.constant 0 : index
    %c0_24 = arith.constant 0 : index
    %42 = vector.load %arg7[%c6, %c0_23, %c0_24] : memref<9x1x256xf32, #tpu.memory_space<vmem>>, vector<1x1x256xf32>
    %43 = vector.shape_cast %42 : vector<1x1x256xf32> to vector<1x256xf32>
    %44 = vector.broadcast %43 : vector<1x256xf32> to vector<32x256xf32>
    %45 = arith.mulf %41, %44 : vector<32x256xf32>
    %46 = vector.extract_strided_slice %10 {offsets = [0, 144], sizes = [32, 256], strides = [1, 1]} : vector<32x512xf32> to vector<32x256xf32>
    %c7 = arith.constant 7 : index
    %c0_25 = arith.constant 0 : index
    %c0_26 = arith.constant 0 : index
    %47 = vector.load %arg7[%c7, %c0_25, %c0_26] : memref<9x1x256xf32, #tpu.memory_space<vmem>>, vector<1x1x256xf32>
    %48 = vector.shape_cast %47 : vector<1x1x256xf32> to vector<1x256xf32>
    %49 = vector.broadcast %48 : vector<1x256xf32> to vector<32x256xf32>
    %50 = arith.mulf %46, %49 : vector<32x256xf32>
    %51 = vector.extract_strided_slice %10 {offsets = [0, 145], sizes = [32, 256], strides = [1, 1]} : vector<32x512xf32> to vector<32x256xf32>
    %c8 = arith.constant 8 : index
    %c0_27 = arith.constant 0 : index
    %c0_28 = arith.constant 0 : index
    %52 = vector.load %arg7[%c8, %c0_27, %c0_28] : memref<9x1x256xf32, #tpu.memory_space<vmem>>, vector<1x1x256xf32>
    %53 = vector.shape_cast %52 : vector<1x1x256xf32> to vector<1x256xf32>
    %54 = vector.broadcast %53 : vector<1x256xf32> to vector<32x256xf32>
    %55 = arith.mulf %51, %54 : vector<32x256xf32>
    %56 = tpu.concatenate %15, %20, %25, %30, %35, %40, %45, %50, %55 in 0 : vector<32x256xf32>, vector<32x256xf32>, vector<32x256xf32>, vector<32x256xf32>, vector<32x256xf32>, vector<32x256xf32>, vector<32x256xf32>, vector<32x256xf32>, vector<32x256xf32> -> vector<288x256xf32>
    %c0_29 = arith.constant 0 : index
    %c0_30 = arith.constant 0 : index
    %c0_31 = arith.constant 0 : index
    %57 = vector.load %arg5[%c0_29, %c0_30, %c0_31] : memref<1x128x288xf32, #tpu.memory_space<vmem>>, vector<1x128x288xf32>
    %58 = vector.shape_cast %57 : vector<1x128x288xf32> to vector<128x288xf32>
    %cst_32 = arith.constant dense<0.000000e+00> : vector<128x256xf32>
    %59 = tpu.matmul %58, %56, %cst_32 {dimension_numbers = #tpu.dot_dimension_numbers<[1], [0], [0], [1], [0, 0, 1, 1], [], []>} : vector<128x288xf32>, vector<288x256xf32>, vector<128x256xf32> -> vector<128x256xf32>
    %60 = arith.addf %9, %59 : vector<128x256xf32>
    %c0_33 = arith.constant 0 : index
    %c0_34 = arith.constant 0 : index
    %c0_35 = arith.constant 0 : index
    %61 = vector.load %arg6[%c0_33, %c0_34, %c0_35] : memref<1x128x1xf32, #tpu.memory_space<vmem>>, vector<1x128x1xf32>
    %62 = vector.shape_cast %61 : vector<1x128x1xf32> to vector<128x1xf32>
    %63 = vector.broadcast %62 : vector<128x1xf32> to vector<128x256xf32>
    %64 = arith.addf %60, %63 : vector<128x256xf32>
    %65 = vector.extract_strided_slice %64 {offsets = [0, 0], sizes = [32, 256], strides = [1, 1]} : vector<128x256xf32> to vector<32x256xf32>
    %66 = arith.negf %65 : vector<32x256xf32>
    %67 = math.exp %66 : vector<32x256xf32>
    %cst_36 = arith.constant 1.000000e+00 : f32
    %68 = vector.broadcast %cst_36 : f32 to vector<32x256xf32>
    %69 = arith.addf %68, %67 : vector<32x256xf32>
    %70 = arith.divf %68, %69 : vector<32x256xf32>
    %71 = vector.extract_strided_slice %64 {offsets = [32, 0], sizes = [32, 256], strides = [1, 1]} : vector<128x256xf32> to vector<32x256xf32>
    %72 = arith.negf %71 : vector<32x256xf32>
    %73 = math.exp %72 : vector<32x256xf32>
    %cst_37 = arith.constant 1.000000e+00 : f32
    %74 = vector.broadcast %cst_37 : f32 to vector<32x256xf32>
    %75 = arith.addf %74, %73 : vector<32x256xf32>
    %76 = arith.divf %74, %75 : vector<32x256xf32>
    %77 = vector.extract_strided_slice %64 {offsets = [64, 0], sizes = [32, 256], strides = [1, 1]} : vector<128x256xf32> to vector<32x256xf32>
    %78 = arith.negf %77 : vector<32x256xf32>
    %79 = math.exp %78 : vector<32x256xf32>
    %cst_38 = arith.constant 1.000000e+00 : f32
    %80 = vector.broadcast %cst_38 : f32 to vector<32x256xf32>
    %81 = arith.addf %80, %79 : vector<32x256xf32>
    %82 = arith.divf %80, %81 : vector<32x256xf32>
    %83 = vector.extract_strided_slice %64 {offsets = [96, 0], sizes = [32, 256], strides = [1, 1]} : vector<128x256xf32> to vector<32x256xf32>
    %84 = math.tanh %83 : vector<32x256xf32>
    %c0_39 = arith.constant 0 : index
    %c0_40 = arith.constant 0 : index
    %85 = vector.load %arg10[%c0_39, %c0_40] : memref<32x256xf32, #tpu.memory_space<vmem>>, vector<32x256xf32>
    %86 = arith.mulf %70, %85 : vector<32x256xf32>
    %87 = arith.mulf %82, %84 : vector<32x256xf32>
    %88 = arith.addf %86, %87 : vector<32x256xf32>
    %89 = math.tanh %88 : vector<32x256xf32>
    %90 = arith.mulf %76, %89 : vector<32x256xf32>
    %c0_i32_41 = arith.constant 0 : i32
    %91 = arith.cmpi eq, %arg1, %c0_i32_41 : i32
    %c7_i32 = arith.constant 7 : i32
    %92 = arith.cmpi eq, %arg2, %c7_i32 : i32
    %93 = arith.andi %91, %92 : i1
    %c0_i32_42 = arith.constant 0 : i32
    %94 = arith.cmpi sgt, %arg1, %c0_i32_42 : i32
    %c0_i32_43 = arith.constant 0 : i32
    %95 = arith.cmpi eq, %arg2, %c0_i32_43 : i32
    %96 = arith.andi %94, %95 : i1
    %97 = arith.ori %93, %96 : i1
    %98 = arith.extui %97 : i1 to i32
    %c0_i32_44 = arith.constant 0 : i32
    %99 = arith.cmpi ne, %98, %c0_i32_44 : i32
    scf.if %99 {
      %c0_47 = arith.constant 0 : index
      %c0_48 = arith.constant 0 : index
      %105 = vector.load %arg10[%c0_47, %c0_48] : memref<32x256xf32, #tpu.memory_space<vmem>>, vector<32x256xf32>
      tpu.vector_store %arg10[%c0_47, %c0_48], %88 {strides = array<i32>} : memref<32x256xf32, #tpu.memory_space<vmem>>, vector<32x256xf32>,
      %c0_49 = arith.constant 0 : index
      %c128 = arith.constant 128 : index
      %106 = vector.load %arg11[%c0_49, %c128] : memref<32x512xf32, #tpu.memory_space<vmem>>, vector<32x256xf32>
      tpu.vector_store %arg11[%c0_49, %c128], %90 {strides = array<i32>} : memref<32x512xf32, #tpu.memory_space<vmem>>, vector<32x256xf32>,
    } else {
    }
    %c1_i32 = arith.constant 1 : i32
    %100 = arith.cmpi eq, %arg1, %c1_i32 : i32
    %c7_i32_45 = arith.constant 7 : i32
    %101 = arith.cmpi eq, %arg2, %c7_i32_45 : i32
    %102 = arith.andi %100, %101 : i1
    %103 = arith.extui %102 : i1 to i32
    %c0_i32_46 = arith.constant 0 : i32
    %104 = arith.cmpi ne, %103, %c0_i32_46 : i32
    scf.if %104 {
      %c0_47 = arith.constant 0 : index
      %c0_48 = arith.constant 0 : index
      %c0_49 = arith.constant 0 : index
      %105 = vector.load %arg8[%c0_47, %c0_48, %c0_49] : memref<1x32x256xf32, #tpu.memory_space<vmem>>, vector<1x32x256xf32>
      %106 = vector.shape_cast %105 : vector<1x32x256xf32> to vector<32x256xf32>
      %107 = vector.shape_cast %88 : vector<32x256xf32> to vector<1x32x256xf32>
      tpu.vector_store %arg8[%c0_47, %c0_48, %c0_49], %107 {strides = array<i32>} : memref<1x32x256xf32, #tpu.memory_space<vmem>>, vector<1x32x256xf32>,
      %c0_50 = arith.constant 0 : index
      %c0_51 = arith.constant 0 : index
      %c0_52 = arith.constant 0 : index
      %108 = vector.load %arg9[%c0_50, %c0_51, %c0_52] : memref<1x32x256xf32, #tpu.memory_space<vmem>>, vector<1x32x256xf32>
      %109 = vector.shape_cast %108 : vector<1x32x256xf32> to vector<32x256xf32>
      %110 = vector.shape_cast %90 : vector<32x256xf32> to vector<1x32x256xf32>
      tpu.vector_store %arg9[%c0_50, %c0_51, %c0_52], %110 {strides = array<i32>} : memref<1x32x256xf32, #tpu.memory_space<vmem>>, vector<1x32x256xf32>,
    } else {
    }
    return
  }
  func.func @transform_0(%arg0: i32, %arg1: i32, %arg2: i32) -> (i32, i32, i32, i32) {
    %c0_i32 = arith.constant 0 : i32
    %c0_i32_0 = arith.constant 0 : i32
    %c0_i32_1 = arith.constant 0 : i32
    return %arg0, %arg2, %c0_i32, %c0_i32_0 : i32, i32, i32, i32
  }
  func.func @transform_1(%arg0: i32, %arg1: i32, %arg2: i32) -> (i32, i32, i32) {
    %c0_i32 = arith.constant 0 : i32
    %c0_i32_0 = arith.constant 0 : i32
    %c0_i32_1 = arith.constant 0 : i32
    return %arg1, %c0_i32, %c0_i32_0 : i32, i32, i32
  }
  func.func @transform_2(%arg0: i32, %arg1: i32, %arg2: i32) -> (i32, i32, i32) {
    %c0_i32 = arith.constant 0 : i32
    %c0_i32_0 = arith.constant 0 : i32
    %c0_i32_1 = arith.constant 0 : i32
    return %arg1, %c0_i32, %c0_i32_0 : i32, i32, i32
  }
  func.func @transform_3(%arg0: i32, %arg1: i32, %arg2: i32) -> (i32, i32, i32) {
    %c0_i32 = arith.constant 0 : i32
    %c0_i32_0 = arith.constant 0 : i32
    %c0_i32_1 = arith.constant 0 : i32
    return %arg1, %c0_i32, %c0_i32_0 : i32, i32, i32
  }
  func.func @transform_4(%arg0: i32, %arg1: i32, %arg2: i32) -> (i32, i32, i32) {
    %c0_i32 = arith.constant 0 : i32
    %c0_i32_0 = arith.constant 0 : i32
    %c0_i32_1 = arith.constant 0 : i32
    %c0_i32_2 = arith.constant 0 : i32
    return %c0_i32, %c0_i32_0, %c0_i32_1 : i32, i32, i32
  }
  func.func @transform_5(%arg0: i32, %arg1: i32, %arg2: i32) -> (i32, i32, i32) {
    %c0_i32 = arith.constant 0 : i32
    %c0_i32_0 = arith.constant 0 : i32
    %c0_i32_1 = arith.constant 0 : i32
    return %arg0, %c0_i32, %c0_i32_0 : i32, i32, i32
  }
  func.func @transform_6(%arg0: i32, %arg1: i32, %arg2: i32) -> (i32, i32, i32) {
    %c0_i32 = arith.constant 0 : i32
    %c0_i32_0 = arith.constant 0 : i32
    %c0_i32_1 = arith.constant 0 : i32
    return %arg0, %c0_i32, %c0_i32_0 : i32, i32, i32
  }
}

</mosaic_0001>

<bundles_post_ra>
// kernel: convlstm_forward_pallas.1
= control target key start
LH: loop header
LB: loop body
LE: loop exit
PB: predicated region body
PF: predicated region fallthrough
CT: control target
= control target key end

     0   :  { %s3803_s21 = smov 0   ;;  %s3805_s22 = smov 0   ;;  %s6317_s0 = inlined_call_operand.vmem [shape: f32[2,8,27,256], index: 0, kind: input, shape index: {}]   ;;  %s6318_s1 = inlined_call_operand.vmem [shape: f32[2,128,27], index: 1, kind: input, shape index: {}]   ;;  %s6319_s2 = inlined_call_operand.vmem [shape: f32[2,128,288], index: 2, kind: input, shape index: {}]   ;;  %s6320_s3 = inlined_call_operand.vmem [shape: f32[2,128,1], index: 3, kind: input, shape index: {}]   ;;  %s6321_s4 = inlined_call_operand.vmem [shape: f32[9,1,256], index: 4, kind: input, shape index: {}]   ;;  %s6322_s5 = inlined_call_operand.vmem [shape: f32[2,32,256], index: 5, kind: output, shape index: {0}]   ;;  %s6323_s6 = inlined_call_operand.vmem [shape: f32[2,32,256], index: 6, kind: output, shape index: {1}]  }
   0x1   :  { %6378 = sst [smem:[#allocation19_spill]] %s6322_s5  ;;  %s3807_s23 = smov 0  }
   0x2   :  { %6379 = sst [smem:[#allocation20_spill]] %s6323_s6  ;;  %s3809_s24 = smov 0  }
   0x3   :  { %s3811_s25 = smov 0   ;;  %s3813_s26 = smov 0  }
   0x4   :  { %s3815_s27 = smov 0  }
   0x5 LB: > { %s29_s28 = sadd.s32 1, %s3739_s24  ;;  %s32_s29 = sadd.s32 1, %s3743_s25  ;;  %s3751_s27 = sphi %s3815_s27, %s17_s27   ;;  %s3747_s26 = sphi %s3813_s26, %s6565_s26   ;;  %s3743_s25 = sphi %s3811_s25, %s6564_s25   ;;  %s3739_s24 = sphi %s3809_s24, %s6563_s24   ;;  %s3735_s23 = sphi %s3807_s23, %s6562_s23   ;;  %s3731_s22 = sphi %s3805_s22, %s6561_s22   ;;  %s3727_s21 = sphi %s3803_s21, %s6560_s21  }
   0x6   : > { %p30_p0 = scmp.ge.s32.totalorder %s29_s28, 8  ;;  %p2877_p1 = scmp.ge.s32.totalorder %s3751_s27, 1 }
   0x7   : > { %p270_p2 = scmp.lt.s32.totalorder %s3751_s27, 33  ;;  %s36_s30 = sadd.s32 1, %s3747_s26 }
   0x8   : > { %s6567_s28 = smov (%p30_p0, %s29_s28), 0  ;;  %s6569_s29 = smov (!%p30_p0, %s32_s29), %s3743_s25 }
   0x9   : > { %p271_p3 = pnand %p2877_p1, %p270_p2  ;;  %p34_p4 = scmp.ge.s32.totalorder %s6569_s29, 2 }
   0xb   : > { %s6571_s29 = smov (%p34_p4, %s6569_s29), 0  ;;  %s6573_s30 = smov (!%p34_p4, %s36_s30), %s3747_s26 }
   0xc   : > { %p38_p5 = scmp.ge.s32.totalorder %s6573_s30, 2  ;;  %274 = sbr.rel (%p271_p3) target bundleno = 1066 (0x42a), region = 40 }
   0xe   : > { %s6575_s30 = smov (%p38_p5, %s6573_s30), 0 }
   0xf   : > { %6380 = sst [smem:[#allocation4_spill]] %s6575_s30 }
  0x11   : > { %p324_p6 = scmp.lt.s32.totalorder %s3735_s23, 1  ;;  %p326_p7 = scmp.lt.s32.totalorder %s3727_s21, 7 }
  0x12   : > { %p333_p8 = scmp.lt.s32.totalorder %s3731_s22, 1  ;;  %p358_p9 = scmp.eq.s32.totalorder %s3731_s22, 0 }
  0x13   : > { %s6577_s23 = smov (!%p324_p6, %s3735_s23), 1  ;;  %p359_p10 = scmp.eq.s32.totalorder %s3727_s21, 0 }
  0x14   : > { %s327_s7 = scalar_select %p326_p7, %s3727_s21, 7 }
  0x15   : > { %s2879_s8 = sshll.u32 %s6577_s23, 6  ;;  %s6381_s5 = sld [smem:[#allocation19_spill]] }
  0x16   : > { %s2878_s9 = sshll.u32 %s327_s7, 3  ;;  %s6382_s6 = sld [smem:[#allocation20_spill]] }
  0x17   : > { %s330_s13 = sadd.s32 %s2879_s8, %s2878_s9  ;;  %p360_p11 = pnand %p359_p10, %p358_p9 }
  0x18   : > { %s2880_s17 = sshll.u32 %s330_s13, 3 }
  0x19   : > { %s3871_s20 = scalar_lea.vmem %s6317_s0, %s2880_s17 }
  0x1a   : > { %s334_s23 = scalar_select %p333_p8, %s3731_s22, 1 }
  0x1b   : > { %s3857_s12 = scalar_lea.vmem %s6381_s5, %s2879_s8  ;;  %363 = sbr.rel (%p360_p11) target bundleno = 57 (0x39), region = 44 }
  0x1c   : > { %s3862_s16 = scalar_lea.vmem %s6382_s6, %s2879_s8  ;;  %s2990_s7 = sshll.u32 %s334_s23, 7 }
  0x1d   : > { %s2994_s10 = smul.u32 384, %s334_s23  ;;  %s3877_s9 = scalar_lea.vmem %s6318_s1, %s2990_s7 }
  0x1e   : > { %s3882_s13 = scalar_lea.vmem %s6320_s3, %s2990_s7 }
  0x1f   : > { %s3887_s30 = scalar_lea.vmem %s6319_s2, %s2994_s10 }
  0x20   : > { %v3753_v0 = vmov 0.0  }
  0x21   : > { %364 = vst [vmem:[#allocation2 + $0x30] sm:$0xff] %v3753_v0 }
  0x22   : > { %365 = vst [vmem:[#allocation2] sm:$0xff] %v3753_v0 }
  0x23   : > { %366 = vst [vmem:[#allocation2 + $0x18] sm:$0xff] %v3753_v0 }
  0x24   : > { %367 = vst [vmem:[#allocation2 + $0x10] sm:$0xff] %v3753_v0 }
  0x25   : > { %368 = vst [vmem:[#allocation2 + $0x8] sm:$0xff] %v3753_v0 }
  0x26   : > { %369 = vst [vmem:[#allocation2 + $0x20] sm:$0xff] %v3753_v0 }
  0x27   : > { %370 = vst [vmem:[#allocation2 + $0x28] sm:$0xff] %v3753_v0 }
  0x28   : > { %371 = vst [vmem:[#allocation2 + $0x38] sm:$0xff] %v3753_v0 }
  0x29   : > { %372 = vst [vmem:[#allocation3] sm:$0xff] %v3753_v0 }
  0x2a   : > { %373 = vst [vmem:[#allocation3 + $0x18] sm:$0xff] %v3753_v0 }
  0x2b   : > { %374 = vst [vmem:[#allocation3 + $0x50] sm:$0xff] %v3753_v0 }
  0x2c   : > { %375 = vst [vmem:[#allocation3 + $0x60] sm:$0xff] %v3753_v0 }
  0x2d   : > { %376 = vst [vmem:[#allocation3 + $0x68] sm:$0xff] %v3753_v0 }
  0x2e   : > { %377 = vst [vmem:[#allocation3 + $0x20] sm:$0xff] %v3753_v0 }
  0x2f   : > { %378 = vst [vmem:[#allocation3 + $0x70] sm:$0xff] %v3753_v0 }
  0x30   : > { %379 = vst [vmem:[#allocation3 + $0x10] sm:$0xff] %v3753_v0 }
  0x31   : > { %380 = vst [vmem:[#allocation3 + $0x28] sm:$0xff] %v3753_v0 }
  0x32   : > { %381 = vst [vmem:[#allocation3 + $0x40] sm:$0xff] %v3753_v0 }
  0x33   : > { %382 = vst [vmem:[#allocation3 + $0x38] sm:$0xff] %v3753_v0 }
  0x34   : > { %383 = vst [vmem:[#allocation3 + $0x8] sm:$0xff] %v3753_v0 }
  0x35   : > { %384 = vst [vmem:[#allocation3 + $0x58] sm:$0xff] %v3753_v0 }
  0x36   : > { %385 = vst [vmem:[#allocation3 + $0x48] sm:$0xff] %v3753_v0 }
  0x37   : > { %386 = vst [vmem:[#allocation3 + $0x78] sm:$0xff] %v3753_v0 }
  0x38   : > { %387 = vst [vmem:[#allocation3 + $0x30] sm:$0xff] %v3753_v0 }
  0x39 PF: > { %v2890_v1 = vld [vmem:[%s6321_s4 + $0x2] sm:$0x3]  ;;  %v428_v2 = vld [vmem:[%s6321_s4] sm:$0x3]  ;;  %v2891_v5 = vld [vmem:[%s6321_s4 + $0x4] sm:$0x3] }
  0x3a   : > { %v456_v3 = vperm.slane %v2890_v1, 0  ;;  %v430_v4 = vperm.slane %v428_v2, 0  ;;  %s3754_s7 = smov 112   ;;  %s3755_s10 = smov 111   ;;  %v482_v6 = vperm.slane %v2891_v5, 0  ;;  %v457_v7 = vperm.slane %v2890_v1, 1 }
  0x3b   : > { %s3756_s11 = smov 113   ;;  %v431_v8 = vperm.slane %v428_v2, 1  ;;  %v483_v9 = vperm.slane %v2891_v5, 1  ;;  %v2892_v10 = vld [vmem:[%s6321_s4 + $0x6] sm:$0x3]  ;;  %s3757_s6 = smov 127  }
  0x3c   : > { %458 = vrot.lane.b32.xlu1 %v456_v3, %s3754_s7  ;;  %432 = vrot.lane.b32.xlu0 %v430_v4, %s3755_s10  ;;  %v509_v11 = vperm.slane %v2892_v10, 1  ;;  %v508_v12 = vperm.slane %v2892_v10, 0  ;;  %v2894_v13 = vld [vmem:[%s6321_s4 + $0xa] sm:$0x3]  ;;  %v2895_v15 = vld [vmem:[%s6321_s4 + $0xc] sm:$0x3] }
  0x3d   : > { %484 = vrot.lane.b32.xlu2 %v482_v6, %s3756_s11  ;;  %v549_v14 = vperm.slane %v2894_v13, 0  ;;  %s3758_s19 = smov 1   ;;  %v550_v16 = vperm.slane %v2894_v13, 1  ;;  %v575_v17 = vperm.slane %v2895_v15, 0  ;;  %v576_v18 = vperm.slane %v2895_v15, 1  ;;  %s3759_s23 = smov 15  }
  0x3e   : > { %v2896_v19 = vld [vmem:[%s6321_s4 + $0xe] sm:$0x3]  ;;  %v2893_v20 = vld [vmem:[%s6321_s4 + $0x8] sm:$0x3]  ;;  %v2897_v23 = vld [vmem:[%s6321_s4 + $0x10] sm:$0x3] }
  0x3f   : > { %v601_v21 = vperm.slane %v2896_v19, 0  ;;  %v602_v22 = vperm.slane %v2896_v19, 1  ;;  %v3922_v24 = vld [vmem:[#allocation3 + $0x18] sm:$0xff]  ;;  %v3924_v25 = vld [vmem:[#allocation3 + $0x50] sm:$0xff]  ;;  %v534_v26 = vperm.slane %v2893_v20, 0  ;;  %v535_v27 = vperm.slane %v2893_v20, 1 }
  0x40   : > { %v627_v28 = vperm.slane %v2897_v23, 0  ;;  %s3760_s18 = smov 16   ;;  %v628_v31 = vperm.slane %v2897_v23, 1  ;;  %v3929_v33 = vld [vmem:[#allocation3 + $0x40] sm:$0xff]  ;;  %v3931_v34 = vld [vmem:[#allocation3 + $0x38] sm:$0xff]  ;;  %v3940_v39 = vld [vmem:[#allocation3 + $0x70] sm:$0xff] }
  0x41   : > { %v538_v29 = vmul.f32 %v534_v26, %v3922_v24  ;;  %v539_v30 = vmul.f32 %v535_v27, %v3924_v25  ;;  %v542_v35 = vmul.f32 %v534_v26, %v3929_v33  ;;  %v543_v36 = vmul.f32 %v535_v27, %v3931_v34  ;;  %v3938_v38 = vld [vmem:[#allocation3 + $0x20] sm:$0xff]  ;;  %v3942_v40 = vld [vmem:[#allocation3 + $0x48] sm:$0xff]  ;;  %v3946_v43 = vld [vmem:[#allocation3 + $0x78] sm:$0xff]  ;;  %p2676_p12 = scmp.eq.s32.totalorder %s3727_s21, 7  ;;  %p2679_p13 = scmp.gt.s32.totalorder %s3731_s22, 0 }
  0x42   : > { %v540_v41 = vmul.f32 %v534_v26, %v3938_v38  ;;  %v541_v42 = vmul.f32 %v535_v27, %v3940_v39  ;;  %v544_v44 = vmul.f32 %v534_v26, %v3942_v40  ;;  %v545_v45 = vmul.f32 %v535_v27, %v3946_v43  ;;  %v3952_v48 = vld [vmem:[#allocation3 + $0x68] sm:$0xff]  ;;  %v3954_v49 = vld [vmem:[#allocation3] sm:$0xff]  ;;  %v3956_v50 = vld [vmem:[#allocation3 + $0x58] sm:$0xff] }
  0x43   : > { %v3066_v32 = vpack.i.bf16 %v539_v30, %v538_v29  ;;  %v3076_v37 = vpack.i.bf16 %v543_v36, %v542_v35  ;;  %v3958_v51 = vld [vmem:[#allocation3 + $0x28] sm:$0xff]  ;;  %vm462_vm0 = vcmask 916480   ;;  %vm436_vm1 = vcmask 908288   ;;  %v4035_v23 = vld [vmem:[#allocation3 + $0x60] sm:$0xff]  ;;  %p5413_p0 = pnand %p2676_p12, %p358_p9  ;;  %p5419_p1 = pnand %p2679_p13, %p359_p10 }
  0x44   : > { %460 = vrot.lane.b32.xlu1 %v457_v7, %s3754_s7  ;;  %434 = vrot.lane.b32.xlu0 %v431_v8, %s3755_s10  ;;  %v3071_v46 = vpack.i.bf16 %v541_v42, %v540_v41  ;;  %v3081_v47 = vpack.i.bf16 %v545_v45, %v544_v44  ;;  %vm488_vm2 = vcmask 924672   ;;  %6383 = vst [vmem:[#allocation5_spill] sm:$0xff] %v4035_v23  ;;  %v4051_v42 = vld [vmem:[#allocation3 + $0x8] sm:$0xff]  ;;  %vm514_vm3 = vcmask 1039360  }
  0x45   : > { %486 = vrot.lane.b32.xlu2 %v483_v9, %s3756_s11  ;;  %s3764_s11 = smov 96   ;;  %vm555_vm4 = vcmask 7168   ;;  %vm581_vm5 = vcmask 121856   ;;  %vm607_vm6 = vcmask 130048   ;;  %vm633_vm7 = vcmask 138240   ;;  %p2678_p2 = pneg %p5413_p0 }
  0x46   : > { %vm730_vm8 = vcmask 1031168   ;;  %vm847_vm9 = vcmask 900096   ;;  %vm892_vm10 = vcmask 785408   ;;  %vm937_vm11 = vcmask 777216   ;;  %p2681_p3 = pneg %p5419_p1 }
  0x47   : > { %vm982_vm12 = vcmask 769024   ;;  %vm1411_vm13 = vcmask 261120   ;;  %vm1899_vm14 = vcmask 1042432   ;;  %vm1850_vm15 = vcmask 220160  }
  0x48   : > { %p5444_p4 = por %p2681_p3, %p2678_p2 }
  0x4c   : > { %512 = vrot.lane.b32.xlu1 %v509_v11, %s3757_s6  ;;  %510 = vrot.lane.b32.xlu0 %v508_v12, %s3757_s6 }
  0x4d   : > { %551 = vrot.lane.b32.xlu2 %v549_v14, %s3758_s19 }
  0x54   : > { %553 = vrot.lane.b32.xlu0 %v550_v16, %s3758_s19  ;;  %577 = vrot.lane.b32.xlu1 %v575_v17, %s3759_s23  ;;  %s3761_s19 = smov 17  }
  0x55   : > { %579 = vrot.lane.b32.xlu2 %v576_v18, %s3759_s23  ;;  %s3763_s23 = smov 126  }
  0x5c   : > { %603 = vrot.lane.b32.xlu0 %v601_v21, %s3760_s18  ;;  %605 = vrot.lane.b32.xlu1 %v602_v22, %s3760_s18 }
  0x5d   : > { %629 = vrot.lane.b32.xlu2 %v627_v28, %s3761_s19 }
  0x64   : > { %631 = vrot.lane.b32.xlu0 %v628_v31, %s3761_s19  ;;  %3067 = vrot.lane.b32.xlu1 %v3066_v32, %s3755_s10 }
  0x65   : > { %3072 = vrot.lane.b32.xlu2 %v3071_v46, %s3755_s10 }
  0x6c   : > { %3077 = vrot.lane.b32.xlu0 %v3076_v37, %s3755_s10  ;;  %3082 = vrot.lane.b32.xlu1 %v3081_v47, %s3755_s10  ;;  %s3762_s10 = smov 110  }
  0x97   : > { %v485_v54 = vpop.permute.xlu2 %484 }
  0x98   : > { %v496_v28 = vmul.f32 %v485_v54, %v3952_v48  ;;  %v493_v30 = vmul.f32 %v485_v54, %v3954_v49  ;;  %v502_v47 = vmul.f32 %v485_v54, %v3956_v50 }
  0x9f   : > { %v3990_v4 = vpop.permute.xlu2 %486 }
  0xa0   : > { %v4029_v21 = vsel %vm488_vm2, %v485_v54, %v3990_v4  ;;  %v495_v27 = vmul.f32 %v3990_v4, %v3924_v25  ;;  %v501_v46 = vmul.f32 %v3990_v4, %v3931_v34 }
  0xa1   : > { %v494_v31 = vmul.f32 %v4029_v21, %v3922_v24 }
  0xa2   : > { %v3096_v37 = vpack.i.bf16 %v496_v28, %v495_v27 }
  0xa3   : > { %v3156_v41 = vpack.i.bf16 %v494_v31, %v493_v30 }
  0xa7   : > { %v4026_v20 = vpop.permute.xlu2 %551 }
  0xa8   : > { %v563_v26 = vmul.f32 %v4026_v20, %v3938_v38  ;;  %v569_v45 = vmul.f32 %v4026_v20, %v3942_v40 }
  0xae   : > { %v459_v52 = vpop.permute.xlu1 %458  ;;  %v433_v53 = vpop.permute.xlu0 %432 }
  0xaf   : > { %v3961_v55 = vmul.f32 %v433_v53, %v3952_v48  ;;  %v3964_v56 = vmul.f32 %v433_v53, %v3956_v50  ;;  %v3967_v57 = vmul.f32 %v433_v53, %v3958_v51  ;;  %v3970_v58 = vmul.f32 %v433_v53, %v3954_v49 }
  0xb0   : > { %v470_v59 = vmul.f32 %v459_v52, %v3952_v48  ;;  %v467_v62 = vmul.f32 %v459_v52, %v3954_v49  ;;  %v476_v11 = vmul.f32 %v459_v52, %v3956_v50  ;;  %v473_v14 = vmul.f32 %v459_v52, %v3958_v51 }
  0xb6   : > { %v3973_v60 = vpop.permute.xlu1 %460  ;;  %v3975_v61 = vpop.permute.xlu0 %434 }
  0xb7   : > { %v3980_v63 = vsel %vm462_vm0, %v459_v52, %v3973_v60  ;;  %v3984_v0 = vsel %vm436_vm1, %v433_v53, %v3975_v61  ;;  %v469_v1 = vmul.f32 %v3973_v60, %v3924_v25  ;;  %v3999_v7 = vmul.f32 %v3975_v61, %v3946_v43 }
  0xb8   : > { %v468_v2 = vmul.f32 %v3980_v63, %v3922_v24  ;;  %v3995_v6 = vmul.f32 %v3984_v0, %v3942_v40  ;;  %v4004_v8 = vmul.f32 %v3984_v0, %v3938_v38  ;;  %v4008_v9 = vmul.f32 %v3975_v61, %v3940_v39 }
  0xb9   : > { %v3086_v3 = vpack.i.bf16 %v470_v59, %v469_v1  ;;  %v475_v10 = vmul.f32 %v3973_v60, %v3931_v34  ;;  %v474_v15 = vmul.f32 %v3980_v63, %v3929_v33  ;;  %v4024_v17 = vmul.f32 %v3975_v61, %v3924_v25  ;;  %v4066_v59 = vpop.permute.xlu2 %579 }
  0xba   : > { %v3136_v5 = vpack.i.bf16 %v468_v2, %v467_v62  ;;  %v3271_v12 = vpack.i.bf16 %v3999_v7, %v3995_v6  ;;  %v499_v52 = vmul.f32 %v485_v54, %v3958_v51  ;;  %v500_v53 = vmul.f32 %v4029_v21, %v3929_v33 }
  0xbb   : > { %3087 = vrot.lane.b32.xlu2 %v3086_v3, %s3757_s6  ;;  %v3091_v18 = vpack.i.bf16 %v476_v11, %v475_v10  ;;  %v3146_v19 = vpack.i.bf16 %v474_v15, %v473_v14  ;;  %v3101_v2 = vpack.i.bf16 %v502_v47, %v501_v46  ;;  %v588_v54 = vmul.f32 %v4066_v59, %v4035_v23 }
  0xbc   : > { %3137 = vrot.lane.b32.xlu1 %v3136_v5, %s3757_s6  ;;  %v3166_v3 = vpack.i.bf16 %v500_v53, %v499_v52  ;;  %v471_v28 = vmul.f32 %v3980_v63, %v3938_v38 }
  0xbe   : > { %v4015_v13 = vpop.permute.xlu0 %510  ;;  %v4049_v35 = vpop.permute.xlu1 %512 }
  0xbf   : > { %v4073_v5 = vsel %vm514_vm3, %v4015_v13, %v4049_v35  ;;  %v521_v11 = vmul.f32 %v4049_v35, %v3924_v25  ;;  %v522_v14 = vmul.f32 %v4015_v13, %v3952_v48  ;;  %v519_v15 = vmul.f32 %v4015_v13, %v3954_v49 }
  0xc0   : > { %v472_v48 = vmul.f32 %v3973_v60, %v3940_v39  ;;  %v527_v49 = vmul.f32 %v4049_v35, %v3931_v34  ;;  %v528_v30 = vmul.f32 %v4015_v13, %v3956_v50  ;;  %v525_v31 = vmul.f32 %v4015_v13, %v3958_v51 }
  0xc1   : > { %v477_v50 = vmul.f32 %v3980_v63, %v3942_v40  ;;  %v478_v51 = vmul.f32 %v3973_v60, %v3946_v43  ;;  %v4125_v63 = vld [vmem:[#allocation3 + $0x30] sm:$0xff]  ;;  %v497_v60 = vmul.f32 %v4029_v21, %v3938_v38 }
  0xc3   : > { %3092 = vrot.lane.b32.xlu2 %v3091_v18, %s3757_s6  ;;  %v520_v18 = vmul.f32 %v4073_v5, %v3922_v24  ;;  %v3151_v53 = vpack.i.bf16 %v478_v51, %v477_v50 }
  0xc4   : > { %3147 = vrot.lane.b32.xlu1 %v3146_v19, %s3757_s6 }
  0xc5   : > { %v3176_v27 = vpack.i.bf16 %v520_v18, %v519_v15 }
  0xc6   : > { %v4042_v29 = vpop.permute.xlu0 %553  ;;  %v4068_v62 = vpop.permute.xlu1 %577 }
  0xc7   : > { %v562_v32 = vmul.f32 %v4042_v29, %v4035_v23  ;;  %v568_v44 = vmul.f32 %v4042_v29, %v4051_v42  ;;  %v589_v10 = vmul.f32 %v4068_v62, %v3938_v38  ;;  %v592_v13 = vmul.f32 %v4068_v62, %v3929_v33 }
  0xc8   : > { %v595_v46 = vmul.f32 %v4068_v62, %v3942_v40 }
  0xc9   : > { %v3116_v36 = vpack.i.bf16 %v563_v26, %v562_v32  ;;  %v3121_v1 = vpack.i.bf16 %v569_v45, %v568_v44  ;;  %v3126_v19 = vpack.i.bf16 %v589_v10, %v588_v54  ;;  %v3106_v26 = vpack.i.bf16 %v522_v14, %v521_v11  ;;  %v4109_v45 = vld [vmem:[#allocation3 + $0x10] sm:$0xff] }
  0xca   : > { %v526_v32 = vmul.f32 %v4073_v5, %v3929_v33  ;;  %v556_v44 = vsel %vm555_vm4, %v4026_v20, %v4042_v29  ;;  %6384 = vst [vmem:[#allocation6_spill] sm:$0xff] %v4109_v45  ;;  %v565_v52 = vmul.f32 %v4042_v29, %v4109_v45  ;;  %v560_v54 = vmul.f32 %v4026_v20, %v3922_v24 }
  0xcb   : > { %3117 = vrot.lane.b32.xlu0 %v3116_v36, %s3762_s10  ;;  %3097 = vrot.lane.b32.xlu2 %v3096_v37, %s3763_s23  ;;  %v3141_v36 = vpack.i.bf16 %v472_v48, %v471_v28  ;;  %v3111_v37 = vpack.i.bf16 %v528_v30, %v527_v49  ;;  %v564_v47 = vmul.f32 %v556_v44, %v3940_v39 }
  0xcc   : > { %3157 = vrot.lane.b32.xlu1 %v3156_v41, %s3763_s23  ;;  %v3186_v41 = vpack.i.bf16 %v526_v32, %v525_v31  ;;  %v561_v10 = vmul.f32 %v556_v44, %v3924_v25  ;;  %v570_v11 = vmul.f32 %v556_v44, %v3946_v43  ;;  %v571_v14 = vmul.f32 %v4042_v29, %v4125_v63 }
  0xcd   : > { %v582_v28 = vsel %vm581_vm5, %v4068_v62, %v4066_v59  ;;  %v503_v29 = vmul.f32 %v4029_v21, %v3942_v40  ;;  %v504_v48 = vmul.f32 %v3990_v4, %v3946_v43  ;;  %v566_v49 = vmul.f32 %v4026_v20, %v3929_v33 }
  0xce   : > { %v4138_v15 = vpop.permute.xlu0 %603  ;;  %v567_v30 = vmul.f32 %v556_v44, %v3931_v34  ;;  %v590_v31 = vmul.f32 %v582_v28, %v3940_v39  ;;  %v591_v32 = vmul.f32 %v4066_v59, %v4109_v45  ;;  %v523_v20 = vmul.f32 %v4073_v5, %v3938_v38 }
  0xcf   : > { %v618_v44 = vmul.f32 %v4138_v15, %v3929_v33 }
  0xd3   : > { %3122 = vrot.lane.b32.xlu0 %v3121_v1, %s3762_s10  ;;  %3102 = vrot.lane.b32.xlu2 %v3101_v2, %s3763_s23  ;;  %v3131_v1 = vpack.i.bf16 %v595_v46, %v592_v13  ;;  %v3201_v2 = vpack.i.bf16 %v565_v52, %v564_v47  ;;  %v524_v46 = vmul.f32 %v4049_v35, %v3940_v39 }
  0xd4   : > { %3167 = vrot.lane.b32.xlu1 %v3166_v3, %s3763_s23  ;;  %v498_v3 = vmul.f32 %v3990_v4, %v3940_v39  ;;  %v3221_v4 = vpack.i.bf16 %v591_v32, %v590_v31  ;;  %v586_v47 = vmul.f32 %v4068_v62, %v3922_v24  ;;  %v587_v52 = vmul.f32 %v582_v28, %v3924_v25 }
  0xd5   : > { %v615_v62 = vmul.f32 %v4138_v15, %v3938_v38 }
  0xd6   : > { %v3161_v18 = vpack.i.bf16 %v498_v3, %v497_v60  ;;  %v4161_v50 = vpop.permute.xlu0 %631  ;;  %v3181_v3 = vpack.i.bf16 %v524_v46, %v523_v20 }
  0xd7   : > { %6386 = vst [vmem:[#allocation8_spill] sm:$0xff] %v4161_v50 }
  0xdb   : > { %3127 = vrot.lane.b32.xlu0 %v3126_v19, %s3764_s11  ;;  %3107 = vrot.lane.b32.xlu2 %v3106_v26, %s3754_s7  ;;  %v3196_v19 = vpack.i.bf16 %v561_v10, %v560_v54  ;;  %v3211_v26 = vpack.i.bf16 %v571_v14, %v570_v11  ;;  %v3216_v54 = vpack.i.bf16 %v587_v52, %v586_v47 }
  0xdc   : > { %3177 = vrot.lane.b32.xlu1 %v3176_v27, %s3754_s7  ;;  %v4140_v27 = vpop.permute.xlu2 %629 }
  0xdd   : > { %v634_v32 = vsel %vm633_vm7, %v4140_v27, %v4161_v50 }
  0xde   : > { %v4193_v14 = vpop.permute.xlu0 %3077  ;;  %v642_v20 = vmul.f32 %v634_v32, %v3940_v39 }
  0xe3   : > { %3142 = vrot.lane.b32.xlu0 %v3141_v36, %s3757_s6  ;;  %3112 = vrot.lane.b32.xlu2 %v3111_v37, %s3754_s7  ;;  %v4157_v36 = vpop.permute.xlu1 %605  ;;  %v3171_v37 = vpack.i.bf16 %v504_v48, %v503_v29  ;;  %v596_v29 = vmul.f32 %v582_v28, %v3946_v43 }
  0xe4   : > { %3187 = vrot.lane.b32.xlu1 %v3186_v41, %s3754_s7  ;;  %6385 = vst [vmem:[#allocation7_spill] sm:$0xff] %v4157_v36  ;;  %v3206_v41 = vpack.i.bf16 %v567_v30, %v566_v49  ;;  %v608_v21 = vsel %vm607_vm6, %v4138_v15, %v4157_v36  ;;  %v4171_v13 = vpop.permute.xlu2 %3072  ;;  %v6325_v49 = vunpack.i.h.bf16 %v4193_v14 }
  0xe5   : > { %v619_v51 = vmul.f32 %v608_v21, %v3931_v34  ;;  %v616_v11 = vmul.f32 %v608_v21, %v3940_v39 }
  0xe7   : > { %v3231_v60 = vpack.i.bf16 %v619_v51, %v618_v44  ;;  %v3236_v30 = vpack.i.bf16 %v616_v11, %v615_v62  ;;  %v621_v44 = vmul.f32 %v4138_v15, %v3942_v40  ;;  %v622_v51 = vmul.f32 %v608_v21, %v3946_v43 }
  0xe8   : > { %v644_v62 = vmul.f32 %v4140_v27, %v3929_v33  ;;  %v645_v11 = vmul.f32 %v634_v32, %v3931_v34 }
  0xe9   : > { %v3226_v52 = vpack.i.bf16 %v622_v51, %v621_v44 }
  0xeb   : > { %3152 = vrot.lane.b32.xlu0 %v3151_v53, %s3757_s6  ;;  %3132 = vrot.lane.b32.xlu2 %v3131_v1, %s3764_s11  ;;  %v6324_v53 = vunpack.i.h.bf16 %v4171_v13  ;;  %v4179_v1 = vpop.permute.xlu1 %3067  ;;  %s3765_s6 = smov 95  }
  0xec   : > { %3202 = vrot.lane.b32.xlu1 %v3201_v2, %s3762_s10  ;;  %v6327_v2 = vunpack.i.h.bf16 %v4179_v1 }
  0xee   : > { %v4186_v10 = vpack.i.bf16 %v6327_v2, %v6324_v53 }
  0xf0   : > { %6387 = vst [vmem:[#allocation9_spill] sm:$0xff] %v4186_v10 }
  0xf3   : > { %3162 = vrot.lane.b32.xlu0 %v3161_v18, %s3763_s23  ;;  %3197 = vrot.lane.b32.xlu2 %v3196_v19, %s3762_s10  ;;  %v529_v18 = vmul.f32 %v4073_v5, %v3942_v40  ;;  %v530_v19 = vmul.f32 %v4049_v35, %v3946_v43  ;;  %v4202_v48 = vpop.permute.xlu1 %3082 }
  0xf4   : > { %3212 = vrot.lane.b32.xlu1 %v3211_v26, %s3762_s10  ;;  %v593_v26 = vmul.f32 %v582_v28, %v3931_v34  ;;  %v6326_v31 = vunpack.i.h.bf16 %v4202_v48  ;;  %v647_v28 = vmul.f32 %v4140_v27, %v3942_v40  ;;  %v612_v40 = vmul.f32 %v4138_v15, %v3922_v24 }
  0xf5   : > { %v3256_v15 = vpack.i.bf16 %v645_v11, %v644_v62 }
  0xf6   : > { %v4213_v35 = vpack.i.bf16 %v6325_v49, %v6326_v31  ;;  %v3246_v5 = vpack.i.bf16 %v593_v26, %v596_v29 }
  0xf8   : > { %6388 = vst [vmem:[#allocation10_spill] sm:$0xff] %v4213_v35 }
  0xfb   : > { %3172 = vrot.lane.b32.xlu0 %v3171_v37, %s3763_s23  ;;  %3207 = vrot.lane.b32.xlu2 %v3206_v41, %s3762_s10  ;;  %v3191_v37 = vpack.i.bf16 %v530_v19, %v529_v18  ;;  %v648_v41 = vmul.f32 %v634_v32, %v3946_v43  ;;  %v613_v43 = vmul.f32 %v608_v21, %v3924_v25 }
  0xfc   : > { %3222 = vrot.lane.b32.xlu1 %v3221_v4, %s3764_s11  ;;  %v641_v4 = vmul.f32 %v4140_v27, %v3938_v38  ;;  %v639_v38 = vmul.f32 %v634_v32, %v3924_v25 }
  0xfd   : > { %v3251_v46 = vpack.i.bf16 %v648_v41, %v647_v28 }
  0xfe   : > { %v3261_v47 = vpack.i.bf16 %v642_v20, %v641_v4 }
 0x103   : > { %3182 = vrot.lane.b32.xlu0 %v3181_v3, %s3754_s7  ;;  %3217 = vrot.lane.b32.xlu2 %v3216_v54, %s3764_s11  ;;  %v3241_v54 = vpack.i.bf16 %v613_v43, %v612_v40 }
 0x104   : > { %3232 = vrot.lane.b32.xlu1 %v3231_v60, %s3765_s6  ;;  %v638_v60 = vmul.f32 %v4140_v27, %v3922_v24 }
 0x106   : > { %v3266_v3 = vpack.i.bf16 %v639_v38, %v638_v60 }
 0x10b   : > { %3192 = vrot.lane.b32.xlu0 %v3191_v37, %s3754_s7  ;;  %3237 = vrot.lane.b32.xlu2 %v3236_v30, %s3765_s6  ;;  %s3766_s7 = smov 94   ;;  %v4257_v30 = vmul.f32 %v3975_v61, %v3931_v34 }
 0x10c   : > { %3247 = vrot.lane.b32.xlu1 %v3246_v5, %s3764_s11 }
 0x113   : > { %3227 = vrot.lane.b32.xlu0 %v3226_v52, %s3765_s6  ;;  %3252 = vrot.lane.b32.xlu2 %v3251_v46, %s3766_s7 }
 0x114   : > { %3262 = vrot.lane.b32.xlu1 %v3261_v47, %s3766_s7 }
 0x115   : > { %v4233_v39 = vpop.permute.xlu2 %3087 }
 0x116   : > { %v3089_v27 = vunpack.i.l.bf16 %v4233_v39 }
 0x11b   : > { %3242 = vrot.lane.b32.xlu0 %v3241_v54, %s3765_s6  ;;  %3267 = vrot.lane.b32.xlu2 %v3266_v3, %s3766_s7 }
 0x11c   : > { %3272 = vrot.lane.b32.xlu1 %v3271_v12, %s3761_s19 }
 0x11d   : > { %v4247_v18 = vpop.permute.xlu2 %3092 }
 0x11e   : > { %v3094_v5 = vunpack.i.l.bf16 %v4247_v18 }
 0x123   : > { %3257 = vrot.lane.b32.xlu0 %v3256_v15, %s3766_s7 }
 0x125   : > { %v4250_v25 = vpop.permute.xlu2 %3097 }
 0x126   : > { %v3099_v46 = vunpack.i.l.bf16 %v4250_v25 }
 0x12d   : > { %v4252_v21 = vpop.permute.xlu2 %3102 }
 0x12e   : > { %v3138_v19 = vpop.permute.xlu1 %3137  ;;  %v3104_v62 = vunpack.i.l.bf16 %v4252_v21 }
 0x12f   : > { %v3140_v26 = vunpack.i.h.bf16 %v3138_v19  ;;  %v3139_v29 = vunpack.i.l.bf16 %v3138_v19 }
 0x131   : > { %v4260_v6 = vsel %vm514_vm3, %v3140_v26, %v3089_v27  ;;  %v4263_v7 = vsel %vm514_vm3, %v3139_v29, %v3140_v26 }
 0x135   : > { %v4267_v32 = vpop.permute.xlu2 %3107 }
 0x136   : > { %v3148_v37 = vpop.permute.xlu1 %3147 }
 0x137   : > { %v3150_v28 = vunpack.i.h.bf16 %v3148_v37  ;;  %v3149_v41 = vunpack.i.l.bf16 %v3148_v37 }
 0x139   : > { %v4271_v4 = vsel %vm514_vm3, %v3150_v28, %v3094_v5  ;;  %v690_v34 = vsel %vm514_vm3, %v3149_v41, %v3150_v28 }
 0x13a   : > { %v4274_v61 = vpack.i.bf16 %v690_v34, %v3089_v27 }
 0x13d   : > { %v4276_v20 = vpop.permute.xlu0 %3117  ;;  %v4278_v44 = vpop.permute.xlu2 %3112 }
 0x13e   : > { %v3158_v51 = vpop.permute.xlu1 %3157  ;;  %v3114_v49 = vunpack.i.l.bf16 %v4278_v44 }
 0x13f   : > { %v3160_v47 = vunpack.i.h.bf16 %v3158_v51  ;;  %v3159_v52 = vunpack.i.l.bf16 %v3158_v51 }
 0x141   : > { %v4282_v60 = vsel %vm730_vm8, %v3160_v47, %v3099_v46  ;;  %v731_v38 = vsel %vm730_vm8, %v3159_v52, %v3160_v47  ;;  %v4307_v52 = vmul.f32 %v3984_v0, %v3922_v24  ;;  %v3090_v24 = vunpack.i.h.bf16 %v4233_v39 }
 0x142   : > { %v4285_v40 = vpack.i.bf16 %v731_v38, %v3094_v5  ;;  %v3119_v5 = vunpack.i.l.bf16 %v4276_v20 }
 0x145   : > { %v4287_v43 = vpop.permute.xlu0 %3122  ;;  %v4289_v3 = vpop.permute.xlu2 %3132 }
 0x146   : > { %v3168_v54 = vpop.permute.xlu1 %3167 }
 0x147   : > { %v3170_v11 = vunpack.i.h.bf16 %v3168_v54  ;;  %v3169_v15 = vunpack.i.l.bf16 %v3168_v54 }
 0x149   : > { %v4293_v19 = vsel %vm730_vm8, %v3170_v11, %v3104_v62  ;;  %v735_v27 = vsel %vm730_vm8, %v3169_v15, %v3170_v11 }
 0x14a   : > { %v4296_v26 = vpack.i.bf16 %v735_v27, %v3099_v46 }
 0x14d   : > { %v4298_v29 = vpop.permute.xlu0 %3127  ;;  %v3198_v37 = vpop.permute.xlu2 %3197 }
 0x14e   : > { %v3200_v28 = vunpack.i.h.bf16 %v3198_v37  ;;  %v3199_v41 = vunpack.i.l.bf16 %v3198_v37  ;;  %v4301_v34 = vpop.permute.xlu1 %3177 }
 0x14f   : > { %v6331_v51 = vunpack.i.h.bf16 %v4301_v34  ;;  %v3179_v47 = vunpack.i.l.bf16 %v4301_v34 }
 0x150   : > { %v4310_v46 = vpack.i.bf16 %v3199_v41, %v3964_v56  ;;  %v4313_v38 = vsel %vm847_vm9, %v3199_v41, %v3200_v28  ;;  %v4316_v54 = vsel %vm847_vm9, %v3200_v28, %v3119_v5  ;;  %v3124_v41 = vunpack.i.l.bf16 %v4287_v43 }
 0x151   : > { %6389 = vst [vmem:[#allocation11_spill] sm:$0xff] %v4316_v54  ;;  %v775_v11 = vsel %vm462_vm0, %v3179_v47, %v6331_v51 }
 0x152   : > { %v4323_v27 = vpack.i.bf16 %v775_v11, %v3104_v62 }
 0x155   : > { %v4326_v37 = vpop.permute.xlu0 %3142  ;;  %v4328_v56 = vpop.permute.xlu2 %3207 }
 0x156   : > { %v6329_v5 = vunpack.i.l.bf16 %v4326_v37  ;;  %v6328_v28 = vunpack.i.h.bf16 %v4328_v56  ;;  %v6330_v53 = vunpack.i.l.bf16 %v4328_v56  ;;  %v3188_v47 = vpop.permute.xlu1 %3187 }
 0x157   : > { %v3190_v31 = vunpack.i.h.bf16 %v3188_v47  ;;  %v3189_v2 = vunpack.i.l.bf16 %v3188_v47 }
 0x158   : > { %v688_v39 = vsel %vm514_vm3, %v3090_v24, %v6329_v5  ;;  %v4341_v62 = vsel %vm847_vm9, %v6328_v28, %v3124_v41  ;;  %v3129_v24 = vunpack.i.l.bf16 %v4298_v29  ;;  %v3120_v5 = vunpack.i.h.bf16 %v4276_v20 }
 0x159   : > { %6390 = vst [vmem:[#allocation12_spill] sm:$0xff] %v4341_v62  ;;  %v4345_v11 = vpack.i.bf16 %v6330_v53, %v688_v39  ;;  %v780_v22 = vsel %vm462_vm0, %v3190_v31, %v3114_v49  ;;  %v779_v51 = vsel %vm462_vm0, %v3189_v2, %v3190_v31 }
 0x15a   : > { %v3281_v16 = vpack.i.bf16 %v3114_v49, %v780_v22  ;;  %v6333_v22 = vunpack.i.l.bf16 %v4267_v32 }
 0x15c   : > { %3282 = vrot.lane.b32.xlu1 %v3281_v16, %s3761_s19  ;;  %v3296_v10 = vpack.i.bf16 %v779_v51, %v6333_v22 }
 0x15d   : > { %v4349_v12 = vpop.permute.xlu0 %3152  ;;  %v4351_v15 = vpop.permute.xlu2 %3217 }
 0x15e   : > { %v6332_v41 = vunpack.i.h.bf16 %v4351_v15  ;;  %v3203_v28 = vpop.permute.xlu1 %3202 }
 0x15f   : > { %v3205_v39 = vunpack.i.h.bf16 %v3203_v28  ;;  %v3204_v53 = vunpack.i.l.bf16 %v3203_v28  ;;  %v3100_v28 = vunpack.i.h.bf16 %v4250_v25 }
 0x160   : > { %v4361_v16 = vsel %vm892_vm10, %v6332_v41, %v3129_v24 }
 0x161   : > { %6391 = vst [vmem:[#allocation13_spill] sm:$0xff] %v4361_v16  ;;  %v850_v49 = vsel %vm847_vm9, %v3120_v5, %v3204_v53  ;;  %v4365_v47 = vsel %vm847_vm9, %v3204_v53, %v3205_v39  ;;  %v3125_v53 = vunpack.i.h.bf16 %v4287_v43  ;;  %v3134_v39 = vunpack.i.l.bf16 %v4289_v3 }
 0x162   : > { %6392 = vst [vmem:[#allocation14_spill] sm:$0xff] %v4365_v47  ;;  %v4369_v20 = vpack.i.bf16 %v850_v49, %v3120_v5 }
 0x164   : > { %3297 = vrot.lane.b32.xlu1 %v3296_v10, %s3761_s19 }
 0x165   : > { %v4374_v31 = vpop.permute.xlu0 %3162  ;;  %v4412_v50 = vpop.permute.xlu2 %3237 }
 0x166   : > { %v6335_v24 = vunpack.i.l.bf16 %v4374_v31  ;;  %v3213_v41 = vpop.permute.xlu1 %3212  ;;  %6395 = vst [vmem:[#allocation17_spill] sm:$0xff] %v4412_v50  ;;  %v6348_v45 = vunpack.i.h.bf16 %v4412_v50 }
 0x167   : > { %v3215_v35 = vunpack.i.h.bf16 %v3213_v41  ;;  %v3214_v51 = vunpack.i.l.bf16 %v3213_v41 }
 0x168   : > { %v733_v5 = vsel %vm730_vm8, %v3100_v28, %v6335_v24 }
 0x169   : > { %v4383_v49 = vpack.i.bf16 %v3134_v39, %v733_v5  ;;  %v854_v10 = vsel %vm847_vm9, %v3125_v53, %v3214_v51  ;;  %v4389_v25 = vsel %vm847_vm9, %v3214_v51, %v3215_v35  ;;  %v3110_v51 = vunpack.i.h.bf16 %v4267_v32 }
 0x16a   : > { %v4386_v2 = vpack.i.bf16 %v854_v10, %v3125_v53  ;;  %6393 = vst [vmem:[#allocation15_spill] sm:$0xff] %v4389_v25  ;;  %v3239_v35 = vunpack.i.l.bf16 %v4412_v50 }
 0x16d   : > { %v4393_v22 = vpop.permute.xlu0 %3172 }
 0x16e   : > { %v4395_v47 = vpop.permute.xlu1 %3222 }
 0x16f   : > { %v3225_v41 = vunpack.i.h.bf16 %v4395_v47  ;;  %v6341_v28 = vunpack.i.l.bf16 %v4395_v47 }
 0x171   : > { %v4402_v5 = vsel %vm892_vm10, %v6341_v28, %v3225_v41 }
 0x172   : > { %6394 = vst [vmem:[#allocation16_spill] sm:$0xff] %v4402_v5  ;;  %v940_v5 = vsel %vm937_vm11, %v3239_v35, %v6348_v45 }
 0x175   : > { %v3183_v53 = vpop.permute.xlu0 %3182 }
 0x176   : > { %v3185_v10 = vunpack.i.h.bf16 %v3183_v53  ;;  %v3184_v43 = vunpack.i.l.bf16 %v3183_v53  ;;  %v4407_v24 = vpop.permute.xlu1 %3232 }
 0x177   : > { %v3234_v25 = vunpack.i.l.bf16 %v4407_v24  ;;  %v3235_v36 = vunpack.i.h.bf16 %v4407_v24 }
 0x178   : > { %v778_v62 = vsel %vm462_vm0, %v3184_v43, %v3185_v10  ;;  %v777_v54 = vsel %vm462_vm0, %v3110_v51, %v3184_v43 }
 0x179   : > { %v3286_v41 = vpack.i.bf16 %v3185_v10, %v778_v62  ;;  %v3311_v28 = vpack.i.bf16 %v3234_v25, %v777_v54  ;;  %v3326_v10 = vpack.i.bf16 %v940_v5, %v3239_v35  ;;  %v6396_v35 = vunpack.i.l.bf16 %v4267_v32 }
 0x17b   : > { %3287 = vrot.lane.b32.xlu2 %v3286_v41, %s3761_s19  ;;  %3312 = vrot.lane.b32.xlu1 %v3311_v28, %s3761_s19  ;;  %v3174_v28 = vunpack.i.l.bf16 %v4393_v22 }
 0x17d   : > { %v3193_v53 = vpop.permute.xlu0 %3192 }
 0x17e   : > { %v3195_v16 = vunpack.i.h.bf16 %v3193_v53  ;;  %v3194_v43 = vunpack.i.l.bf16 %v3193_v53  ;;  %v4421_v51 = vpop.permute.xlu1 %3247  ;;  %v3115_v53 = vunpack.i.h.bf16 %v4278_v44 }
 0x17f   : > { %v6350_v54 = vunpack.i.h.bf16 %v4421_v51 }
 0x180   : > { %v782_v62 = vsel %vm462_vm0, %v3194_v43, %v3195_v16  ;;  %v781_v5 = vsel %vm462_vm0, %v3115_v53, %v3194_v43 }
 0x181   : > { %v3276_v23 = vpack.i.bf16 %v3195_v16, %v782_v62  ;;  %v4428_v41 = vsel %vm892_vm10, %v3134_v39, %v6350_v54  ;;  %v3175_v54 = vunpack.i.h.bf16 %v4393_v22 }
 0x183   : > { %3277 = vrot.lane.b32.xlu0 %v3276_v23, %s3761_s19  ;;  %3327 = vrot.lane.b32.xlu1 %v3326_v10, %s3761_s19  ;;  %v6397_v23 = vunpack.i.h.bf16 %v4301_v34  ;;  %v738_v32 = vsel %vm730_vm8, %v3174_v28, %v3175_v54 }
 0x185   : > { %v4435_v45 = vpop.permute.xlu0 %3227  ;;  %v776_v62 = vsel %vm462_vm0, %v6397_v23, %v6396_v35  ;;  %v3165_v23 = vunpack.i.h.bf16 %v4374_v31 }
 0x186   : > { %v3230_v50 = vunpack.i.h.bf16 %v4435_v45  ;;  %v3229_v16 = vunpack.i.l.bf16 %v4435_v45  ;;  %v3291_v44 = vpack.i.bf16 %v776_v62, %v781_v5  ;;  %v3306_v5 = vpack.i.bf16 %v3175_v54, %v738_v32 }
 0x187   : > { %v3155_v62 = vunpack.i.h.bf16 %v4349_v12 }
 0x188   : > { %v944_v39 = vsel %vm937_vm11, %v3229_v16, %v3230_v50 }
 0x189   : > { %v3301_v10 = vpack.i.bf16 %v944_v39, %v3229_v16  ;;  %v942_v16 = vsel %vm937_vm11, %v3234_v25, %v3235_v36  ;;  %v6398_v25 = vunpack.i.l.bf16 %v4374_v31  ;;  %v3249_v31 = vunpack.i.l.bf16 %v4421_v51 }
 0x18a   : > { %v3316_v39 = vpack.i.bf16 %v4293_v19, %v942_v16 }
 0x18b   : > { %3302 = vrot.lane.b32.xlu2 %v3301_v10, %s3761_s19  ;;  %3292 = vrot.lane.b32.xlu0 %v3291_v44, %s3761_s19  ;;  %v3154_v10 = vunpack.i.l.bf16 %v4349_v12  ;;  %v734_v54 = vsel %vm730_vm8, %v6398_v25, %v3165_v23  ;;  %v3105_v12 = vunpack.i.h.bf16 %v4252_v21 }
 0x18c   : > { %v3331_v44 = vpack.i.bf16 %v3165_v23, %v734_v54 }
 0x18d   : > { %v4453_v43 = vpop.permute.xlu0 %3242  ;;  %v693_v19 = vsel %vm514_vm3, %v3154_v10, %v3155_v62  ;;  %v737_v32 = vsel %vm730_vm8, %v3105_v12, %v3174_v28 }
 0x18e   : > { %v3245_v34 = vunpack.i.h.bf16 %v4453_v43  ;;  %v3244_v53 = vunpack.i.l.bf16 %v4453_v43  ;;  %v1006_v43 = vld [vmem:[%s3887_s30 + $0x78] sm:$0xff] }
 0x190   : > { %v938_v22 = vsel %vm937_vm11, %v3244_v53, %v3245_v34  ;;  %v3336_v16 = vpack.i.bf16 %v3244_v53, %v737_v32 }
 0x191   : > { %v3341_v35 = vpack.i.bf16 %v4282_v60, %v938_v22  ;;  %v3356_v60 = vpack.i.bf16 %v3155_v62, %v693_v19  ;;  %v3135_v22 = vunpack.i.h.bf16 %v4289_v3  ;;  %v3130_v3 = vunpack.i.h.bf16 %v4298_v29 }
 0x192   : > { %v3145_v62 = vunpack.i.h.bf16 %v4326_v37  ;;  %v6400_v29 = vpack.i.bf16 %v4271_v4, %v4428_v41 }
 0x193   : > { %3307 = vrot.lane.b32.xlu0 %v3306_v5, %s3761_s19  ;;  %3317 = vrot.lane.b32.xlu2 %v3316_v39, %s3761_s19  ;;  %v3219_v5 = vunpack.i.l.bf16 %v4351_v15  ;;  %v899_v21 = vsel %vm892_vm10, %v3135_v22, %v3249_v31 }
 0x194   : > { %3342 = vrot.lane.b32.xlu1 %v3341_v35, %s3761_s19  ;;  %v3351_v53 = vpack.i.bf16 %v899_v21, %v3135_v22  ;;  %v4505_v35 = vpop.permute.xlu1 %3262 }
 0x195   : > { %v3264_v25 = vunpack.i.l.bf16 %v4505_v35 }
 0x19b   : > { %3322 = vrot.lane.b32.xlu0 %v4323_v27, %s3761_s19  ;;  %3332 = vrot.lane.b32.xlu2 %v3331_v44, %s3761_s19  ;;  %v3095_v27 = vunpack.i.h.bf16 %v4247_v18  ;;  %v6399_v18 = vunpack.i.l.bf16 %v4395_v47  ;;  %v6402_v44 = vunpack.i.h.bf16 %v4351_v15 }
 0x19c   : > { %3357 = vrot.lane.b32.xlu1 %v3356_v60, %s3761_s19 }
 0x19d   : > { %v692_v28 = vsel %vm514_vm3, %v3095_v27, %v3154_v10  ;;  %v3265_v10 = vunpack.i.h.bf16 %v4505_v35  ;;  %v893_v60 = vsel %vm892_vm10, %v3219_v5, %v6402_v44  ;;  %v4958_v35 = vld [vmem:[%s3887_s30 + $0xa0] sm:$0xff] }
 0x19e   : > { %v3386_v39 = vpack.i.bf16 %v3219_v5, %v692_v28 }
 0x19f   : > { %v985_v19 = vsel %vm982_vm12, %v3264_v25, %v3265_v10 }
 0x1a3   : > { %3337 = vrot.lane.b32.xlu0 %v3336_v16, %s3761_s19  ;;  %3347 = vrot.lane.b32.xlu2 %v4296_v26, %s3761_s19  ;;  %v4503_v26 = vpop.permute.xlu2 %3252 }
 0x1a4   : > { %3372 = vrot.lane.b32.xlu1 %v4285_v40, %s3761_s19  ;;  %v895_v40 = vsel %vm892_vm10, %v3130_v3, %v6399_v18  ;;  %v3254_v47 = vunpack.i.l.bf16 %v4503_v26  ;;  %v6405_v18 = vunpack.i.l.bf16 %v4328_v56 }
 0x1a5   : > { %v3376_v23 = vpack.i.bf16 %v895_v40, %v3130_v3  ;;  %v6404_v3 = vunpack.i.h.bf16 %v4328_v56 }
 0x1a6   : > { %v3391_v12 = vpack.i.bf16 %v3254_v47, %v893_v60 }
 0x1a7   : > { %v852_v40 = vsel %vm847_vm9, %v6405_v18, %v6404_v3 }
 0x1ab   : > { %3352 = vrot.lane.b32.xlu0 %v3351_v53, %s3761_s19  ;;  %3362 = vrot.lane.b32.xlu2 %v4383_v49, %s3761_s19  ;;  %v6401_v49 = vunpack.i.l.bf16 %v4326_v37  ;;  %v4527_v4 = vpop.permute.xlu2 %3267  ;;  %v3255_v37 = vunpack.i.h.bf16 %v4503_v26  ;;  %v4920_v26 = vld [vmem:[%s3887_s30 + $0x70] sm:$0xff] }
 0x1ac   : > { %3387 = vrot.lane.b32.xlu1 %v3386_v39, %s3761_s19  ;;  %v3270_v16 = vunpack.i.h.bf16 %v4527_v4  ;;  %v3269_v22 = vunpack.i.l.bf16 %v4527_v4  ;;  %v4964_v4 = vld [vmem:[%s3887_s30 + $0x50] sm:$0xff] }
 0x1ad   : > { %v689_v54 = vsel %vm514_vm3, %v6401_v49, %v3145_v62  ;;  %v989_v15 = vsel %vm982_vm12, %v3254_v47, %v3255_v37  ;;  %v3084_v49 = vunpack.i.l.bf16 %v4202_v48 }
 0x1ae   : > { %v3381_v41 = vpack.i.bf16 %v3145_v62, %v689_v54  ;;  %v3396_v27 = vpack.i.bf16 %v4260_v6, %v989_v15  ;;  %v6403_v6 = vpack.i.bf16 %v4307_v52, %v4313_v38  ;;  %v6406_v52 = vpack.i.bf16 %v4263_v7, %v4257_v30 }
 0x1af   : > { %v6407_v38 = vunpack.i.h.bf16 %v4179_v1  ;;  %v597_v7 = vmul.f32 %v4066_v59, %v4125_v63 }
 0x1b3   : > { %3377 = vrot.lane.b32.xlu2 %v3376_v23, %s3761_s19  ;;  %3367 = vrot.lane.b32.xlu0 %v6400_v29, %s3761_s19  ;;  %v3421_v23 = vpack.i.bf16 %v3264_v25, %v852_v40  ;;  %v4570_v29 = vpop.permute.xlu1 %3272 }
 0x1b4   : > { %3402 = vrot.lane.b32.xlu1 %v4274_v61, %s3761_s19  ;;  %v448_v61 = vmul.f32 %v3984_v0, %v3929_v33  ;;  %v983_v33 = vsel %vm982_vm12, %v3269_v22, %v3270_v16  ;;  %v4543_v0 = vpop.permute.xlu0 %3257 }
 0x1b5   : > { %v3441_v5 = vpack.i.bf16 %v983_v33, %v3269_v22  ;;  %v3260_v21 = vunpack.i.h.bf16 %v4543_v0  ;;  %v3259_v28 = vunpack.i.l.bf16 %v4543_v0  ;;  %v6413_v33 = vunpack.i.h.bf16 %v4171_v13 }
 0x1b6   : > { %v3426_v32 = vpack.i.bf16 %v448_v61, %v985_v19  ;;  %v6410_v19 = vunpack.i.h.bf16 %v4202_v48  ;;  %v3074_v48 = vunpack.i.l.bf16 %v4171_v13  ;;  %v6415_v13 = vld [vmem:[#allocation6_spill] sm:$0xff] }
 0x1b7   : > { %v987_v53 = vsel %vm982_vm12, %v3259_v28, %v3260_v21 }
 0x1b8   : > { %v3411_v39 = vpack.i.bf16 %v987_v53, %v3259_v28 }
 0x1bb   : > { %3392 = vrot.lane.b32.xlu2 %v3391_v12, %s3761_s19  ;;  %3382 = vrot.lane.b32.xlu0 %v3381_v41, %s3761_s19 }
 0x1bc   : > { %3427 = vrot.lane.b32.xlu1 %v3426_v32, %s3761_s19 }
 0x1c3   : > { %3407 = vrot.lane.b32.xlu2 %v4386_v2, %s3761_s19  ;;  %3397 = vrot.lane.b32.xlu0 %v3396_v27, %s3761_s19  ;;  %v3079_v2 = vunpack.i.l.bf16 %v4193_v14  ;;  %v808_v27 = vsel %vm436_vm1, %v3074_v48, %v6413_v33 }
 0x1c4   : > { %3442 = vrot.lane.b32.xlu1 %v3441_v5, %s3761_s19  ;;  %v3481_v53 = vpack.i.bf16 %v808_v27, %v3074_v48 }
 0x1c5   : > { %v3471_v62 = vpack.i.bf16 %v3079_v2, %v3961_v55  ;;  %v6408_v55 = vpack.i.bf16 %v4008_v9, %v4004_v8  ;;  %v6409_v8 = vpack.i.bf16 %v3967_v57, %v4024_v17 }
 0x1cb   : > { %3417 = vrot.lane.b32.xlu2 %v4345_v11, %s3761_s19  ;;  %3412 = vrot.lane.b32.xlu0 %v3411_v39, %s3761_s19  ;;  %v3069_v11 = vunpack.i.l.bf16 %v4179_v1  ;;  %v594_v1 = vmul.f32 %v4066_v59, %v4051_v42  ;;  %v810_v59 = vsel %vm436_vm1, %v3084_v49, %v6410_v19 }
 0x1cc   : > { %3457 = vrot.lane.b32.xlu1 %v6403_v6, %s3761_s19  ;;  %v3466_v17 = vpack.i.bf16 %v810_v59, %v3084_v49  ;;  %v6414_v6 = vld [vmem:[#allocation5_spill] sm:$0xff] }
 0x1cd   : > { %v807_v56 = vsel %vm436_vm1, %v3069_v11, %v6407_v38  ;;  %v3501_v54 = vpack.i.bf16 %v594_v1, %v597_v7 }
 0x1ce   : > { %v3486_v25 = vpack.i.bf16 %v807_v56, %v3069_v11  ;;  %v4581_v47 = vpop.permute.xlu1 %3282  ;;  %v6416_v11 = vld [vmem:[#allocation8_spill] sm:$0xff] }
 0x1cf   : > { %v3285_v18 = vunpack.i.h.bf16 %v4581_v47  ;;  %v3284_v40 = vunpack.i.l.bf16 %v4581_v47  ;;  %v649_v38 = vmul.f32 %v6416_v11, %v4125_v63 }
 0x1d3   : > { %3422 = vrot.lane.b32.xlu0 %v3421_v23, %s3761_s19  ;;  %3432 = vrot.lane.b32.xlu2 %v6406_v52, %s3761_s19  ;;  %v646_v52 = vmul.f32 %v6416_v11, %v4051_v42 }
 0x1d4   : > { %3472 = vrot.lane.b32.xlu1 %v3471_v62, %s3761_s19 }
 0x1d5   : > { %v4590_v30 = vpop.permute.xlu2 %3287  ;;  %v3506_v19 = vpack.i.bf16 %v646_v52, %v649_v38 }
 0x1d6   : > { %v4604_v9 = vpop.permute.xlu1 %3297  ;;  %v3290_v49 = vunpack.i.h.bf16 %v4590_v30  ;;  %v3289_v47 = vunpack.i.l.bf16 %v4590_v30 }
 0x1d8   : > { %v1294_v59 = vsel %vm633_vm7, %v3289_v47, %v3290_v49 }
 0x1db   : > { %3437 = vrot.lane.b32.xlu0 %v4369_v20, %s3761_s19  ;;  %3447 = vrot.lane.b32.xlu2 %v6408_v55, %s3761_s19 }
 0x1dc   : > { %3487 = vrot.lane.b32.xlu1 %v3486_v25, %s3761_s19 }
 0x1e3   : > { %3452 = vrot.lane.b32.xlu0 %v4310_v46, %s3761_s19  ;;  %3462 = vrot.lane.b32.xlu2 %v6409_v8, %s3761_s19  ;;  %v6411_v46 = vunpack.i.h.bf16 %v4193_v14  ;;  %v6412_v14 = vld [vmem:[#allocation7_spill] sm:$0xff]  ;;  %v1296_v8 = vsel %vm633_vm7, %v3284_v40, %v3285_v18 }
 0x1e4   : > { %3502 = vrot.lane.b32.xlu1 %v3501_v54, %s3764_s11  ;;  %v620_v22 = vmul.f32 %v6412_v14, %v4051_v42  ;;  %v623_v15 = vmul.f32 %v6412_v14, %v4125_v63  ;;  %v617_v3 = vmul.f32 %v6412_v14, %v6415_v13 }
 0x1e5   : > { %v4606_v20 = vpop.permute.xlu2 %3302  ;;  %v809_v61 = vsel %vm436_vm1, %v3079_v2, %v6411_v46  ;;  %v614_v2 = vmul.f32 %v6412_v14, %v6414_v6  ;;  %v643_v46 = vmul.f32 %v6416_v11, %v6415_v13 }
 0x1e6   : > { %v3305_v44 = vunpack.i.h.bf16 %v4606_v20  ;;  %v3304_v60 = vunpack.i.l.bf16 %v4606_v20  ;;  %v3476_v41 = vpack.i.bf16 %v3970_v58, %v809_v61  ;;  %v3491_v39 = vpack.i.bf16 %v620_v22, %v623_v15 }
 0x1e7   : > { %v3496_v63 = vpack.i.bf16 %v614_v2, %v617_v3  ;;  %v3300_v61 = vunpack.i.h.bf16 %v4604_v9 }
 0x1e8   : > { %v1329_v57 = vsel %vm633_vm7, %v3304_v60, %v3305_v44  ;;  %v640_v60 = vmul.f32 %v6416_v11, %v6414_v6 }
 0x1e9   : > { %1525 = vmatpush.msra.mxu1 %v1329_v57  ;;  %v3299_v57 = vunpack.i.l.bf16 %v4604_v9  ;;  %v1295_v27 = vsel %vm633_vm7, %v3300_v61, %v3284_v40 }
 0x1ea   : > { %v3511_v33 = vpack.i.bf16 %v640_v60, %v643_v46 }
 0x1eb   : > { %3467 = vrot.lane.b32.xlu0 %v3466_v17, %s3761_s19  ;;  %3477 = vrot.lane.b32.xlu2 %v3476_v41, %s3761_s19 }
 0x1ed   : > { %v3313_v12 = vpop.permute.xlu1 %3312  ;;  %v4623_v32 = vpop.permute.xlu2 %3317 }
 0x1ee   : > { %v3315_v58 = vunpack.i.h.bf16 %v3313_v12  ;;  %v3319_v5 = vunpack.i.l.bf16 %v4623_v32  ;;  %v3314_v14 = vunpack.i.l.bf16 %v3313_v12  ;;  %v3320_v2 = vunpack.i.h.bf16 %v4623_v32 }
 0x1f0   : > { %v1327_v28 = vsel %vm633_vm7, %v3315_v58, %v3319_v5  ;;  %v1293_v58 = vsel %vm633_vm7, %v3314_v14, %v3289_v47 }
 0x1f1   : > { %1526 = vmatpush.msra.mxu1 %v1327_v28 }
 0x1f3   : > { %3482 = vrot.lane.b32.xlu0 %v3481_v53, %s3761_s19  ;;  %3492 = vrot.lane.b32.xlu2 %v3491_v39, %s3765_s6 }
 0x1f5   : > { %v3278_v23 = vpop.permute.xlu0 %3277  ;;  %v4644_v62 = vpop.permute.xlu1 %3327 }
 0x1f6   : > { %v3280_v56 = vunpack.i.h.bf16 %v3278_v23  ;;  %v3279_v25 = vunpack.i.l.bf16 %v3278_v23  ;;  %v3330_v55 = vunpack.i.h.bf16 %v4644_v62  ;;  %v3329_v1 = vunpack.i.l.bf16 %v4644_v62  ;;  %v4652_v7 = vpop.permute.xlu2 %3332 }
 0x1f7   : > { %v3335_v3 = vunpack.i.h.bf16 %v4652_v7  ;;  %v3334_v18 = vunpack.i.l.bf16 %v4652_v7 }
 0x1f8   : > { %v1325_v54 = vsel %vm633_vm7, %v3329_v1, %v3330_v55  ;;  %v1298_v42 = vsel %vm633_vm7, %v3279_v25, %v3280_v56 }
 0x1f9   : > { %1527 = vmatpush.msra.mxu1 %v1325_v54  ;;  %1655 = vmatpush.msra.mxu3 %v1298_v42  ;;  %v1286_v54 = vsel %vm633_vm7, %v3334_v18, %v3335_v3 }
 0x1fb   : > { %1656 = vmatpush.msra.mxu3 %v1296_v8  ;;  %3497 = vrot.lane.b32.xlu0 %v3496_v63, %s3765_s6 }
 0x1fc   : > { %3507 = vrot.lane.b32.xlu2 %v3506_v19, %s3766_s7 }
 0x1fd   : > { %1657 = vmatpush.msra.mxu3 %v1294_v59  ;;  %v3293_v30 = vpop.permute.xlu0 %3292 }
 0x1fe   : > { %v3295_v17 = vunpack.i.h.bf16 %v3293_v30  ;;  %v3294_v41 = vunpack.i.l.bf16 %v3293_v30  ;;  %v3348_v48 = vpop.permute.xlu2 %3347 }
 0x1ff   : > { %v3349_v1 = vunpack.i.l.bf16 %v3348_v48  ;;  %v3350_v42 = vunpack.i.h.bf16 %v3348_v48 }
 0x200   : > { %v1297_v22 = vsel %vm633_vm7, %v3294_v41, %v3279_v25  ;;  %v1292_v15 = vsel %vm633_vm7, %v3295_v17, %v3299_v57 }
 0x201   : > { %1460 = vmatpush.msra.mxu0 %v1297_v22  ;;  %1658 = vmatpush.msra.mxu3 %v1292_v15  ;;  %v1287_v48 = vsel %vm633_vm7, %v3350_v42, %v3320_v2 }
 0x203   : > { %1461 = vmatpush.msra.mxu0 %v1295_v27  ;;  %3512 = vrot.lane.b32.xlu0 %v3511_v33, %s3766_s7 }
 0x205   : > { %v3308_v28 = vpop.permute.xlu0 %3307  ;;  %1462 = vmatpush.msra.mxu0 %v1293_v58 }
 0x206   : > { %v3310_v9 = vunpack.i.h.bf16 %v3308_v28  ;;  %v3309_v53 = vunpack.i.l.bf16 %v3308_v28  ;;  %v4675_v39 = vpop.permute.xlu2 %3362  ;;  %v4677_v12 = vpop.permute.xlu1 %3342 }
 0x207   : > { %v3345_v38 = vunpack.i.h.bf16 %v4677_v12  ;;  %v3344_v8 = vunpack.i.l.bf16 %v4677_v12  ;;  %v3364_v61 = vunpack.i.l.bf16 %v4675_v39 }
 0x208   : > { %v1290_v6 = vsel %vm633_vm7, %v3309_v53, %v3310_v9 }
 0x209   : > { %1659 = vmatpush.msra.mxu3 %v1290_v6  ;;  %v1284_v7 = vsel %vm633_vm7, %v3345_v38, %v3349_v1  ;;  %v1285_v14 = vsel %vm633_vm7, %v3364_v61, %v3334_v18 }
 0x20d   : > { %v3323_v13 = vpop.permute.xlu0 %3322 }
 0x20e   : > { %v3325_v40 = vunpack.i.h.bf16 %v3323_v13  ;;  %v3324_v23 = vunpack.i.l.bf16 %v3323_v13  ;;  %v4683_v11 = vpop.permute.xlu2 %3377  ;;  %v3358_v52 = vpop.permute.xlu1 %3357 }
 0x20f   : > { %v3360_v49 = vunpack.i.h.bf16 %v3358_v52  ;;  %v3359_v47 = vunpack.i.l.bf16 %v3358_v52  ;;  %v6366_v13 = vunpack.i.h.bf16 %v4683_v11  ;;  %v3379_v18 = vunpack.i.l.bf16 %v4683_v11 }
 0x210   : > { %v1291_v56 = vsel %vm633_vm7, %v3325_v40, %v3295_v17  ;;  %v1288_v25 = vsel %vm633_vm7, %v3320_v2, %v3324_v23  ;;  %v3365_v2 = vunpack.i.h.bf16 %v4675_v39 }
 0x211   : > { %1463 = vmatpush.msra.mxu0 %v1291_v56  ;;  %1660 = vmatpush.msra.mxu3 %v1288_v25  ;;  %v1282_v46 = vsel %vm633_vm7, %v3359_v47, %v3360_v49 }
 0x213   : > { %1661 = vmatpush.msra.mxu3 %v1286_v54 }
 0x215   : > { %v3338_v63 = vpop.permute.xlu0 %3337  ;;  %1662 = vmatpush.msra.mxu3 %v1284_v7 }
 0x216   : > { %v3340_v19 = vunpack.i.h.bf16 %v3338_v63  ;;  %v3339_v59 = vunpack.i.l.bf16 %v3338_v63  ;;  %v4691_v30 = vpop.permute.xlu2 %3392  ;;  %v3373_v60 = vpop.permute.xlu1 %3372  ;;  %v1317_v63 = vsel %vm633_vm7, %v3379_v18, %v6366_v13  ;;  %v5062_v13 = vld [vmem:[%s3887_s30 + $0x128] sm:$0xff] }
 0x217   : > { %1663 = vmatpush.msra.mxu3 %v1282_v46  ;;  %v3375_v41 = vunpack.i.h.bf16 %v3373_v60  ;;  %v3374_v40 = vunpack.i.l.bf16 %v3373_v60  ;;  %v6365_v54 = vunpack.i.l.bf16 %v4691_v30 }
 0x218   : > { %v1289_v57 = vsel %vm633_vm7, %v3339_v59, %v3309_v53  ;;  %v1323_v17 = vsel %vm633_vm7, %v3340_v19, %v3344_v8 }
 0x219   : > { %1464 = vmatpush.msra.mxu0 %v1289_v57  ;;  %1528 = vmatpush.msra.mxu1 %v1323_v17  ;;  %v1283_v28 = vsel %vm633_vm7, %v3375_v41, %v3345_v38 }
 0x21b   : > { %1465 = vmatpush.msra.mxu0 %v1287_v48 }
 0x21d   : > { %v4701_v22 = vpop.permute.xlu0 %3352  ;;  %1466 = vmatpush.msra.mxu0 %v1285_v14 }
 0x21e   : > { %v6368_v15 = vunpack.i.h.bf16 %v4701_v22  ;;  %v3354_v33 = vunpack.i.l.bf16 %v4701_v22  ;;  %v4705_v27 = vpop.permute.xlu2 %3407  ;;  %v3388_v58 = vpop.permute.xlu1 %3387 }
 0x21f   : > { %v3389_v9 = vunpack.i.l.bf16 %v3388_v58  ;;  %1467 = vmatpush.msra.mxu0 %v1283_v28  ;;  %v3390_v1 = vunpack.i.h.bf16 %v3388_v58  ;;  %v6364_v7 = vunpack.i.h.bf16 %v4705_v27  ;;  %v3409_v42 = vunpack.i.l.bf16 %v4705_v27 }
 0x220   : > { %v1321_v53 = vsel %vm633_vm7, %v3354_v33, %v6368_v15  ;;  %v3395_v33 = vunpack.i.h.bf16 %v4691_v30  ;;  %v409_v15 = vld [vmem:[%s3871_s20 + $0x28] sm:$0xff] }
 0x221   : > { %v1281_v6 = vsel %vm633_vm7, %v3389_v9, %v3359_v47  ;;  %1529 = vmatpush.msra.mxu1 %v1321_v53  ;;  %v1315_v19 = vsel %vm633_vm7, %v3390_v1, %v6365_v54  ;;  %v1313_v41 = vsel %vm633_vm7, %v3409_v42, %v6364_v7  ;;  %v1036_v7 = vld [vmem:[%s3887_s30 + $0x168] sm:$0xff] }
 0x222   : > { %1468 = vmatpush.msra.mxu0 %v1281_v6 }
 0x225   : > { %v4714_v3 = vpop.permute.xlu0 %3367 }
 0x226   : > { %v4717_v23 = vpop.permute.xlu2 %3417  ;;  %v3370_v52 = vunpack.i.h.bf16 %v4714_v3  ;;  %v6367_v38 = vunpack.i.l.bf16 %v4714_v3  ;;  %v3403_v56 = vpop.permute.xlu1 %3402 }
 0x227   : > { %v3405_v25 = vunpack.i.h.bf16 %v3403_v56  ;;  %v3419_v60 = vunpack.i.l.bf16 %v4717_v23  ;;  %v3404_v28 = vunpack.i.l.bf16 %v3403_v56 }
 0x228   : > { %v1319_v39 = vsel %vm633_vm7, %v3365_v2, %v6367_v38  ;;  %v1280_v49 = vsel %vm633_vm7, %v3370_v52, %v3374_v40  ;;  %v3275_v40 = vunpack.i.h.bf16 %v4570_v29  ;;  %v404_v38 = vld [vmem:[%s3871_s20] sm:$0xff] }
 0x229   : > { %v1279_v47 = vsel %vm633_vm7, %v3405_v25, %v3370_v52  ;;  %1530 = vmatpush.msra.mxu1 %v1319_v39  ;;  %1664 = vmatpush.msra.mxu3 %v1280_v49  ;;  %v3274_v52 = vunpack.i.l.bf16 %v4570_v29 }
 0x22a   : > { %1469 = vmatpush.msra.mxu0 %v1279_v47 }
 0x22b   : > { %1531 = vmatpush.msra.mxu1 %v1317_v63  ;;  %v1274_v63 = vsel %vm633_vm7, %v3274_v52, %v3275_v40 }
 0x22d   : > { %v3383_v59 = vpop.permute.xlu0 %3382  ;;  %1532 = vmatpush.msra.mxu1 %v1315_v19 }
 0x22e   : > { %v3385_v46 = vunpack.i.h.bf16 %v3383_v59  ;;  %v3384_v61 = vunpack.i.l.bf16 %v3383_v59  ;;  %v4736_v57 = vpop.permute.xlu1 %3427  ;;  %v3433_v17 = vpop.permute.xlu2 %3432 }
 0x22f   : > { %1533 = vmatpush.msra.mxu1 %v1313_v41  ;;  %v3435_v9 = vunpack.i.h.bf16 %v3433_v17  ;;  %v3430_v39 = vunpack.i.h.bf16 %v4736_v57  ;;  %v3434_v49 = vunpack.i.l.bf16 %v3433_v17 }
 0x230   : > { %v1277_v48 = vsel %vm633_vm7, %v3419_v60, %v3384_v61  ;;  %v1278_v14 = vsel %vm633_vm7, %v3384_v61, %v3385_v46 }
 0x231   : > { %1470 = vmatpush.msra.mxu0 %v1277_v48  ;;  %1665 = vmatpush.msra.mxu3 %v1278_v14  ;;  %v1272_v59 = vsel %vm633_vm7, %v3430_v39, %v3434_v49 }
 0x235   : > { %v4744_v58 = vpop.permute.xlu0 %3397 }
 0x236   : > { %v4746_v53 = vpop.permute.xlu1 %3442  ;;  %v3400_v6 = vunpack.i.h.bf16 %v4744_v58  ;;  %v6356_v2 = vunpack.i.l.bf16 %v4744_v58  ;;  %v4750_v18 = vpop.permute.xlu2 %3447 }
 0x237   : > { %v3450_v47 = vunpack.i.h.bf16 %v4750_v18  ;;  %v3449_v42 = vunpack.i.l.bf16 %v4750_v18 }
 0x238   : > { %v1275_v25 = vsel %vm633_vm7, %v3435_v9, %v3400_v6  ;;  %v1337_v1 = vsel %vm633_vm7, %v3395_v33, %v6356_v2  ;;  %v1276_v56 = vsel %vm633_vm7, %v3400_v6, %v3404_v28  ;;  %v3420_v9 = vunpack.i.h.bf16 %v4717_v23  ;;  %v4831_v2 = vld [vmem:[%s3887_s30 + $0x28] sm:$0xff] }
 0x239   : > { %1471 = vmatpush.msra.mxu0 %v1275_v25  ;;  %1602 = vmatpush.msra.mxu2 %v1337_v1  ;;  %v1270_v14 = vsel %vm633_vm7, %v3449_v42, %v3450_v47  ;;  %v6354_v6 = vunpack.i.l.bf16 %v4736_v57  ;;  %v6353_v25 = vunpack.i.h.bf16 %v4746_v53  ;;  %v3444_v1 = vunpack.i.l.bf16 %v4746_v53 }
 0x23a   : > { %1666 = vmatpush.msra.mxu3 %v1276_v56 }
 0x23c   : > { %1667 = vmatpush.msra.mxu3 %v1274_v63 }
 0x23d   : > { %v4765_v19 = vpop.permute.xlu0 %3412 }
 0x23e   : > { %v4770_v60 = vpop.permute.xlu1 %3457  ;;  %v6355_v46 = vunpack.i.h.bf16 %v4765_v19  ;;  %v3414_v61 = vunpack.i.l.bf16 %v4765_v19  ;;  %v4774_v17 = vpop.permute.xlu2 %3462  ;;  %1668 = vmatpush.msra.mxu3 %v1272_v59 }
 0x23f   : > { %v3460_v41 = vunpack.i.h.bf16 %v4770_v60  ;;  %v3464_v48 = vunpack.i.l.bf16 %v4774_v17 }
 0x240   : > { %1669 = vmatpush.msra.mxu3 %v1270_v14  ;;  %v1335_v33 = vsel %vm633_vm7, %v3414_v61, %v6355_v46  ;;  %v1331_v61 = vsel %vm633_vm7, %v3444_v1, %v6353_v25 }
 0x241   : > { %1603 = vmatpush.msra.mxu2 %v1335_v33  ;;  %v1268_v28 = vsel %vm633_vm7, %v3460_v41, %v3464_v48  ;;  %v4809_v48 = vld [vmem:[%s3887_s30 + $0x10] sm:$0xff] }
 0x242   : > { %1670 = vmatpush.msra.mxu3 %v1268_v28 }
 0x245   : > { %v4789_v40 = vpop.permute.xlu0 %3422 }
 0x246   : > { %v4793_v56 = vpop.permute.xlu1 %3472  ;;  %v3425_v49 = vunpack.i.h.bf16 %v4789_v40  ;;  %v6358_v47 = vunpack.i.l.bf16 %v4789_v40  ;;  %v4797_v63 = vpop.permute.xlu2 %3477 }
 0x248   : > { %v1311_v23 = vsel %vm633_vm7, %v3420_v9, %v6358_v47  ;;  %v1333_v59 = vsel %vm633_vm7, %v3425_v49, %v6354_v6 }
 0x249   : > { %1534 = vmatpush.msra.mxu1 %v1311_v23  ;;  %1604 = vmatpush.msra.mxu2 %v1333_v59  ;;  %v991_v23 = vld [vmem:[%s3887_s30] sm:$0xff] }
 0x24a   : > { %1671 = vmatmul.f32.vlgmr.msra.gmra.mxu3 %v991_v23 }
 0x24b   : > { %1605 = vmatpush.msra.mxu2 %v1331_v61 }
 0x24c   : > { %2898 = vmatmul.msk.f32.vlgmr.msra.gmra.mxu2 %vm1411_vm13, %v4809_v48 }
 0x24d   : > { %v4811_v14 = vpop.permute.xlu0 %3437 }
 0x24e   : > { %v4815_v33 = vpop.permute.xlu1 %3487  ;;  %v6357_v28 = vunpack.i.h.bf16 %v4811_v14  ;;  %v3439_v9 = vunpack.i.l.bf16 %v4811_v14  ;;  %v3493_v49 = vpop.permute.xlu2 %3492 }
 0x24f   : > { %v3495_v59 = vunpack.i.h.bf16 %v3493_v49  ;;  %v3494_v1 = vunpack.i.l.bf16 %v3493_v49 }
 0x250   : > { %v1309_v61 = vsel %vm633_vm7, %v3439_v9, %v6357_v28  ;;  %v6363_v9 = vunpack.i.l.bf16 %v4770_v60 }
 0x251   : > { %1535 = vmatpush.msra.mxu1 %v1309_v61  ;;  %v943_v25 = vsel %vm937_vm11, %v3235_v36, %v3495_v59  ;;  %v945_v6 = vsel %vm937_vm11, %v3230_v50, %v3494_v1  ;;  %v3465_v61 = vunpack.i.h.bf16 %v4774_v17  ;;  %v994_v59 = vld [vmem:[%s3887_s30 + $0x18] sm:$0xff]  ;;  %v3474_v50 = vunpack.i.l.bf16 %v4793_v56 }
 0x252   : > { %v3516_v46 = vpack.i.bf16 %v943_v25, %v945_v6  ;;  %1674 = vmatmul.f32.gmra.mxu3 %v994_v59  ;;  %v6417_v17 = vunpack.i.h.bf16 %v4421_v51 }
 0x253   : > { %v1271_v29 = vsel %vm633_vm7, %v3465_v61, %v3430_v39  ;;  %v1269_v51 = vsel %vm633_vm7, %v3474_v50, %v3449_v42  ;;  %v6361_v39 = vunpack.i.l.bf16 %v4797_v63 }
 0x254   : > { %3517 = vrot.lane.b32.xlu1 %v3516_v46, %s3761_s19  ;;  %2899 = vmatmul.msk.f32.gmra.mxu2 %vm1411_vm13, %v4831_v2 }
 0x255   : > { %v3453_v49 = vpop.permute.xlu0 %3452 }
 0x256   : > { %v3503_v24 = vpop.permute.xlu1 %3502  ;;  %v3455_v28 = vunpack.i.h.bf16 %v3453_v49  ;;  %v3454_v36 = vunpack.i.l.bf16 %v3453_v49  ;;  %v3480_v49 = vunpack.i.h.bf16 %v4797_v63 }
 0x257   : > { %v3505_v45 = vunpack.i.h.bf16 %v3503_v24  ;;  %v3504_v47 = vunpack.i.l.bf16 %v3503_v24 }
 0x258   : > { %v1273_v46 = vsel %vm633_vm7, %v3454_v36, %v3274_v52  ;;  %v1307_v6 = vsel %vm633_vm7, %v3455_v28, %v6363_v9  ;;  %v6418_v52 = vld [vmem:[#allocation13_spill] sm:$0xff]  ;;  %v6419_v28 = vld [vmem:[#allocation16_spill] sm:$0xff]  ;;  %v1267_v42 = vsel %vm633_vm7, %v3480_v49, %v3460_v41  ;;  %v6424_v49 = vld [vmem:[#allocation10_spill] sm:$0xff] }
 0x259   : > { %1472 = vmatpush.msra.mxu0 %v1273_v46  ;;  %1536 = vmatpush.msra.mxu1 %v1307_v6  ;;  %v898_v25 = vsel %vm892_vm10, %v6417_v17, %v3505_v45  ;;  %v900_v1 = vsel %vm892_vm10, %v3249_v31, %v3504_v47  ;;  %v6420_v36 = vpack.i.bf16 %v6418_v52, %v6419_v28  ;;  %v4864_v31 = vld [vmem:[%s3887_s30 + $0x40] sm:$0xff]  ;;  %v997_v47 = vld [vmem:[%s3887_s30 + $0x30] sm:$0xff]  ;;  %v3475_v45 = vunpack.i.h.bf16 %v4793_v56  ;;  %v3508_v56 = vpop.permute.xlu2 %3507 }
 0x25a   : > { %v3526_v24 = vpack.i.bf16 %v898_v25, %v900_v1  ;;  %1677 = vmatmul.f32.gmra.mxu3 %v997_v47  ;;  %v3510_v17 = vunpack.i.h.bf16 %v3508_v56  ;;  %v3509_v25 = vunpack.i.l.bf16 %v3508_v56  ;;  %v6421_v1 = vld [vmem:[#allocation11_spill] sm:$0xff]  ;;  %v6359_v28 = vunpack.i.h.bf16 %v4815_v33 }
 0x25b   : > { %1473 = vmatpush.msra.mxu0 %v1271_v29  ;;  %v1303_v6 = vsel %vm633_vm7, %v3475_v45, %v6361_v39  ;;  %v4891_v29 = vld [vmem:[%s3887_s30 + $0x58] sm:$0xff] }
 0x25c   : > { %3527 = vrot.lane.b32.xlu0 %v3526_v24, %s3761_s19  ;;  %3532 = vrot.lane.b32.xlu1 %v6420_v36, %s3761_s19  ;;  %v6422_v24 = vld [vmem:[#allocation14_spill] sm:$0xff]  ;;  %v3489_v36 = vunpack.i.l.bf16 %v4815_v33  ;;  %v5052_v39 = vld [vmem:[%s3887_s30 + $0x178] sm:$0xff] }
 0x25d   : > { %v4868_v46 = vpop.permute.xlu0 %3467  ;;  %1474 = vmatpush.msra.mxu0 %v1269_v51  ;;  %2900 = vmatmul.msk.f32.gmra.mxu2 %vm1411_vm13, %v4864_v31  ;;  %v6423_v41 = vpack.i.bf16 %v6421_v1, %v6422_v24  ;;  %v6425_v1 = vld [vmem:[#allocation17_spill] sm:$0xff] }
 0x25e   : > { %v6362_v61 = vunpack.i.h.bf16 %v4868_v46  ;;  %v3469_v18 = vunpack.i.l.bf16 %v4868_v46  ;;  %v1299_v0 = vsel %vm633_vm7, %v3489_v36, %v6359_v28  ;;  %v6426_v24 = vunpack.i.h.bf16 %v6425_v1  ;;  %v4932_v36 = vld [vmem:[%s3887_s30 + $0x20] sm:$0xff]  ;;  %v4980_v1 = vld [vmem:[%s3887_s30 + $0xd0] sm:$0xff] }
 0x25f   : > { %1475 = vmatpush.msra.mxu0 %v1267_v42  ;;  %v990_v42 = vsel %vm982_vm12, %v3255_v37, %v3509_v25  ;;  %v1003_v37 = vld [vmem:[%s3887_s30 + $0x60] sm:$0xff]  ;;  %v1033_v28 = vld [vmem:[%s3887_s30 + $0x150] sm:$0xff] }
 0x260   : > { %v1305_v50 = vsel %vm633_vm7, %v3469_v18, %v6362_v61  ;;  %1476 = vmatmul.f32.vlgmr.msra.gmra.mxu0 %v991_v23  ;;  %v1000_v23 = vld [vmem:[%s3887_s30 + $0x48] sm:$0xff]  ;;  %v988_v18 = vsel %vm982_vm12, %v3260_v21, %v3510_v17 }
 0x261   : > { %1537 = vmatpush.msra.mxu1 %v1305_v50  ;;  %v4912_v50 = vld [vmem:[%s3887_s30 + $0x8] sm:$0xff] }
 0x262   : > { %1680 = vmatmul.f32.gmra.mxu3 %v1000_v23 }
 0x263   : > { %1538 = vmatpush.msra.mxu1 %v1303_v6  ;;  %v3556_v6 = vpack.i.bf16 %v988_v18, %v990_v42 }
 0x264   : > { %3542 = vrot.lane.b32.xlu0 %v6423_v41, %s3761_s19  ;;  %3547 = vrot.lane.b32.xlu1 %v6424_v49, %s3761_s19 }
 0x265   : > { %v4894_v52 = vpop.permute.xlu0 %3482  ;;  %2901 = vmatmul.msk.f32.gmra.mxu2 %vm1411_vm13, %v4891_v29 }
 0x266   : > { %v6360_v51 = vunpack.i.h.bf16 %v4894_v52  ;;  %v3484_v45 = vunpack.i.l.bf16 %v4894_v52 }
 0x268   : > { %v1301_v56 = vsel %vm633_vm7, %v3484_v45, %v6360_v51  ;;  %1479 = vmatmul.f32.gmra.mxu0 %v994_v59  ;;  %v4937_v45 = vld [vmem:[%s3887_s30 + $0x88] sm:$0xff]  ;;  %v5047_v51 = vld [vmem:[%s3887_s30 + $0x110] sm:$0xff] }
 0x269   : > { %1539 = vmatpush.msra.mxu1 %v1301_v56 }
 0x26a   : > { %1683 = vmatmul.f32.gmra.mxu3 %v1003_v37 }
 0x26b   : > { %1540 = vmatpush.msra.mxu1 %v1299_v0  ;;  %v4949_v0 = vld [vmem:[%s3887_s30 + $0x38] sm:$0xff] }
 0x26c   : > { %3557 = vrot.lane.b32.xlu0 %v3556_v6, %s3761_s19  ;;  %1541 = vmatmul.f32.vlgmr.msra.gmra.mxu1 %v4912_v50 }
 0x26d   : > { %v3498_v21 = vpop.permute.xlu0 %3497  ;;  %2902 = vmatmul.msk.f32.gmra.mxu2 %vm1411_vm13, %v4920_v26 }
 0x26e   : > { %v3500_v59 = vunpack.i.h.bf16 %v3498_v21  ;;  %v3499_v17 = vunpack.i.l.bf16 %v3498_v21  ;;  %v6427_v21 = vld [vmem:[#allocation12_spill] sm:$0xff] }
 0x270   : > { %v939_v25 = vsel %vm937_vm11, %v3245_v34, %v3500_v59  ;;  %v941_v41 = vsel %vm937_vm11, %v6426_v24, %v3499_v17  ;;  %1482 = vmatmul.f32.gmra.mxu0 %v997_v47  ;;  %v6428_v59 = vld [vmem:[#allocation15_spill] sm:$0xff]  ;;  %v1015_v24 = vld [vmem:[%s3887_s30 + $0xc0] sm:$0xff] }
 0x271   : > { %v3521_v49 = vpack.i.bf16 %v939_v25, %v941_v41  ;;  %v6429_v17 = vpack.i.bf16 %v6427_v21, %v6428_v59  ;;  %v1012_v25 = vld [vmem:[%s3887_s30 + $0xa8] sm:$0xff]  ;;  %v4986_v41 = vld [vmem:[%s3887_s30 + $0x80] sm:$0xff]  ;;  %v5020_v59 = vld [vmem:[%s3887_s30 + $0x130] sm:$0xff] }
 0x272   : > { %1686 = vmatmul.f32.gmra.mxu3 %v1006_v43  ;;  %v5016_v21 = vld [vmem:[%s3887_s30 + $0xc8] sm:$0xff] }
 0x273   : > { %3522 = vrot.lane.b32.xlu2 %v3521_v49, %s3761_s19  ;;  %v4990_v49 = vld [vmem:[%s3887_s30 + $0xe8] sm:$0xff] }
 0x274   : > { %1544 = vmatmul.f32.gmra.mxu1 %v4932_v36 }
 0x275   : > { %v3513_v18 = vpop.permute.xlu0 %3512  ;;  %2903 = vmatmul.msk.f32.gmra.mxu2 %vm1411_vm13, %v4937_v45 }
 0x276   : > { %v3515_v34 = vunpack.i.h.bf16 %v3513_v18  ;;  %v3514_v47 = vunpack.i.l.bf16 %v3513_v18  ;;  %v4996_v18 = vld [vmem:[%s3887_s30 + $0x98] sm:$0xff] }
 0x278   : > { %v984_v42 = vsel %vm982_vm12, %v3270_v16, %v3515_v34  ;;  %v986_v56 = vsel %vm982_vm12, %v3265_v10, %v3514_v47  ;;  %1485 = vmatmul.f32.gmra.mxu0 %v1000_v23  ;;  %v1009_v10 = vld [vmem:[%s3887_s30 + $0x90] sm:$0xff]  ;;  %v6430_v16 = vld [vmem:[#allocation9_spill] sm:$0xff]  ;;  %v4970_v23 = vld [vmem:[%s3887_s30 + $0xb8] sm:$0xff] }
 0x279   : > { %v3561_v6 = vpack.i.bf16 %v984_v42, %v986_v56  ;;  %v5000_v34 = vld [vmem:[%s3887_s30 + $0x100] sm:$0xff]  ;;  %v1021_v47 = vld [vmem:[%s3887_s30 + $0xf0] sm:$0xff]  ;;  %v5010_v56 = vld [vmem:[%s3887_s30 + $0x118] sm:$0xff] }
 0x27a   : > { %1689 = vmatmul.f32.gmra.mxu3 %v1009_v10  ;;  %v5006_v42 = vld [vmem:[%s3887_s30 + $0xb0] sm:$0xff] }
 0x27b   : > { %3537 = vrot.lane.b32.xlu2 %v6429_v17, %s3761_s19  ;;  %3562 = vrot.lane.b32.xlu1 %v3561_v6, %s3761_s19  ;;  %v1024_v6 = vld [vmem:[%s3887_s30 + $0x108] sm:$0xff]  ;;  %v1027_v17 = vld [vmem:[%s3887_s30 + $0x120] sm:$0xff] }
 0x27c   : > { %1547 = vmatmul.f32.gmra.mxu1 %v4949_v0 }
 0x27d   : > { %2904 = vmatmul.msk.f32.gmra.mxu2 %vm1411_vm13, %v4958_v35 }
 0x280   : > { %1488 = vmatmul.f32.gmra.mxu0 %v1003_v37  ;;  %v4976_v37 = vld [vmem:[%s3887_s30 + $0x68] sm:$0xff] }
 0x282   : > { %1692 = vmatmul.f32.gmra.mxu3 %v1012_v25 }
 0x283   : > { %3552 = vrot.lane.b32.xlu2 %v6430_v16, %s3761_s19  ;;  %v5030_v16 = vld [vmem:[%s3887_s30 + $0x148] sm:$0xff] }
 0x284   : > { %1550 = vmatmul.f32.gmra.mxu1 %v4964_v4 }
 0x285   : > { %2905 = vmatmul.msk.f32.gmra.mxu2 %vm1411_vm13, %v4970_v23 }
 0x288   : > { %1491 = vmatmul.f32.gmra.mxu0 %v1006_v43  ;;  %v1018_v43 = vld [vmem:[%s3887_s30 + $0xd8] sm:$0xff] }
 0x28a   : > { %1695 = vmatmul.f32.gmra.mxu3 %v1015_v24 }
 0x28c   : > { %1553 = vmatmul.f32.gmra.mxu1 %v4976_v37 }
 0x28d   : > { %2906 = vmatmul.msk.f32.gmra.mxu2 %vm1411_vm13, %v4980_v1 }
 0x290   : > { %1494 = vmatmul.f32.gmra.mxu0 %v1009_v10  ;;  %v5026_v10 = vld [vmem:[%s3887_s30 + $0xe0] sm:$0xff] }
 0x292   : > { %1698 = vmatmul.f32.gmra.mxu3 %v1018_v43 }
 0x294   : > { %1556 = vmatmul.f32.gmra.mxu1 %v4986_v41 }
 0x295   : > { %2907 = vmatmul.msk.f32.gmra.mxu2 %vm1411_vm13, %v4990_v49 }
 0x298   : > { %1497 = vmatmul.f32.gmra.mxu0 %v1012_v25  ;;  %v1030_v25 = vld [vmem:[%s3887_s30 + $0x138] sm:$0xff] }
 0x29a   : > { %1701 = vmatmul.f32.gmra.mxu3 %v1021_v47 }
 0x29c   : > { %1559 = vmatmul.f32.gmra.mxu1 %v4996_v18 }
 0x29d   : > { %2908 = vmatmul.msk.f32.gmra.mxu2 %vm1411_vm13, %v5000_v34 }
 0x2a0   : > { %1500 = vmatmul.f32.gmra.mxu0 %v1015_v24  ;;  %v5036_v24 = vld [vmem:[%s3887_s30 + $0xf8] sm:$0xff] }
 0x2a2   : > { %1704 = vmatmul.f32.gmra.mxu3 %v1024_v6 }
 0x2a4   : > { %1562 = vmatmul.f32.gmra.mxu1 %v5006_v42 }
 0x2a5   : > { %2909 = vmatmul.msk.f32.gmra.mxu2 %vm1411_vm13, %v5010_v56 }
 0x2a8   : > { %1503 = vmatmul.f32.gmra.mxu0 %v1018_v43  ;;  %v5040_v43 = vld [vmem:[%s3887_s30 + $0x160] sm:$0xff] }
 0x2aa   : > { %1707 = vmatmul.f32.gmra.mxu3 %v1027_v17 }
 0x2ac   : > { %1565 = vmatmul.f32.gmra.mxu1 %v5016_v21 }
 0x2ad   : > { %2910 = vmatmul.msk.f32.gmra.mxu2 %vm1411_vm13, %v5020_v59 }
 0x2b0   : > { %1506 = vmatmul.f32.gmra.mxu0 %v1021_v47  ;;  %v411_v47 = vld [vmem:[%s3871_s20 + $0x38] sm:$0x7] }
 0x2b1   : > { %2947 = vmatpush.msk.msrb.mxu3 %vm1899_vm14, %v411_v47  ;;  %v408_v47 = vld [vmem:[%s3871_s20 + $0x20] sm:$0xff] }
 0x2b2   : > { %1710 = vmatmul.f32.gmra.mxu3 %v1030_v25 }
 0x2b3   : > { %1984 = vmatpush.msrb.mxu3 %v409_v15 }
 0x2b4   : > { %1568 = vmatmul.f32.gmra.mxu1 %v5026_v10 }
 0x2b5   : > { %2911 = vmatmul.msk.f32.gmra.mxu2 %vm1411_vm13, %v5030_v16 }
 0x2b8   : > { %1509 = vmatmul.f32.gmra.mxu0 %v1024_v6  ;;  %v410_v6 = vld [vmem:[%s3871_s20 + $0x30] sm:$0x7] }
 0x2b9   : > { %2930 = vmatpush.msk.msrb.mxu1 %vm1899_vm14, %v410_v6  ;;  %v406_v6 = vld [vmem:[%s3871_s20 + $0x10] sm:$0xff] }
 0x2ba   : > { %1713 = vmatmul.f32.gmra.mxu3 %v1033_v28 }
 0x2bb   : > { %1919 = vmatpush.msrb.mxu1 %v408_v47  ;;  %v407_v47 = vld [vmem:[%s3871_s20 + $0x18] sm:$0xff] }
 0x2bc   : > { %1571 = vmatmul.f32.gmra.mxu1 %v5036_v24  ;;  %1985 = vmatpush.msrb.mxu3 %v407_v47 }
 0x2bd   : > { %2912 = vmatmul.msk.f32.gmra.mxu2 %vm1411_vm13, %v5040_v43  ;;  %1920 = vmatpush.msrb.mxu1 %v406_v6 }
 0x2bf   : > { %1921 = vmatpush.msrb.mxu1 %v404_v38 }
 0x2c0   : > { %1512 = vmatmul.f32.gmra.mxu0 %v1027_v17 }
 0x2c2   : > { %1716 = vmatmul.f32.gmra.mxu3 %v1036_v7 }
 0x2c4   : > { %1574 = vmatmul.f32.gmra.mxu1 %v5047_v51 }
 0x2c5   : > { %2913 = vmatmul.msk.f32.gmra.mxu2 %vm1411_vm13, %v5052_v39 }
 0x2c6   : > { %v3518_v61 = vpop.permute.xlu1 %3517 }
 0x2c7   : > { %v3520_v9 = vunpack.i.h.bf16 %v3518_v61  ;;  %v3519_v17 = vunpack.i.l.bf16 %v3518_v61 }
 0x2c8   : > { %1515 = vmatmul.f32.gmra.mxu0 %v1030_v25 }
 0x2c9   : > { %v1330_v54 = vsel %vm633_vm7, %v3305_v44, %v3519_v17  ;;  %v1328_v61 = vsel %vm633_vm7, %v3319_v5, %v3520_v9 }
 0x2ca   : > { %1720 = vmatpush.msrb.mxu2 %v1330_v54  ;;  %v405_v54 = vld [vmem:[%s3871_s20 + $0x8] sm:$0xff] }
 0x2cb   : > { %1986 = vmatpush.msrb.mxu3 %v405_v54 }
 0x2cc   : > { %1721 = vmatpush.msrb.mxu2 %v1328_v61  ;;  %1577 = vmatmul.f32.gmra.mxu1 %v5062_v13  ;;  %v5079_v61 = vld [vmem:[%s3887_s30 + $0x140] sm:$0xff] }
 0x2cd   : > { %v3523_v20 = vpop.permute.xlu2 %3522  ;;  %v5087_v47 = vpop.f32.mrf.mxu3 }
 0x2ce   : > { %v3528_v44 = vpop.permute.xlu0 %3527  ;;  %v3525_v25 = vunpack.i.h.bf16 %v3523_v20  ;;  %v3524_v17 = vunpack.i.l.bf16 %v3523_v20  ;;  %v3533_v9 = vpop.permute.xlu1 %3532  ;;  %v5085_v20 = vld [vmem:[%s3877_s9] sm:$0xff] }
 0x2cf   : > { %v3529_v6 = vunpack.i.l.bf16 %v3528_v44  ;;  %v5076_v5 = vpop.f32.mrf.mxu2  ;;  %v3530_v15 = vunpack.i.h.bf16 %v3528_v44  ;;  %2948 = vmatmul.msk.f32.vlgmr.msrb.gmra.mxu3 %vm1850_vm15, %v5085_v20  ;;  %v3534_v62 = vunpack.i.l.bf16 %v3533_v9 }
 0x2d0   : > { %v1326_v32 = vsel %vm633_vm7, %v3330_v55, %v3524_v17  ;;  %1518 = vmatmul.f32.gmra.mxu0 %v1033_v28  ;;  %v1324_v38 = vsel %vm633_vm7, %v3344_v8, %v3525_v25  ;;  %v6431_v55 = vunpack.i.h.bf16 %v4701_v22  ;;  %v3535_v28 = vunpack.i.h.bf16 %v3533_v9 }
 0x2d1   : > { %1722 = vmatpush.msrb.mxu2 %v1326_v32  ;;  %v6432_v25 = vunpack.i.l.bf16 %v4714_v3  ;;  %v6433_v32 = vunpack.i.h.bf16 %v4683_v11  ;;  %v6434_v9 = vunpack.i.l.bf16 %v4691_v30 }
 0x2d2   : > { %v1322_v12 = vsel %vm633_vm7, %v6431_v55, %v3529_v6  ;;  %v5104_v6 = vld [vmem:[%s3887_s30 + $0x158] sm:$0xff] }
 0x2d3   : > { %1723 = vmatpush.msrb.mxu2 %v1324_v38  ;;  %v1320_v17 = vsel %vm633_vm7, %v6432_v25, %v3530_v15  ;;  %v1318_v38 = vsel %vm633_vm7, %v6433_v32, %v3534_v62  ;;  %v1316_v3 = vsel %vm633_vm7, %v6434_v9, %v3535_v28  ;;  %v2037_v28 = vld [vmem:[%s3882_s13 + $0x8] sm:$0xff]  ;;  %v6437_v32 = vunpack.i.l.bf16 %v4789_v40 }
 0x2d4   : > { %1580 = vmatmul.f32.gmra.mxu1 %v5079_v61  ;;  %v3767_v9 = vmov 0   ;;  %v6439_v40 = vunpack.i.l.bf16 %v4744_v58 }
 0x2d5   : > { %v3538_v8 = vpop.permute.xlu2 %3537  ;;  %1724 = vmatpush.msrb.mxu2 %v1322_v12  ;;  %v5110_v12 = vld [vmem:[%s3877_s9 + $0x8] sm:$0xff]  ;;  %v5112_v15 = vpop.f32.mrf.mxu3  ;;  %3567 = vset.pattern.permute.xlu0 %v3767_v9 }
 0x2d6   : > { %v3543_v44 = vpop.permute.xlu0 %3542  ;;  %v3539_v54 = vunpack.i.l.bf16 %v3538_v8  ;;  %v3540_v55 = vunpack.i.h.bf16 %v3538_v8  ;;  %6435 = vst [vmem:[#allocation7_spill] sm:$0xff] %v5112_v15  ;;  %v3548_v8 = vpop.permute.xlu1 %3547  ;;  %3568 = vset.pattern.permute.xlu1 %v3767_v9  ;;  %2059 = vperm.xlu0 %3567, %v2037_v28   ;;  %v6440_v28 = vunpack.i.l.bf16 %v4770_v60 }
 0x2d7   : > { %1725 = vmatpush.msrb.mxu2 %v1320_v17  ;;  %v5101_v22 = vpop.f32.mrf.mxu2  ;;  %2949 = vmatmul.msk.f32.gmra.mxu3 %vm1850_vm15, %v5110_v12  ;;  %v3544_v11 = vunpack.i.l.bf16 %v3543_v44  ;;  %v3545_v25 = vunpack.i.h.bf16 %v3543_v44 }
 0x2d8   : > { %1521 = vmatmul.f32.gmra.mxu0 %v1036_v7  ;;  %v6436_v7 = vunpack.i.h.bf16 %v4705_v27  ;;  %3566 = vset.pattern.permute.xlu2 %v3767_v9  ;;  %v6441_v9 = vunpack.i.h.bf16 %v4765_v19  ;;  %v6443_v19 = vunpack.i.l.bf16 %v4797_v63 }
 0x2d9   : > { %1726 = vmatpush.msrb.mxu2 %v1318_v38  ;;  %v1312_v38 = vsel %vm633_vm7, %v6437_v32, %v3540_v55  ;;  %v5133_v32 = vld [vmem:[%s3887_s30 + $0x170] sm:$0xff] }
 0x2da   : > { %v1314_v62 = vsel %vm633_vm7, %v6436_v7, %v3539_v54  ;;  %v3549_v54 = vunpack.i.l.bf16 %v3548_v8  ;;  %v6438_v7 = vunpack.i.h.bf16 %v4811_v14  ;;  %v1308_v14 = vsel %vm633_vm7, %v6440_v28, %v3545_v25 }
 0x2db   : > { %1727 = vmatpush.msrb.mxu2 %v1316_v3 }
 0x2dc   : > { %1583 = vmatmul.f32.gmra.mxu1 %v5104_v6 }
 0x2dd   : > { %1728 = vmatpush.msrb.mxu2 %v1314_v62  ;;  %v5120_v30 = vpop.f32.mrf.mxu0  ;;  %v1310_v62 = vsel %vm633_vm7, %v6438_v7, %v3544_v11  ;;  %v3553_v44 = vpop.permute.xlu2 %3552  ;;  %v2038_v7 = vld [vmem:[%s3882_s13 + $0x10] sm:$0xff] }
 0x2de   : > { %v3558_v17 = vpop.permute.xlu0 %3557  ;;  %v5141_v11 = vpop.f32.mrf.mxu3  ;;  %2064 = vperm.xlu1 %3568, %v2038_v7   ;;  %v392_v7 = vld [vmem:[%s3877_s9 + $0x20] sm:$0xff] }
 0x2df   : > { %v3560_v3 = vunpack.i.h.bf16 %v3558_v17  ;;  %v3559_v27 = vunpack.i.l.bf16 %v3558_v17  ;;  %1729 = vmatpush.msrb.mxu2 %v1312_v38  ;;  %v3550_v17 = vunpack.i.h.bf16 %v3548_v8  ;;  %v390_v38 = vld [vmem:[%s3877_s9 + $0x10] sm:$0xff]  ;;  %v6442_v8 = vunpack.i.h.bf16 %v4868_v46 }
 0x2e0   : > { %v5135_v15 = vpop.f32.mrf.mxu2  ;;  %2950 = vmatmul.msk.f32.gmra.mxu3 %vm1850_vm15, %v390_v38  ;;  %v6445_v46 = vunpack.i.h.bf16 %v4815_v33  ;;  %v2036_v33 = vld [vmem:[%s3882_s13] sm:$0xff] }
 0x2e1   : > { %1730 = vmatpush.msrb.mxu2 %v1310_v62  ;;  %v1338_v55 = vsel %vm633_vm7, %v6439_v40, %v3559_v27  ;;  %v1336_v58 = vsel %vm633_vm7, %v6441_v9, %v3560_v3  ;;  %v3554_v27 = vunpack.i.l.bf16 %v3553_v44  ;;  %v1306_v60 = vsel %vm633_vm7, %v6442_v8, %v3549_v54  ;;  %2054 = vperm.xlu2 %3566, %v2036_v33  }
 0x2e2   : > { %1797 = vmatpush.msrb.mxu0 %v1338_v55  ;;  %v3555_v62 = vunpack.i.h.bf16 %v3553_v44  ;;  %v1304_v3 = vsel %vm633_vm7, %v6443_v19, %v3550_v17  ;;  %v6444_v40 = vunpack.i.h.bf16 %v4894_v52  ;;  %v2046_v19 = vld [vmem:[%s3882_s13 + $0x50] sm:$0xff] }
 0x2e3   : > { %1731 = vmatpush.msrb.mxu2 %v1308_v14  ;;  %v391_v14 = vld [vmem:[%s3877_s9 + $0x18] sm:$0xff]  ;;  %2104 = vperm.xlu0 %3567, %v2046_v19   ;;  %v396_v19 = vld [vmem:[%s3877_s9 + $0x40] sm:$0xff] }
 0x2e4   : > { %1798 = vmatpush.msrb.mxu0 %v1336_v58  ;;  %1586 = vmatmul.f32.gmra.mxu1 %v5133_v32  ;;  %v1302_v55 = vsel %vm633_vm7, %v6444_v40, %v3554_v27  ;;  %v1300_v54 = vsel %vm633_vm7, %v6445_v46, %v3555_v62  ;;  %v6446_v27 = vunpack.i.l.bf16 %v4736_v57  ;;  %v2041_v46 = vld [vmem:[%s3882_s13 + $0x28] sm:$0xff] }
 0x2e5   : > { %1732 = vmatpush.msrb.mxu2 %v1306_v60  ;;  %v5151_v25 = vpop.f32.mrf.mxu0 }
 0x2e6   : > { %v5166_v44 = vpop.f32.mrf.mxu3 }
 0x2e7   : > { %1733 = vmatpush.msrb.mxu2 %v1304_v3  ;;  %v2044_v3 = vld [vmem:[%s3882_s13 + $0x40] sm:$0xff] }
 0x2e8   : > { %v5168_v63 = vpop.f32.mrf.mxu2  ;;  %2951 = vmatmul.msk.f32.gmra.mxu3 %vm1850_vm15, %v391_v14  ;;  %2094 = vperm.xlu1 %3568, %v2044_v3  }
 0x2e9   : > { %v5160_v28 = vpop.f32.mrf.mxu1  ;;  %1734 = vmatpush.msrb.mxu2 %v1302_v55 }
 0x2eb   : > { %1735 = vmatpush.msrb.mxu2 %v1300_v54  ;;  %v2047_v54 = vld [vmem:[%s3882_s13 + $0x58] sm:$0xff]  ;;  %2079 = vperm.xlu0 %3567, %v2041_v46  }
 0x2ec   : > { %1736 = vmatmul.f32.vlgmr.msrb.gmra.mxu2 %v4912_v50  ;;  %2931 = vmatmul.msk.f32.vlgmr.msrb.gmra.mxu1 %vm1850_vm15, %v5085_v20  ;;  %v6447_v50 = vunpack.i.h.bf16 %v4746_v53 }
 0x2ed   : > { %v3563_v52 = vpop.permute.xlu1 %3562  ;;  %v5174_v17 = vpop.f32.mrf.mxu0 }
 0x2ee   : > { %v3565_v9 = vunpack.i.h.bf16 %v3563_v52  ;;  %v3564_v58 = vunpack.i.l.bf16 %v3563_v52  ;;  %v5186_v62 = vpop.f32.mrf.mxu3 }
 0x2f0   : > { %v1334_v8 = vsel %vm633_vm7, %v6446_v27, %v3564_v58  ;;  %v1332_v20 = vsel %vm633_vm7, %v6447_v50, %v3565_v9  ;;  %2952 = vmatmul.msk.f32.gmra.mxu3 %vm1850_vm15, %v392_v7  ;;  %v5196_v53 = vpop.f32.mrf.mxu2  ;;  %2109 = vperm.xlu1 %3568, %v2047_v54   ;;  %v2042_v58 = vld [vmem:[%s3882_s13 + $0x30] sm:$0xff]  ;;  %v395_v50 = vld [vmem:[%s3877_s9 + $0x38] sm:$0xff] }
 0x2f1   : > { %v5180_v60 = vpop.f32.mrf.mxu1  ;;  %1799 = vmatpush.msrb.mxu0 %v1334_v8  ;;  %v398_v54 = vld [vmem:[%s3877_s9 + $0x50] sm:$0xff] }
 0x2f3   : > { %1800 = vmatpush.msrb.mxu0 %v1332_v20 }
 0x2f4   : > { %1739 = vmatmul.f32.gmra.mxu2 %v4932_v36  ;;  %2914 = vmatmul.msk.f32.vlgmr.msrb.gmra.mxu0 %vm1411_vm13, %v4809_v48  ;;  %v393_v36 = vld [vmem:[%s3877_s9 + $0x28] sm:$0xff] }
 0x2f5   : > { %2932 = vmatmul.msk.f32.gmra.mxu1 %vm1850_vm15, %v5110_v12  ;;  %v5194_v57 = vpop.f32.mrf.mxu0  ;;  %v2039_v12 = vld [vmem:[%s3882_s13 + $0x18] sm:$0xff] }
 0x2f6   : > { %v5203_v55 = vpop.f32.mrf.mxu3  ;;  %2069 = vperm.xlu2 %3566, %v2039_v12  }
 0x2f8   : > { %2953 = vmatmul.msk.f32.gmra.mxu3 %vm1850_vm15, %v393_v36  ;;  %v5215_v52 = vpop.f32.mrf.mxu2  ;;  %2084 = vperm.xlu1 %3568, %v2042_v58  }
 0x2f9   : > { %v5200_v40 = vpop.f32.mrf.mxu1 }
 0x2fc   : > { %1742 = vmatmul.f32.gmra.mxu2 %v4949_v0  ;;  %2915 = vmatmul.msk.f32.gmra.mxu0 %vm1411_vm13, %v4831_v2  ;;  %v394_v0 = vld [vmem:[%s3877_s9 + $0x30] sm:$0xff] }
 0x2fd   : > { %2933 = vmatmul.msk.f32.gmra.mxu1 %vm1850_vm15, %v390_v38  ;;  %v5210_v48 = vpop.f32.mrf.mxu0  ;;  %v2045_v38 = vld [vmem:[%s3882_s13 + $0x48] sm:$0xff] }
 0x2fe   : > { %v5220_v9 = vpop.f32.mrf.mxu3  ;;  %2099 = vperm.xlu2 %3566, %v2045_v38  }
 0x300   : > { %2954 = vmatmul.msk.f32.gmra.mxu3 %vm1850_vm15, %v394_v0  ;;  %v5233_v8 = vpop.f32.mrf.mxu2 }
 0x301   : > { %v5217_v33 = vpop.f32.mrf.mxu1 }
 0x304   : > { %1745 = vmatmul.f32.gmra.mxu2 %v4964_v4  ;;  %2916 = vmatmul.msk.f32.gmra.mxu0 %vm1411_vm13, %v4864_v31  ;;  %v2040_v4 = vld [vmem:[%s3882_s13 + $0x20] sm:$0xff] }
 0x305   : > { %2934 = vmatmul.msk.f32.gmra.mxu1 %vm1850_vm15, %v391_v14  ;;  %v5227_v2 = vpop.f32.mrf.mxu0 }
 0x306   : > { %v5236_v20 = vpop.f32.mrf.mxu3  ;;  %2074 = vperm.xlu2 %3566, %v2040_v4  }
 0x308   : > { %2955 = vmatmul.msk.f32.gmra.mxu3 %vm1850_vm15, %v395_v50  ;;  %v5251_v12 = vpop.f32.mrf.mxu2 }
 0x309   : > { %v5231_v27 = vpop.f32.mrf.mxu1 }
 0x30c   : > { %1748 = vmatmul.f32.gmra.mxu2 %v4976_v37  ;;  %2917 = vmatmul.msk.f32.gmra.mxu0 %vm1411_vm13, %v4891_v29 }
 0x30d   : > { %2935 = vmatmul.msk.f32.gmra.mxu1 %vm1850_vm15, %v392_v7  ;;  %v5243_v31 = vpop.f32.mrf.mxu0  ;;  %v397_v7 = vld [vmem:[%s3877_s9 + $0x48] sm:$0xff] }
 0x30e   : > { %v5249_v3 = vpop.f32.mrf.mxu3 }
 0x310   : > { %2956 = vmatmul.msk.f32.gmra.mxu3 %vm1850_vm15, %v396_v19 }
 0x311   : > { %v5246_v14 = vpop.f32.mrf.mxu1 }
 0x314   : > { %1751 = vmatmul.f32.gmra.mxu2 %v4986_v41  ;;  %2918 = vmatmul.msk.f32.gmra.mxu0 %vm1411_vm13, %v4920_v26  ;;  %v1631_v26 = vpop.f32.mrf.mxu2 }
 0x315   : > { %2936 = vmatmul.msk.f32.gmra.mxu1 %vm1850_vm15, %v393_v36  ;;  %v5258_v29 = vpop.f32.mrf.mxu0 }
 0x316   : > { %v5263_v46 = vpop.f32.mrf.mxu3 }
 0x317   : > { %6448 = vst [vmem:[#allocation5_spill] sm:$0xff] %v5263_v46  ;;  %v399_v46 = vld [vmem:[%s3877_s9 + $0x58] sm:$0xff] }
 0x318   : > { %2957 = vmatmul.msk.f32.gmra.mxu3 %vm1850_vm15, %v397_v7 }
 0x319   : > { %v5260_v37 = vpop.f32.mrf.mxu1 }
 0x31c   : > { %1754 = vmatmul.f32.gmra.mxu2 %v4996_v18  ;;  %2919 = vmatmul.msk.f32.gmra.mxu0 %vm1411_vm13, %v4937_v45  ;;  %v2043_v18 = vld [vmem:[%s3882_s13 + $0x38] sm:$0xff] }
 0x31d   : > { %2937 = vmatmul.msk.f32.gmra.mxu1 %vm1850_vm15, %v394_v0  ;;  %v1501_v41 = vpop.f32.mrf.mxu0  ;;  %2089 = vperm.xlu2 %3566, %v2043_v18   ;;  %v1634_v0 = vpop.f32.mrf.mxu2 }
 0x31e   : > { %v5273_v38 = vpop.f32.mrf.mxu3 }
 0x31f   : > { %6449 = vst [vmem:[#allocation6_spill] sm:$0xff] %v5273_v38 }
 0x320   : > { %2958 = vmatmul.msk.f32.gmra.mxu3 %vm1850_vm15, %v398_v54 }
 0x321   : > { %v5270_v36 = vpop.f32.mrf.mxu1 }
 0x324   : > { %1757 = vmatmul.f32.gmra.mxu2 %v5006_v42  ;;  %2920 = vmatmul.msk.f32.gmra.mxu0 %vm1411_vm13, %v4958_v35 }
 0x325   : > { %2938 = vmatmul.msk.f32.gmra.mxu1 %vm1850_vm15, %v395_v50  ;;  %v1504_v45 = vpop.f32.mrf.mxu0  ;;  %v1637_v18 = vpop.f32.mrf.mxu2 }
 0x326   : > { %v5283_v38 = vpop.f32.mrf.mxu3 }
 0x327   : > { %6450 = vst [vmem:[#allocation8_spill] sm:$0xff] %v5283_v38 }
 0x328   : > { %2959 = vmatmul.msk.f32.gmra.mxu3 %vm1850_vm15, %v399_v46 }
 0x329   : > { %v1566_v58 = vpop.f32.mrf.mxu1 }
 0x32a   : > { %v1567_v4 = vadd.f32 %v1566_v58, %v1501_v41  ;;  %v400_v58 = vld [vmem:[%s3877_s9 + $0x60] sm:$0xff] }
 0x32c   : > { %1760 = vmatmul.f32.gmra.mxu2 %v5016_v21  ;;  %2921 = vmatmul.msk.f32.gmra.mxu0 %vm1411_vm13, %v4970_v23  ;;  %v5288_v35 = vadd.f32 %v1631_v26, %v1567_v4 }
 0x32d   : > { %2939 = vmatmul.msk.f32.gmra.mxu1 %vm1850_vm15, %v396_v19  ;;  %v1507_v42 = vpop.f32.mrf.mxu0  ;;  %v2048_v19 = vld [vmem:[%s3882_s13 + $0x60] sm:$0xff]  ;;  %v1640_v38 = vpop.f32.mrf.mxu2 }
 0x32e   : > { %v5299_v23 = vpop.f32.mrf.mxu3  ;;  %2114 = vperm.xlu0 %3567, %v2048_v19   ;;  %v402_v19 = vld [vmem:[%s3877_s9 + $0x70] sm:$0xff] }
 0x330   : > { %2960 = vmatmul.msk.f32.gmra.mxu3 %vm1850_vm15, %v400_v58 }
 0x331   : > { %v1569_v50 = vpop.f32.mrf.mxu1 }
 0x332   : > { %v1570_v41 = vadd.f32 %v1569_v50, %v1504_v45  ;;  %v401_v50 = vld [vmem:[%s3877_s9 + $0x68] sm:$0xff] }
 0x334   : > { %1763 = vmatmul.f32.gmra.mxu2 %v5026_v10  ;;  %2922 = vmatmul.msk.f32.gmra.mxu0 %vm1411_vm13, %v4980_v1  ;;  %v5296_v21 = vadd.f32 %v1634_v0, %v1570_v41  ;;  %v2049_v10 = vld [vmem:[%s3882_s13 + $0x68] sm:$0xff] }
 0x335   : > { %2940 = vmatmul.msk.f32.gmra.mxu1 %vm1850_vm15, %v397_v7  ;;  %v1510_v26 = vpop.f32.mrf.mxu0  ;;  %2119 = vperm.xlu1 %3568, %v2049_v10  }
 0x336   : > { %v5311_v7 = vpop.f32.mrf.mxu3 }
 0x338   : > { %2961 = vmatmul.msk.f32.gmra.mxu3 %vm1850_vm15, %v401_v50 }
 0x339   : > { %v1572_v45 = vpop.f32.mrf.mxu1 }
 0x33a   : > { %v1573_v4 = vadd.f32 %v1572_v45, %v1507_v42 }
 0x33c   : > { %1766 = vmatmul.f32.gmra.mxu2 %v5036_v24  ;;  %2923 = vmatmul.msk.f32.gmra.mxu0 %vm1411_vm13, %v4990_v49  ;;  %v5307_v1 = vadd.f32 %v1637_v18, %v1573_v4  ;;  %v2051_v49 = vld [vmem:[%s3882_s13 + $0x78] sm:$0xff] }
 0x33d   : > { %2941 = vmatmul.msk.f32.gmra.mxu1 %vm1850_vm15, %v398_v54  ;;  %v1513_v42 = vpop.f32.mrf.mxu0  ;;  %v1643_v54 = vpop.f32.mrf.mxu2  ;;  %2129 = vperm.xlu0 %3567, %v2051_v49   ;;  %v403_v4 = vld [vmem:[%s3877_s9 + $0x78] sm:$0xff] }
 0x33e   : > { %v5322_v45 = vpop.f32.mrf.mxu3 }
 0x340   : > { %2962 = vmatmul.msk.f32.gmra.mxu3 %vm1850_vm15, %v402_v19 }
 0x341   : > { %v1575_v0 = vpop.f32.mrf.mxu1 }
 0x342   : > { %v1576_v41 = vadd.f32 %v1575_v0, %v1510_v26  ;;  %v2050_v0 = vld [vmem:[%s3882_s13 + $0x70] sm:$0xff] }
 0x343   : > { %2124 = vperm.xlu2 %3566, %v2050_v0  }
 0x344   : > { %1769 = vmatmul.f32.gmra.mxu2 %v5047_v51  ;;  %2924 = vmatmul.msk.f32.gmra.mxu0 %vm1411_vm13, %v5000_v34  ;;  %v5319_v24 = vadd.f32 %v1640_v38, %v1576_v41 }
 0x345   : > { %2942 = vmatmul.msk.f32.gmra.mxu1 %vm1850_vm15, %v399_v46  ;;  %v1516_v10 = vpop.f32.mrf.mxu0  ;;  %v1646_v34 = vpop.f32.mrf.mxu2 }
 0x346   : > { %v5333_v41 = vpop.f32.mrf.mxu3 }
 0x347   : > { %6451 = vst [vmem:[#allocation13_spill] sm:$0xff] %v5333_v41 }
 0x348   : > { %2963 = vmatmul.msk.f32.gmra.mxu3 %vm1850_vm15, %v403_v4 }
 0x349   : > { %v1578_v18 = vpop.f32.mrf.mxu1 }
 0x34a   : > { %v1579_v26 = vadd.f32 %v1578_v18, %v1513_v42 }
 0x34c   : > { %1772 = vmatmul.f32.gmra.mxu2 %v5062_v13  ;;  %2925 = vmatmul.msk.f32.gmra.mxu0 %vm1411_vm13, %v5010_v56  ;;  %v5329_v51 = vadd.f32 %v1643_v54, %v1579_v26 }
 0x34d   : > { %2943 = vmatmul.msk.f32.gmra.mxu1 %vm1850_vm15, %v400_v58  ;;  %v1519_v56 = vpop.f32.mrf.mxu0  ;;  %v1649_v49 = vpop.f32.mrf.mxu2 }
 0x351   : > { %v1581_v46 = vpop.f32.mrf.mxu1 }
 0x352   : > { %v1582_v38 = vadd.f32 %v1581_v46, %v1516_v10  ;;  %v2055_v46 = vpop.permute.xlu2 %2054 }
 0x354   : > { %1775 = vmatmul.f32.gmra.mxu2 %v5079_v61  ;;  %2926 = vmatmul.msk.f32.gmra.mxu0 %vm1411_vm13, %v5020_v59  ;;  %v5338_v13 = vadd.f32 %v1646_v34, %v1582_v38  ;;  %v1988_v61 = vpop.f32.mrf.mxu3 }
 0x355   : > { %2944 = vmatmul.msk.f32.gmra.mxu1 %vm1850_vm15, %v401_v50  ;;  %v1522_v18 = vpop.f32.mrf.mxu0 }
 0x359   : > { %v1584_v42 = vpop.f32.mrf.mxu1 }
 0x35a   : > { %v1585_v58 = vadd.f32 %v1584_v42, %v1519_v56 }
 0x35c   : > { %1778 = vmatmul.f32.gmra.mxu2 %v5104_v6  ;;  %2927 = vmatmul.msk.f32.gmra.mxu0 %vm1411_vm13, %v5030_v16  ;;  %v5344_v54 = vadd.f32 %v1649_v49, %v1585_v58  ;;  %v1543_v6 = vadd.f32 %v5160_v28, %v5120_v30  ;;  %v5355_v16 = vpop.f32.mrf.mxu2  ;;  %v1991_v50 = vpop.f32.mrf.mxu3 }
 0x35d   : > { %2945 = vmatmul.msk.f32.gmra.mxu1 %vm1850_vm15, %v402_v19  ;;  %6453 = vst [vmem:[#allocation11_spill] sm:$0xff] %v5355_v16  ;;  %v2060_v58 = vpop.permute.xlu0 %2059 }
 0x35e   : > { %v1608_v19 = vadd.f32 %v5076_v5, %v1543_v6 }
 0x361   : > { %v1587_v59 = vpop.f32.mrf.mxu1 }
 0x362   : > { %v5347_v26 = vadd.f32 %v1587_v59, %v1522_v18 }
 0x364   : > { %6452 = vst [vmem:[#allocation16_spill] sm:$0xff] %v5347_v26  ;;  %1781 = vmatmul.f32.gmra.mxu2 %v5133_v32  ;;  %2928 = vmatmul.msk.f32.gmra.mxu0 %vm1411_vm13, %v5040_v43  ;;  %v1546_v32 = vadd.f32 %v5180_v60, %v5151_v25  ;;  %v1994_v43 = vpop.f32.mrf.mxu3 }
 0x365   : > { %2946 = vmatmul.msk.f32.gmra.mxu1 %vm1850_vm15, %v403_v4 }
 0x366   : > { %v1611_v4 = vadd.f32 %v5101_v22, %v1546_v32 }
 0x369   : > { %v1923_v10 = vpop.f32.mrf.mxu1 }
 0x36a   : > { %v1924_v34 = vadd.f32 %v1923_v10, %v1608_v19  ;;  %v6454_v19 = vld [vmem:[#allocation7_spill] sm:$0xff] }
 0x36c   : > { %2929 = vmatmul.msk.f32.gmra.mxu0 %vm1411_vm13, %v5052_v39  ;;  %v2132_v38 = vadd.f32 %v2055_v46, %v1924_v34  ;;  %v1549_v39 = vadd.f32 %v5200_v40, %v5174_v17  ;;  %v1997_v60 = vpop.f32.mrf.mxu3  ;;  %v1552_v40 = vadd.f32 %v5217_v33, %v5194_v57 }
 0x36e   : > { %v2964_v5 = vmul.f32 -1.442695, %v2132_v38  ;;  %v1614_v22 = vadd.f32 %v5135_v15, %v1549_v39 }
 0x36f   : > { %v1737_v0 = vpop.f32.mrf.mxu2 }
 0x370   : > { %v1738_v30 = vadd.f32 %v1737_v0, %v5087_v47  ;;  %3569 = vpow2.f32 %v2964_v5  ;;  %v5367_v47 = vpop.permute.xlu2 %2069  ;;  %v2065_v0 = vpop.permute.xlu1 %2064 }
 0x371   : > { %v1802_v28 = vpop.f32.mrf.mxu0 }
 0x372   : > { %v1803_v56 = vadd.f32 %v1802_v28, %v1738_v30  ;;  %v1926_v42 = vpop.f32.mrf.mxu1 }
 0x373   : > { %v1927_v49 = vadd.f32 %v1926_v42, %v1611_v4 }
 0x374   : > { %v1989_v18 = vadd.f32 %v1988_v61, %v1803_v56  ;;  %v5376_v39 = vpop.f32.mrf.mxu3 }
 0x375   : > { %v2134_v59 = vadd.f32 %v2060_v58, %v1927_v49 }
 0x376   : > { %v2133_v6 = vadd.f32 %v2055_v46, %v1989_v18  ;;  %v3570_v17 = vpop.eup %3569  ;;  %v1617_v18 = vadd.f32 %v5168_v63, %v1552_v40 }
 0x377   : > { %v1740_v25 = vpop.f32.mrf.mxu2  ;;  %v2966_v30 = vmul.f32 -1.442695, %v2134_v59  ;;  %v5372_v42 = vadd.f32 1.0, %v3570_v17 }
 0x378   : > { %v1741_v10 = vadd.f32 %v1740_v25, %v6454_v19  ;;  %v2965_v28 = vmul.f32 -1.442695, %v2133_v6  ;;  %v5378_v25 = vpop.permute.xlu2 %2099 }
 0x379   : > { %v1805_v34 = vpop.f32.mrf.mxu0  ;;  %3571 = vpow2.f32 %v2966_v30  ;;  %vm2201_vm0 = vweird.f32 %v5372_v42 }
 0x37a   : > { %v1806_v32 = vadd.f32 %v1805_v34, %v1741_v10  ;;  %v1929_v38 = vpop.f32.mrf.mxu1  ;;  %3573 = vpow2.f32 %v2965_v28  ;;  %v1555_v34 = vadd.f32 %v5231_v27, %v5210_v48  ;;  %v5391_v28 = vpop.permute.xlu0 %2104 }
 0x37b   : > { %v1930_v61 = vadd.f32 %v1929_v38, %v1614_v22  ;;  %3575 = vrcp.f32 %v5372_v42 }
 0x37c   : > { %v1992_v4 = vadd.f32 %v1991_v50, %v1806_v32  ;;  %v5384_v32 = vpop.permute.xlu1 %2094  ;;  %v1620_v27 = vadd.f32 %v5196_v53, %v1555_v34 }
 0x37d   : > { %v2136_v56 = vadd.f32 %v2065_v0, %v1930_v61 }
 0x37e   : > { %v2135_v6 = vadd.f32 %v2060_v58, %v1992_v4 }
 0x37f   : > { %v1743_v46 = vpop.f32.mrf.mxu2  ;;  %v2968_v15 = vmul.f32 -1.442695, %v2136_v56  ;;  %v3572_v33 = vpop.eup %3571 }
 0x380   : > { %v1744_v5 = vadd.f32 %v1743_v46, %v5141_v11  ;;  %v3574_v10 = vpop.eup %3573  ;;  %v2967_v63 = vmul.f32 -1.442695, %v2135_v6  ;;  %v5386_v38 = vadd.f32 1.0, %v3572_v33  ;;  %v5396_v56 = vpop.f32.mrf.mxu3 }
 0x381   : > { %v1808_v49 = vpop.f32.mrf.mxu0  ;;  %3577 = vpow2.f32 %v2968_v15  ;;  %v5389_v30 = vadd.f32 1.0, %v3574_v10  ;;  %v2075_v46 = vpop.permute.xlu2 %2074  ;;  %v1564_v10 = vadd.f32 %v5270_v36, %v5258_v29 }
 0x382   : > { %v1809_v59 = vadd.f32 %v1808_v49, %v1744_v5  ;;  %v1932_v50 = vpop.f32.mrf.mxu1  ;;  %3579 = vpow2.f32 %v2967_v63  ;;  %vm2231_vm4 = vweird.f32 %v5386_v38 }
 0x383   : > { %v1933_v57 = vadd.f32 %v1932_v50, %v1617_v18  ;;  %3581 = vrcp.f32 %v5386_v38  ;;  %vm2216_vm5 = vweird.f32 %v5389_v30 }
 0x384   : > { %v1995_v19 = vadd.f32 %v1994_v43, %v1809_v59  ;;  %v5393_v43 = vpop.eup %3575  ;;  %3583 = vrcp.f32 %v5389_v30  ;;  %v5425_v33 = vpop.permute.xlu1 %2109 }
 0x385   : > { %v2138_v11 = vadd.f32 %v5367_v47, %v1933_v57  ;;  %v2197_v5 = vmul.f32 %v5393_v43, %v5372_v42  ;;  %vm2202_vm1 = vweird.f32 %v5393_v43 }
 0x386   : > { %v2137_v48 = vadd.f32 %v2065_v0, %v1995_v19  ;;  %v1558_v0 = vadd.f32 %v5246_v14, %v5227_v2  ;;  %v1561_v14 = vadd.f32 %v5260_v37, %v5243_v31  ;;  %v5439_v37 = vpop.permute.xlu0 %2079  ;;  %vm5484_vm3 = vmor %vm2201_vm0, %vm2202_vm1 }
 0x387   : > { %v1746_v22 = vpop.f32.mrf.mxu2  ;;  %v2970_v4 = vmul.f32 -1.442695, %v2138_v11  ;;  %v3578_v40 = vpop.eup %3577 }
 0x388   : > { %v1747_v58 = vadd.f32 %v1746_v22, %v5166_v44  ;;  %v5404_v49 = vadd.f32 1.0, %v3578_v40  ;;  %v2969_v18 = vmul.f32 -1.442695, %v2137_v48  ;;  %v3580_v2 = vpop.eup %3579  ;;  %v1623_v11 = vadd.f32 %v5215_v52, %v1558_v0 }
 0x389   : > { %v1811_v61 = vpop.f32.mrf.mxu0  ;;  %3585 = vpow2.f32 %v2970_v4  ;;  %v5427_v19 = vpop.eup %3581  ;;  %v5441_v22 = vadd.f32 1.0, %v3580_v2  ;;  %v1626_v4 = vadd.f32 %v5233_v8, %v1561_v14  ;;  %v2237_v14 = vand.u32 2147483648, %v5386_v38 }
 0x38a   : > { %v1935_v17 = vpop.f32.mrf.mxu1  ;;  %v1812_v44 = vadd.f32 %v1811_v61, %v1747_v58  ;;  %3587 = vrcp.f32 %v5404_v49  ;;  %v5437_v31 = vpop.eup %3583  ;;  %v2207_v61 = vand.u32 2147483648, %v5372_v42  ;;  %vm2261_vm8 = vweird.f32 %v5404_v49 }
 0x38b   : > { %v1936_v15 = vadd.f32 %v1935_v17, %v1620_v27  ;;  %3589 = vpow2.f32 %v2969_v18  ;;  %v5451_v17 = vpop.f32.mrf.mxu3  ;;  %v2205_v27 = vand.u32 2147483647, %v5372_v42  ;;  %v2235_v42 = vand.u32 2147483647, %v5386_v38 }
 0x38c   : > { %v1998_v53 = vadd.f32 %v1997_v60, %v1812_v44  ;;  %v2198_v60 = vsub.f32 1.0, %v2197_v5  ;;  %v2227_v44 = vmul.f32 %v5427_v19, %v5386_v38  ;;  %v2212_v5 = vmul.f32 %v5437_v31, %v5389_v30 }
 0x38d   : > { %v2140_v59 = vadd.f32 %v2075_v46, %v1936_v15  ;;  %vm5473_vm2 = vcmp.eq.f32.partialorder %v2205_v27, 8.507059e+37  ;;  %vm5523_vm6 = vcmp.eq.f32.partialorder %v2235_v42, 8.507059e+37  ;;  %vm2217_vm7 = vweird.f32 %v5437_v31 }
 0x38e   : > { %v2139_v58 = vadd.f32 %v5367_v47, %v1998_v53  ;;  %v2199_v52 = vmul.f32 %v5393_v43, %v2198_v60  ;;  %v5456_v47 = vadd.f32 %v5251_v12, %v1564_v10  ;;  %vm2232_vm10 = vweird.f32 %v5427_v19  ;;  %vm5563_vm13 = vmor %vm2216_vm5, %vm2217_vm7 }
 0x38f   : > { %v1749_v50 = vpop.f32.mrf.mxu2  ;;  %v2972_v57 = vmul.f32 -1.442695, %v2140_v59  ;;  %v3586_v63 = vpop.eup %3585  ;;  %v2208_v59 = vor.u32 1.1754944e-38, %v2207_v61  ;;  %vm5553_vm11 = vmor %vm2231_vm4, %vm2232_vm10  ;;  %vm2246_vm1 = vweird.f32 %v5441_v22 }
 0x390   : > { %v1750_v6 = vadd.f32 %v1749_v50, %v5186_v62  ;;  %v5464_v8 = vadd.f32 1.0, %v3586_v63  ;;  %v5466_v0 = vpop.eup %3587  ;;  %v2200_v2 = vadd.f32 %v5393_v43, %v2199_v52  ;;  %v5478_v63 = vpop.permute.xlu1 %2084 }
 0x391   : > { %v1814_v62 = vpop.f32.mrf.mxu0  ;;  %3591 = vpow2.f32 %v2972_v57  ;;  %v3590_v18 = vpop.eup %3589  ;;  %vm2262_vm12 = vweird.f32 %v5466_v0 }
 0x392   : > { %v1938_v34 = vpop.f32.mrf.mxu1  ;;  %v1815_v29 = vadd.f32 %v1814_v62, %v1750_v6  ;;  %3593 = vrcp.f32 %v5441_v22  ;;  %v5491_v52 = vadd.f32 1.0, %v3590_v18  ;;  %v2204_v61 = vsel %vm5484_vm3, %v5393_v43, %v2200_v2  ;;  %vm5605_vm14 = vmor %vm2261_vm8, %vm2262_vm12 }
 0x393   : > { %v1939_v36 = vadd.f32 %v1938_v34, %v1623_v11  ;;  %v2228_v11 = vsub.f32 1.0, %v2227_v44  ;;  %3595 = vrcp.f32 %v5464_v8  ;;  %v2252_v43 = vand.u32 2147483648, %v5441_v22 }
 0x394   : > { %v2001_v48 = vadd.f32 %v5376_v39, %v1815_v29  ;;  %v2971_v39 = vmul.f32 -1.442695, %v2139_v58  ;;  %v2222_v29 = vand.u32 2147483648, %v5389_v30 }
 0x395   : > { %v2142_v40 = vadd.f32 %v5439_v37, %v1939_v36  ;;  %v2257_v36 = vmul.f32 %v5466_v0, %v5404_v49 }
 0x396   : > { %v2141_v12 = vadd.f32 %v2075_v46, %v2001_v48  ;;  %3597 = vpow2.f32 %v2971_v39 }
 0x397   : > { %v1752_v15 = vpop.f32.mrf.mxu2  ;;  %v2974_v50 = vmul.f32 -1.442695, %v2142_v40  ;;  %v3592_v46 = vpop.eup %3591  ;;  %v2258_v18 = vsub.f32 1.0, %v2257_v36 }
 0x398   : > { %v1753_v53 = vadd.f32 %v1752_v15, %v5203_v55  ;;  %v2973_v60 = vmul.f32 -1.442695, %v2141_v12  ;;  %v2213_v55 = vsub.f32 1.0, %v2212_v5  ;;  %v5499_v40 = vpop.eup %3593  ;;  %v5502_v48 = vadd.f32 1.0, %v3592_v46  ;;  %v5509_v12 = vpop.f32.mrf.mxu3 }
 0x399   : > { %v1817_v6 = vpop.f32.mrf.mxu0  ;;  %3599 = vpow2.f32 %v2974_v50  ;;  %v2229_v5 = vmul.f32 %v5427_v19, %v2228_v11  ;;  %v5515_v2 = vpop.eup %3595  ;;  %v2209_v46 = vsel %vm5473_vm2, %v2208_v59, %v2204_v61  ;;  %v2259_v36 = vmul.f32 %v5466_v0, %v2258_v18 }
 0x39a   : > { %v1818_v57 = vadd.f32 %v1817_v6, %v1753_v53  ;;  %v1941_v62 = vpop.f32.mrf.mxu1  ;;  %3601 = vpow2.f32 %v2973_v60  ;;  %v2214_v15 = vmul.f32 %v5437_v31, %v2213_v55  ;;  %v5511_v53 = vor.u32 1.1754944e-38, %v2237_v14 }
 0x39b   : > { %v1942_v34 = vadd.f32 %v1941_v62, %v1626_v4  ;;  %v2220_v4 = vand.u32 2147483647, %v5389_v30  ;;  %3603 = vrcp.f32 %v5491_v52  ;;  %v2242_v60 = vmul.f32 %v5499_v40, %v5441_v22  ;;  %v2628_v62 = vld [vmem:[#allocation2 + $0x30] sm:$0xff] }
 0x39c   : > { %v2004_v44 = vadd.f32 %v5396_v56, %v1818_v57  ;;  %v2223_v56 = vor.u32 1.1754944e-38, %v2222_v29  ;;  %v3598_v11 = vpop.eup %3597  ;;  %3605 = vrcp.f32 %v5502_v48  ;;  %v2230_v58 = vadd.f32 %v5427_v19, %v2229_v5 }
 0x39d   : > { %v2144_v27 = vadd.f32 %v5478_v63, %v1942_v34  ;;  %vm5531_vm9 = vcmp.eq.f32.partialorder %v2220_v4, 8.507059e+37  ;;  %v5538_v61 = vor.u32 1.1754944e-38, %v2252_v43  ;;  %v5540_v42 = vmul.f32 %v2628_v62, %v2209_v46 }
 0x39e   : > { %v2143_v6 = vadd.f32 %v5439_v37, %v2004_v44  ;;  %v2267_v37 = vand.u32 2147483648, %v5404_v49  ;;  %v2243_v4 = vsub.f32 1.0, %v2242_v60  ;;  %v2282_v44 = vand.u32 2147483648, %v5491_v52  ;;  %v2090_v60 = vpop.permute.xlu2 %2089 }
 0x39f   : > { %v1755_v39 = vpop.f32.mrf.mxu2  ;;  %v2976_v50 = vmul.f32 -1.442695, %v2144_v27  ;;  %v3600_v10 = vpop.eup %3599  ;;  %v2215_v27 = vadd.f32 %v5437_v31, %v2214_v15  ;;  %v5544_v41 = vadd.f32 1.0, %v3598_v11  ;;  %v2287_v38 = vmul.f32 %v5515_v2, %v5464_v8 }
 0x3a0   : > { %v2975_v59 = vmul.f32 -1.442695, %v2143_v6  ;;  %v3602_v29 = vpop.eup %3601  ;;  %v5549_v5 = vadd.f32 1.0, %v3600_v10  ;;  %v2268_v15 = vor.u32 1.1754944e-38, %v2267_v37  ;;  %v2234_v11 = vsel %vm5553_vm11, %v5427_v19, %v2230_v58  ;;  %v5588_v58 = vpop.f32.mrf.mxu3 }
 0x3a1   : > { %v5519_v57 = vpop.f32.mrf.mxu0  ;;  %3607 = vpow2.f32 %v2976_v50  ;;  %6466 = vst [vmem:[#allocation14_spill] sm:$0xff] %v5544_v41  ;;  %v2265_v50 = vand.u32 2147483647, %v5404_v49  ;;  %v5547_v6 = vpop.eup %3603  ;;  %v5569_v62 = vadd.f32 1.0, %v3602_v29  ;;  %v1756_v30 = vadd.f32 %v1755_v39, %v5220_v9 }
 0x3a2   : > { %v1944_v55 = vpop.f32.mrf.mxu1  ;;  %3609 = vpow2.f32 %v2975_v59  ;;  %v5574_v37 = vpop.eup %3605  ;;  %v2219_v18 = vsel %vm5563_vm13, %v5437_v31, %v2215_v27  ;;  %v2260_v16 = vadd.f32 %v5466_v0, %v2259_v36  ;;  %v2244_v59 = vmul.f32 %v5499_v40, %v2243_v4  ;;  %v2630_v36 = vld [vmem:[#allocation2 + $0x18] sm:$0xff] }
 0x3a3   : > { %v2272_v26 = vmul.f32 %v5547_v6, %v5491_v52  ;;  %v5585_v43 = vor.u32 1.1754944e-38, %v2282_v44  ;;  %3611 = vrcp.f32 %v5544_v41  ;;  %v1945_v9 = vadd.f32 %v1944_v55, %v5456_v47 }
 0x3a4   : > { %3613 = vrcp.f32 %v5549_v5  ;;  %v2239_v27 = vsel %vm5523_vm6, %v5511_v53, %v2234_v11  ;;  %v2288_v4 = vsub.f32 1.0, %v2287_v38  ;;  %v2349_v44 = vmul.f32 %v5574_v37, %v5502_v48 }
 0x3a5   : > { %6471 = vst [vmem:[#allocation10_spill] sm:$0xff] %v5585_v43  ;;  %3615 = vrcp.f32 %v5569_v62  ;;  %v2224_v10 = vsel %vm5531_vm9, %v2223_v56, %v2219_v18  ;;  %v2629_v43 = vld [vmem:[#allocation2] sm:$0xff]  ;;  %v2359_v47 = vand.u32 2147483648, %v5502_v48  ;;  %v1821_v14 = vadd.f32 %v5519_v57, %v1756_v30 }
 0x3a6   : > { %v2264_v55 = vsel %vm5605_vm14, %v5466_v0, %v2260_v16  ;;  %vm2247_vm15 = vweird.f32 %v5499_v40  ;;  %v2273_v34 = vsub.f32 1.0, %v2272_v26  ;;  %v2312_v49 = vand.u32 2147483648, %v5544_v41 }
 0x3a7   : > { %v1758_v46 = vpop.f32.mrf.mxu2  ;;  %v3608_v29 = vpop.eup %3607  ;;  %v5619_v38 = vmul.f32 %v2630_v36, %v2239_v27  ;;  %vm2266_vm0 = vcmp.eq.f32.partialorder %v2265_v50, 8.507059e+37  ;;  %v5627_v16 = vmul.f32 %v5515_v2, %v2288_v4  ;;  %v2350_v0 = vsub.f32 1.0, %v2349_v44  ;;  %vm5678_vm4 = vmor %vm2246_vm1, %vm2247_vm15 }
 0x3a8   : > { %v1759_v31 = vadd.f32 %v1758_v46, %v5236_v20  ;;  %v5610_v53 = vadd.f32 1.0, %v3608_v29  ;;  %v3610_v56 = vpop.eup %3609  ;;  %v2146_v46 = vadd.f32 %v2090_v60, %v1945_v9  ;;  %v5621_v29 = vmul.f32 %v2629_v43, %v2224_v10  ;;  %v2632_v20 = vld [vmem:[#allocation2 + $0x8] sm:$0xff] }
 0x3a9   : > { %v1823_v19 = vpop.f32.mrf.mxu0  ;;  %v5623_v57 = vpop.eup %3611  ;;  %v5632_v9 = vor.u32 1.1754944e-38, %v2359_v47  ;;  %v5635_v50 = vadd.f32 1.0, %v3610_v56  ;;  %v2007_v10 = vadd.f32 %v5451_v17, %v1821_v14  ;;  %v5647_v27 = vadd.f32 %v5499_v40, %v2244_v59 }
 0x3aa   : > { %v1947_v39 = vpop.f32.mrf.mxu1  ;;  %v1824_v11 = vadd.f32 %v1823_v19, %v1759_v31  ;;  %6474 = vst [vmem:[#allocation17_spill] sm:$0xff] %v5623_v57  ;;  %3617 = vrcp.f32 %v5610_v53  ;;  %v5641_v19 = vmul.f32 %v5547_v6, %v2273_v34  ;;  %v5643_v31 = vor.u32 1.1754944e-38, %v2312_v49  ;;  %v5659_v49 = vpop.f32.mrf.mxu3 }
 0x3ab   : > { %v1948_v18 = vadd.f32 %v1947_v39, %v5288_v35  ;;  %v2269_v35 = vsel %vm2266_vm0, %v2268_v15, %v2264_v55  ;;  %v5630_v39 = vpop.eup %3613  ;;  %vm2353_vm2 = vweird.f32 %v5502_v48  ;;  %v2302_v4 = vmul.f32 %v5623_v57, %v5544_v41 }
 0x3ac   : > { %v5638_v43 = vpop.eup %3615  ;;  %6475 = vst [vmem:[#allocation12_spill] sm:$0xff] %v5641_v19  ;;  %v2978_v44 = vmul.f32 -1.442695, %v2146_v46  ;;  %v2010_v17 = vadd.f32 %v5509_v12, %v1824_v11  ;;  %v5653_v14 = vmul.f32 %v2632_v20, %v2269_v35  ;;  %v2351_v55 = vmul.f32 %v5574_v37, %v2350_v0 }
 0x3ad   : > { %6476 = vst [vmem:[#allocation15_spill] sm:$0xff] %v5643_v31  ;;  %v2148_v36 = vadd.f32 %v5384_v32, %v1948_v18  ;;  %v2379_v56 = vmul.f32 %v5630_v39, %v5549_v5  ;;  %v2364_v18 = vmul.f32 %v5638_v43, %v5569_v62  ;;  %3619 = vrcp.f32 %v5635_v50 }
 0x3ae   : > { %v2145_v12 = vadd.f32 %v5478_v63, %v2007_v10  ;;  %vm2354_vm3 = vweird.f32 %v5574_v37  ;;  %v2389_v11 = vand.u32 2147483648, %v5549_v5  ;;  %v2147_v35 = vadd.f32 %v2090_v60, %v2010_v17  ;;  %v6479_v17 = vld [vmem:[#allocation5_spill] sm:$0xff] }
 0x3af   : > { %v1761_v30 = vpop.f32.mrf.mxu2  ;;  %v2980_v34 = vmul.f32 -1.442695, %v2148_v36  ;;  %v2380_v36 = vsub.f32 1.0, %v2379_v56  ;;  %v2374_v26 = vand.u32 2147483648, %v5569_v62  ;;  %v2365_v60 = vsub.f32 1.0, %v2364_v18  ;;  %vm5707_vm8 = vmor %vm2353_vm2, %vm2354_vm3 }
 0x3b0   : > { %v1762_v59 = vadd.f32 %v1761_v30, %v5249_v3  ;;  %v5668_v20 = vpop.eup %3617  ;;  %v2303_v3 = vsub.f32 1.0, %v2302_v4  ;;  %v2387_v30 = vand.u32 2147483647, %v5549_v5  ;;  %v5683_v4 = vadd.f32 %v5574_v37, %v2351_v55 }
 0x3b1   : > { %v1826_v15 = vpop.f32.mrf.mxu0  ;;  %3621 = vpow2.f32 %v2980_v34  ;;  %vm2383_vm5 = vweird.f32 %v5549_v5  ;;  %v5687_v56 = vor.u32 1.1754944e-38, %v2389_v11  ;;  %v2409_v34 = vmul.f32 %v5668_v20, %v5610_v53 }
 0x3b2   : > { %v1950_v47 = vpop.f32.mrf.mxu1  ;;  %v1827_v0 = vadd.f32 %v1826_v15, %v1762_v59  ;;  %3623 = vpow2.f32 %v2978_v44  ;;  %v2977_v44 = vmul.f32 -1.442695, %v2145_v12  ;;  %v5699_v18 = vmul.f32 %v5623_v57, %v2303_v3 }
 0x3b3   : > { %v1951_v46 = vadd.f32 %v1950_v47, %v5296_v21  ;;  %vm2384_vm6 = vweird.f32 %v5630_v39  ;;  %vm2368_vm7 = vweird.f32 %v5569_v62  ;;  %v2979_v12 = vmul.f32 -1.442695, %v2147_v35 }
 0x3b4   : > { %v2013_v21 = vadd.f32 %v5588_v58, %v1827_v0  ;;  %v2372_v58 = vand.u32 2147483647, %v5569_v62  ;;  %6480 = vst [vmem:[#allocation9_spill] sm:$0xff] %v5699_v18  ;;  %v2381_v55 = vmul.f32 %v5630_v39, %v2380_v36  ;;  %v5712_v3 = vor.u32 1.1754944e-38, %v2374_v26  ;;  %vm5760_vm14 = vmor %vm2383_vm5, %vm2384_vm6 }
 0x3b5   : > { %v2150_v63 = vadd.f32 %v5378_v25, %v1951_v46  ;;  %v5696_v46 = vpop.eup %3619  ;;  %v2356_v35 = vsel %vm5707_vm8, %v5574_v37, %v5683_v4  ;;  %v2366_v19 = vmul.f32 %v5638_v43, %v2365_v60  ;;  %v2419_v26 = vand.u32 2147483648, %v5610_v53 }
 0x3b6   : > { %v2149_v31 = vadd.f32 %v5384_v32, %v2013_v21  ;;  %3625 = vpow2.f32 %v2977_v44  ;;  %v2410_v36 = vsub.f32 1.0, %v2409_v34  ;;  %vm5731_vm10 = vcmp.eq.f32.partialorder %v2387_v30, 8.507059e+37 }
 0x3b7   : > { %v1764_v10 = vpop.f32.mrf.mxu2  ;;  %v2982_v11 = vmul.f32 -1.442695, %v2150_v63  ;;  %v6483_v63 = vand.u32 2147483647, %v5502_v48  ;;  %vm5735_vm11 = vcmp.eq.f32.partialorder %v2372_v58, 8.507059e+37  ;;  %v2394_v4 = vmul.f32 %v5696_v46, %v5635_v50 }
 0x3b8   : > { %v1765_v47 = vadd.f32 %v1764_v10, %v6479_v17  ;;  %v3622_v10 = vpop.eup %3621  ;;  %v2981_v21 = vmul.f32 -1.442695, %v2149_v31  ;;  %v2404_v60 = vand.u32 2147483648, %v5635_v50  ;;  %v2382_v31 = vadd.f32 %v5630_v39, %v2381_v55  ;;  %v6493_v17 = vld [vmem:[#allocation6_spill] sm:$0xff] }
 0x3b9   : > { %v1829_v59 = vpop.f32.mrf.mxu0  ;;  %v3624_v41 = vpop.eup %3623  ;;  %vm5721_vm9 = vcmp.eq.f32.partialorder %v6483_v63, 8.507059e+37  ;;  %v5727_v32 = vadd.f32 1.0, %v3622_v10  ;;  %3627 = vpow2.f32 %v2982_v11  ;;  %vm2369_vm12 = vweird.f32 %v5638_v43 }
 0x3ba   : > { %v1953_v0 = vpop.f32.mrf.mxu1  ;;  %v1830_v18 = vadd.f32 %v1829_v59, %v1765_v47  ;;  %v5729_v47 = vpop.f32.mrf.mxu3  ;;  %3629 = vpow2.f32 %v2979_v12  ;;  %v5744_v34 = vadd.f32 1.0, %v3624_v41  ;;  %v2367_v59 = vadd.f32 %v5638_v43, %v2366_v19  ;;  %vm5774_vm15 = vmor %vm2368_vm7, %vm2369_vm12 }
 0x3bb   : > { %v1954_v44 = vadd.f32 %v1953_v0, %v5307_v1  ;;  %3631 = vrcp.f32 %v5727_v32  ;;  %vm2413_vm13 = vweird.f32 %v5610_v53  ;;  %v2411_v12 = vmul.f32 %v5668_v20, %v2410_v36 }
 0x3bc   : > { %6490 = vst [vmem:[#allocation7_spill] sm:$0xff] %v5744_v34  ;;  %v2016_v30 = vadd.f32 %v5659_v49, %v1830_v18  ;;  %v5753_v1 = vor.u32 1.1754944e-38, %v2419_v26  ;;  %3633 = vpow2.f32 %v2981_v21  ;;  %v3626_v0 = vpop.eup %3625  ;;  %v2395_v49 = vsub.f32 1.0, %v2394_v4 }
 0x3bd   : > { %v2152_v41 = vadd.f32 %v5391_v28, %v1954_v44  ;;  %v2386_v21 = vsel %vm5760_vm14, %v5630_v39, %v2382_v31  ;;  %vm2414_vm0 = vweird.f32 %v5668_v20  ;;  %v5779_v4 = vor.u32 1.1754944e-38, %v2404_v60 }
 0x3be   : > { %v2151_v10 = vadd.f32 %v5378_v25, %v2016_v30  ;;  %3635 = vrcp.f32 %v5744_v34  ;;  %v2371_v44 = vsel %vm5774_vm15, %v5638_v43, %v2367_v59  ;;  %v2396_v5 = vmul.f32 %v5696_v46, %v2395_v49  ;;  %vm5819_vm1 = vmor %vm2413_vm13, %vm2414_vm0 }
 0x3bf   : > { %v1767_v58 = vpop.f32.mrf.mxu2  ;;  %v3628_v36 = vpop.eup %3627  ;;  %6496 = vst [vmem:[#allocation5_spill] sm:$0xff] %v5779_v4  ;;  %v2984_v31 = vmul.f32 -1.442695, %v2152_v41  ;;  %v2449_v43 = vand.u32 2147483648, %v5744_v34  ;;  %v5808_v57 = vsel %vm5731_vm10, %v5687_v56, %v2386_v21  ;;  %vm2505_vm2 = vweird.f32 %v5727_v32 }
 0x3c0   : > { %v1768_v63 = vadd.f32 %v1767_v58, %v6493_v17  ;;  %v3630_v25 = vpop.eup %3629  ;;  %v5785_v39 = vadd.f32 1.0, %v3628_v36  ;;  %v2983_v30 = vmul.f32 -1.442695, %v2151_v10  ;;  %v5790_v58 = vadd.f32 %v5668_v20, %v2411_v12 }
 0x3c1   : > { %v1832_v55 = vpop.f32.mrf.mxu0  ;;  %v5787_v62 = vpop.eup %3631  ;;  %v5796_v17 = vsel %vm5721_vm9, %v5632_v9, %v2356_v35  ;;  %v5803_v12 = vadd.f32 1.0, %v3626_v0  ;;  %v5813_v9 = vsel %vm5735_vm11, %v5712_v3, %v2371_v44  ;;  %v5824_v49 = vadd.f32 1.0, %v3630_v25  ;;  %v6501_v25 = vld [vmem:[#allocation8_spill] sm:$0xff] }
 0x3c2   : > { %v1956_v26 = vpop.f32.mrf.mxu1  ;;  %v1833_v19 = vadd.f32 %v1832_v55, %v1768_v63  ;;  %v2501_v59 = vmul.f32 %v5787_v62, %v5727_v32  ;;  %3637 = vrcp.f32 %v5785_v39  ;;  %v3634_v41 = vpop.eup %3633  ;;  %v5837_v36 = vadd.f32 %v5696_v46, %v2396_v5 }
 0x3c3   : > { %v1957_v60 = vadd.f32 %v1956_v26, %v5319_v24  ;;  %3639 = vpow2.f32 %v2984_v31  ;;  %v2021_v24 = vpop.f32.mrf.mxu3  ;;  %6499 = vst [vmem:[#allocation6_spill] sm:$0xff] %v5824_v49  ;;  %v5826_v37 = vadd.f32 1.0, %v3634_v41  ;;  %v5839_v21 = vor.u32 1.1754944e-38, %v2449_v43  ;;  %v6538_v35 = vld [vmem:[#allocation7_spill] sm:$0xff] }
 0x3c4   : > { %3641 = vpow2.f32 %v2983_v30  ;;  %v5828_v56 = vpop.eup %3635  ;;  %v2502_v48 = vsub.f32 1.0, %v2501_v59  ;;  %v2019_v63 = vadd.f32 %v5729_v47, %v1833_v19  ;;  %v2509_v3 = vand.u32 2147483647, %v5727_v32 }
 0x3c5   : > { %v2154_v10 = vadd.f32 %v5425_v33, %v1957_v60  ;;  %6500 = vst [vmem:[#allocation18_spill] sm:$0xff] %v5839_v21  ;;  %3643 = vrcp.f32 %v5826_v37  ;;  %v5850_v47 = vmul.f32 %v5828_v56, %v5744_v34  ;;  %vm2506_vm3 = vweird.f32 %v5787_v62 }
 0x3c6   : > { %3645 = vrcp.f32 %v5803_v12  ;;  %v2153_v59 = vadd.f32 %v5391_v28, %v2019_v63  ;;  %v2115_v28 = vpop.permute.xlu0 %2114  ;;  %vm5879_vm5 = vcmp.eq.f32.partialorder %v2509_v3, 8.507059e+37  ;;  %vm5891_vm7 = vmor %vm2505_vm2, %vm2506_vm3  ;;  %vm2399_vm8 = vweird.f32 %v5696_v46 }
 0x3c7   : > { %v1770_v55 = vpop.f32.mrf.mxu2  ;;  %v2986_v30 = vmul.f32 -1.442695, %v2154_v10  ;;  %3647 = vrcp.f32 %v5824_v49  ;;  %v2503_v10 = vmul.f32 %v5787_v62, %v2502_v48  ;;  %v2511_v48 = vand.u32 2147483648, %v5727_v32 }
 0x3c8   : > { %v1771_v44 = vadd.f32 %v1770_v55, %v6501_v25  ;;  %v5846_v60 = vpop.eup %3637  ;;  %v2985_v55 = vmul.f32 -1.442695, %v2153_v59  ;;  %vm2535_vm9 = vweird.f32 %v5785_v39  ;;  %vm2398_vm11 = vweird.f32 %v5635_v50 }
 0x3c9   : > { %v1835_v26 = vpop.f32.mrf.mxu0  ;;  %v3640_v43 = vpop.eup %3639  ;;  %v2531_v41 = vmul.f32 %v5846_v60, %v5785_v39  ;;  %3649 = vpow2.f32 %v2986_v30  ;;  %vm2536_vm6 = vweird.f32 %v5846_v60  ;;  %vm2520_vm13 = vweird.f32 %v5826_v37  ;;  %vm5975_vm3 = vmor %vm2398_vm11, %vm2399_vm8 }
 0x3ca   : > { %v1959_v31 = vpop.f32.mrf.mxu1  ;;  %v1836_v19 = vadd.f32 %v1835_v26, %v1771_v44  ;;  %v3642_v63 = vpop.eup %3641  ;;  %v5857_v25 = vadd.f32 1.0, %v3640_v43  ;;  %3651 = vpow2.f32 %v2985_v55  ;;  %vm5917_vm10 = vmor %vm2535_vm9, %vm2536_vm6 }
 0x3cb   : > { %v1960_v5 = vadd.f32 %v1959_v31, %v5329_v51  ;;  %v2532_v11 = vsub.f32 1.0, %v2531_v41  ;;  %v5860_v26 = vadd.f32 1.0, %v3642_v63  ;;  %v5863_v44 = vpop.eup %3643  ;;  %v2024_v41 = vpop.f32.mrf.mxu3 }
 0x3cc   : > { %v2022_v18 = vadd.f32 %v2021_v24, %v1836_v19  ;;  %3653 = vrcp.f32 %v5857_v25  ;;  %v5869_v59 = vpop.eup %3645  ;;  %v2516_v24 = vmul.f32 %v5863_v44, %v5826_v37  ;;  %v2504_v19 = vadd.f32 %v5787_v62, %v2503_v10 }
 0x3cd   : > { %v2156_v0 = vadd.f32 %v2115_v28, %v1960_v5  ;;  %3655 = vrcp.f32 %v5860_v26  ;;  %v2533_v43 = vmul.f32 %v5846_v60, %v2532_v11  ;;  %v5876_v55 = vpop.eup %3647  ;;  %vm2521_vm12 = vweird.f32 %v5863_v44 }
 0x3ce   : > { %v2155_v31 = vadd.f32 %v5425_v33, %v2022_v18  ;;  %6502 = vst [vmem:[#allocation8_spill] sm:$0xff] %v5876_v55  ;;  %v2517_v21 = vsub.f32 1.0, %v2516_v24  ;;  %vm5942_vm15 = vmor %vm2520_vm13, %vm2521_vm12  ;;  %vm2550_vm13 = vweird.f32 %v5860_v26 }
 0x3cf   : > { %v1773_v51 = vpop.f32.mrf.mxu2  ;;  %3657 = vtanh.f32 %v2156_v0  ;;  %v2534_v3 = vadd.f32 %v5846_v60, %v2533_v43  ;;  %v2539_v43 = vand.u32 2147483647, %v5785_v39 }
 0x3d0   : > { %v1774_v30 = vadd.f32 %v1773_v51, %v5299_v23  ;;  %v2987_v33 = vmul.f32 -1.442695, %v2155_v31  ;;  %v3650_v51 = vpop.eup %3649  ;;  %v5895_v31 = vpop.permute.xlu1 %2119  ;;  %v2518_v32 = vmul.f32 %v5863_v44, %v2517_v21 }
 0x3d1   : > { %v1838_v5 = vpop.f32.mrf.mxu0  ;;  %v5885_v11 = vadd.f32 1.0, %v3650_v51  ;;  %v3652_v24 = vpop.eup %3651  ;;  %v2538_v0 = vsel %vm5917_vm10, %v5846_v60, %v2534_v3  ;;  %vm2540_vm14 = vcmp.eq.f32.partialorder %v2539_v43, 8.507059e+37  ;;  %vm2277_vm10 = vweird.f32 %v5547_v6 }
 0x3d2   : > { %v1839_v23 = vadd.f32 %v1838_v5, %v1774_v30  ;;  %v1962_v18 = vpop.f32.mrf.mxu1  ;;  %3659 = vpow2.f32 %v2987_v33  ;;  %v2512_v5 = vor.u32 1.1754944e-38, %v2511_v48  ;;  %v5903_v51 = vpop.eup %3653  ;;  %v5913_v48 = vadd.f32 1.0, %v3652_v24 }
 0x3d3   : > { %v1963_v10 = vadd.f32 %v1962_v18, %v5338_v13  ;;  %v2508_v13 = vsel %vm5891_vm7, %v5787_v62, %v2504_v19  ;;  %3661 = vrcp.f32 %v5885_v11  ;;  %v5909_v33 = vpop.eup %3655  ;;  %v2561_v62 = vmul.f32 %v5903_v51, %v5857_v25 }
 0x3d4   : > { %v2025_v30 = vadd.f32 %v2024_v41, %v1839_v23  ;;  %v2541_v19 = vand.u32 2147483648, %v5785_v39  ;;  %v2526_v39 = vand.u32 2147483648, %v5826_v37  ;;  %v2546_v49 = vmul.f32 %v5909_v33, %v5860_v26 }
 0x3d5   : > { %v2158_v18 = vadd.f32 %v5895_v31, %v1963_v10  ;;  %v3658_v10 = vpop.eup %3657  ;;  %v2562_v24 = vsub.f32 1.0, %v2561_v62  ;;  %vm2566_vm2 = vweird.f32 %v5903_v51  ;;  %vm2291_vm7 = vweird.f32 %v5464_v8 }
 0x3d6   : > { %v2157_v41 = vadd.f32 %v2115_v28, %v2025_v30  ;;  %v2513_v28 = vsel %vm5879_vm5, %v2512_v5, %v2508_v13  ;;  %v2519_v30 = vadd.f32 %v5863_v44, %v2518_v32  ;;  %v2524_v13 = vand.u32 2147483647, %v5826_v37 }
 0x3d7   : > { %3663 = vtanh.f32 %v2158_v18  ;;  %v1776_v23 = vpop.f32.mrf.mxu2  ;;  %v2644_v63 = vmul.f32 %v3658_v10, %v2513_v28  ;;  %v2542_v32 = vor.u32 1.1754944e-38, %v2541_v19  ;;  %v5956_v10 = vpop.permute.xlu2 %2124  ;;  %v2547_v4 = vsub.f32 1.0, %v2546_v49 }
 0x3d8   : > { %v3660_v55 = vpop.eup %3659  ;;  %3665 = vtanh.f32 %v2157_v41  ;;  %v1777_v60 = vadd.f32 %v1776_v23, %v5311_v7  ;;  %v2523_v7 = vsel %vm5942_vm15, %v5863_v44, %v2519_v30  ;;  %v2527_v23 = vor.u32 1.1754944e-38, %v2526_v39  ;;  %v2027_v28 = vpop.f32.mrf.mxu3 }
 0x3d9   : > { %v1841_v18 = vpop.f32.mrf.mxu0  ;;  %3667 = vrcp.f32 %v5913_v48  ;;  %v5938_v5 = vadd.f32 %v2644_v63, %v5540_v42  ;;  %v5946_v21 = vpop.eup %3661  ;;  %v2563_v42 = vmul.f32 %v5903_v51, %v2562_v24  ;;  %v5954_v43 = vadd.f32 1.0, %v3660_v55 }
 0x3da   : > { %v1965_v3 = vpop.f32.mrf.mxu1  ;;  %v1842_v37 = vadd.f32 %v1841_v18, %v1777_v60  ;;  %v2543_v19 = vsel %vm2540_vm14, %v2542_v32, %v2538_v0  ;;  %vm2525_vm0 = vcmp.eq.f32.partialorder %v2524_v13, 8.507059e+37  ;;  %v2571_v39 = vand.u32 2147483648, %v5857_v25 }
 0x3db   : > { %v1966_v41 = vadd.f32 %v1965_v3, %v5344_v54  ;;  %3669 = vtanh.f32 %v5938_v5  ;;  %v5961_v54 = vmul.f32 %v5946_v21, %v5885_v11  ;;  %v2528_v30 = vsel %vm2525_vm0, %v2527_v23, %v2523_v7  ;;  %2686 = vst [vmem:[#allocation2 + $0x30] sm:$0xff] (%p5444_p4), %v5938_v5 }
 0x3dc   : > { %v2564_v24 = vadd.f32 %v5903_v51, %v2563_v42  ;;  %v2028_v18 = vadd.f32 %v2027_v28, %v1842_v37  ;;  %vm2565_vm5 = vweird.f32 %v5857_v25  ;;  %v5988_v3 = vmul.f32 %v5869_v59, %v5803_v12 }
 0x3dd   : > { %v3664_v63 = vpop.eup %3663  ;;  %v2160_v44 = vadd.f32 %v5956_v10, %v1966_v41  ;;  %vm5993_vm6 = vmor %vm2565_vm5, %vm2566_vm2  ;;  %v6515_v7 = vsub.f32 1.0, %v5850_v47  ;;  %vm2551_vm9 = vweird.f32 %v5909_v33  ;;  %vm2276_vm15 = vweird.f32 %v5491_v52 }
 0x3de   : > { %v2646_v34 = vmul.f32 %v3664_v63, %v2543_v19  ;;  %v3666_v55 = vpop.eup %3665  ;;  %v2159_v62 = vadd.f32 %v5895_v31, %v2028_v18  ;;  %v2568_v42 = vsel %vm5993_vm6, %v5903_v51, %v2564_v24  ;;  %v2548_v63 = vmul.f32 %v5909_v33, %v2547_v4  ;;  %vm6047_vm14 = vmor %vm2550_vm13, %vm2551_vm9  ;;  %v2634_v24 = vld [vmem:[#allocation2 + $0x28] sm:$0xff] }
 0x3df   : > { %3671 = vtanh.f32 %v2160_v44  ;;  %v5969_v49 = vpop.eup %3667  ;;  %v2645_v60 = vmul.f32 %v3666_v55, %v2528_v30  ;;  %v6001_v37 = vmul.f32 %v5828_v56, %v6515_v7  ;;  %v1779_v19 = vpop.f32.mrf.mxu2  ;;  %v2592_v31 = vsub.f32 1.0, %v5961_v54  ;;  %v6524_v7 = vld [vmem:[#allocation11_spill] sm:$0xff] }
 0x3e0   : > { %v5966_v0 = vadd.f32 %v2646_v34, %v5619_v38  ;;  %3673 = vrcp.f32 %v5954_v43  ;;  %v2569_v38 = vand.u32 2147483647, %v5857_v25  ;;  %v2401_v34 = vsel %vm5975_vm3, %v5696_v46, %v5837_v36  ;;  %v2633_v36 = vld [vmem:[#allocation2 + $0x20] sm:$0xff] }
 0x3e1   : > { %v3670_v25 = vpop.eup %3669  ;;  %v6004_v41 = vadd.f32 %v2645_v60, %v5621_v29  ;;  %v6014_v47 = vmul.f32 %v5969_v49, %v5913_v48  ;;  %v2572_v29 = vor.u32 1.1754944e-38, %v2571_v39  ;;  %v2549_v51 = vadd.f32 %v5909_v33, %v2548_v63  ;;  %v1844_v60 = vpop.f32.mrf.mxu0 }
 0x3e2   : > { %3675 = vtanh.f32 %v5966_v0  ;;  %v6017_v23 = vmul.f32 %v3670_v25, %v5796_v17  ;;  %vm2570_vm8 = vcmp.eq.f32.partialorder %v2569_v38, 8.507059e+37  ;;  %v2556_v44 = vand.u32 2147483648, %v5860_v26  ;;  %2688 = vst [vmem:[#allocation2 + $0x18] sm:$0xff] (%p5444_p4), %v5966_v0 }
 0x3e3   : > { %3677 = vtanh.f32 %v6004_v41  ;;  %v2573_v28 = vsel %vm2570_vm8, %v2572_v29, %v2568_v42  ;;  %v1780_v54 = vadd.f32 %v1779_v19, %v5322_v45  ;;  %v6516_v17 = vand.u32 2147483647, %v5610_v53  ;;  %v1968_v45 = vpop.f32.mrf.mxu1  ;;  %2687 = vst [vmem:[#allocation2] sm:$0xff] (%p5444_p4), %v6004_v41 }
 0x3e4   : > { %3679 = vtanh.f32 %v2159_v62  ;;  %v6519_v39 = vand.u32 2147483647, %v5441_v22  ;;  %v2554_v18 = vand.u32 2147483647, %v5860_v26  ;;  %v2425_v32 = vsub.f32 1.0, %v5988_v3  ;;  %v6523_v26 = vld [vmem:[#allocation16_spill] sm:$0xff] }
 0x3e5   : > { %v3672_v4 = vpop.eup %3671  ;;  %vm6029_vm11 = vcmp.eq.f32.partialorder %v6516_v17, 8.507059e+37  ;;  %v2577_v62 = vsub.f32 1.0, %v6014_v47  ;;  %v6520_v53 = vsel %vm5678_vm4, %v5499_v40, %v5647_v27  ;;  %v1653_v42 = vadd.f32 %v6524_v7, %v6523_v26  ;;  %v2631_v27 = vld [vmem:[#allocation2 + $0x10] sm:$0xff]  ;;  %v6530_v22 = vld [vmem:[#allocation12_spill] sm:$0xff]  ;;  %2694 = vst [vmem:[#allocation3 + $0x18] sm:$0xff] (%p5444_p4), %v6017_v23 }
 0x3e6   : > { %v6024_v30 = vpop.eup %3673  ;;  %v2648_v55 = vmul.f32 %v3672_v4, %v2573_v28  ;;  %vm2251_vm12 = vcmp.eq.f32.partialorder %v6519_v39, 8.507059e+37  ;;  %v2553_v40 = vsel %vm6047_vm14, %v5909_v33, %v2549_v51  ;;  %v1845_v19 = vadd.f32 %v1844_v60, %v1780_v54  ;;  %v2030_v51 = vpop.f32.mrf.mxu3 }
 0x3e7   : > { %v2254_v25 = vsel %vm2251_vm12, %v5538_v61, %v6520_v53  ;;  %v2557_v61 = vor.u32 1.1754944e-38, %v2556_v44  ;;  %v1969_v47 = vadd.f32 %v1968_v45, %v1653_v42  ;;  %v2290_v29 = vadd.f32 %v5515_v2, %v5627_v16 }
 0x3e8   : > { %v3676_v38 = vpop.eup %3675  ;;  %v6058_v15 = vadd.f32 %v2648_v55, %v5653_v14  ;;  %vm2292_vm4 = vweird.f32 %v5515_v2  ;;  %vm2555_vm0 = vcmp.eq.f32.partialorder %v2554_v18, 8.507059e+37  ;;  %v6071_v14 = vpop.permute.xlu0 %2129  ;;  %v2593_v33 = vmul.f32 %v5946_v21, %v2592_v31 }
 0x3e9   : > { %v6055_v63 = vmul.f32 %v3676_v38, %v5808_v57  ;;  %v3678_v4 = vpop.eup %3677  ;;  %v6068_v57 = vmul.f32 %v6024_v30, %v5954_v43  ;;  %v2558_v16 = vsel %vm2555_vm0, %v2557_v61, %v2553_v40  ;;  %v2639_v54 = vmul.f32 %v2631_v27, %v2254_v25  ;;  %vm6088_vm5 = vmor %vm2291_vm7, %vm2292_vm4  ;;  %v6548_v27 = vld [vmem:[#allocation9_spill] sm:$0xff] }
 0x3ea   : > { %3681 = vtanh.f32 %v6058_v15  ;;  %v3680_v28 = vpop.eup %3679  ;;  %v6075_v44 = vmul.f32 %v3678_v4, %v5813_v9  ;;  %v2162_v17 = vadd.f32 %v6071_v14, %v1969_v47  ;;  %v6525_v55 = vand.u32 2147483647, %v5635_v50  ;;  %v6535_v47 = vld [vmem:[#allocation17_spill] sm:$0xff]  ;;  %2690 = vst [vmem:[#allocation2 + $0x8] sm:$0xff] (%p5444_p4), %v6058_v15 }
 0x3eb   : > { %v2647_v18 = vmul.f32 %v3680_v28, %v2558_v16  ;;  %v2295_v9 = vand.u32 2147483647, %v5464_v8  ;;  %v2594_v60 = vadd.f32 %v5946_v21, %v2593_v33  ;;  %vm2596_vm6 = vweird.f32 %v5946_v21  ;;  %2696 = vst [vmem:[#allocation3 + $0x20] sm:$0xff] (%p5444_p4), %v6055_v63 }
 0x3ec   : > { %vm6080_vm2 = vcmp.eq.f32.partialorder %v6525_v55, 8.507059e+37  ;;  %v2294_v50 = vsel %vm6088_vm5, %v5515_v2, %v2290_v29  ;;  %v2601_v45 = vand.u32 2147483648, %v5885_v11  ;;  %3683 = vtanh.f32 %v2162_v17  ;;  %v6540_v17 = vld [vmem:[#allocation13_spill] sm:$0xff]  ;;  %2695 = vst [vmem:[#allocation3 + $0x50] sm:$0xff] (%p5444_p4), %v6075_v44 }
 0x3ed   : > { %v2031_v38 = vadd.f32 %v2030_v51, %v1845_v19  ;;  %v6099_v53 = vadd.f32 %v2647_v18, %v2639_v54  ;;  %vm2595_vm7 = vweird.f32 %v5885_v11  ;;  %v2599_v25 = vand.u32 2147483647, %v5885_v11  ;;  %v1847_v51 = vpop.f32.mrf.mxu0 }
 0x3ee   : > { %v2275_v26 = vadd.f32 %v5547_v6, %v6530_v22  ;;  %v2607_v7 = vsub.f32 1.0, %v6068_v57  ;;  %v6531_v2 = vsel %vm5819_vm1, %v5668_v20, %v5790_v58  ;;  %v6532_v40 = vand.u32 2147483648, %v5464_v8  ;;  %vm6116_vm8 = vmor %vm2595_vm7, %vm2596_vm6  ;;  %v1782_v8 = vpop.f32.mrf.mxu2  ;;  %v6539_v57 = vld [vmem:[#allocation14_spill] sm:$0xff] }
 0x3ef   : > { %v2421_v42 = vsel %vm6029_vm11, %v5753_v1, %v6531_v2  ;;  %v2161_v11 = vadd.f32 %v5956_v10, %v2031_v38  ;;  %vm2307_vm9 = vweird.f32 %v6535_v47  ;;  %3685 = vtanh.f32 %v6099_v53  ;;  %vm6131_vm1 = vmor %vm2276_vm15, %vm2277_vm10  ;;  %2689 = vst [vmem:[#allocation2 + $0x10] sm:$0xff] (%p5444_p4), %v6099_v53 }
 0x3f0   : > { %v2298_v61 = vor.u32 1.1754944e-38, %v6532_v40  ;;  %v3682_v19 = vpop.eup %3681  ;;  %vm2296_vm12 = vcmp.eq.f32.partialorder %v2295_v9, 8.507059e+37  ;;  %v2598_v20 = vsel %vm6116_vm8, %v5946_v21, %v2594_v60  ;;  %v2578_v1 = vmul.f32 %v5969_v49, %v2577_v62  ;;  %v2033_v9 = vpop.f32.mrf.mxu3 }
 0x3f1   : > { %vm2443_vm11 = vweird.f32 %v6538_v35  ;;  %v6136_v10 = vmul.f32 %v3682_v19, %v2421_v42  ;;  %v2602_v4 = vor.u32 1.1754944e-38, %v2601_v45  ;;  %v2280_v21 = vand.u32 2147483647, %v5491_v52  ;;  %v6549_v19 = vld [vmem:[#allocation6_spill] sm:$0xff] }
 0x3f2   : > { %v2299_v29 = vsel %vm2296_vm12, %v2298_v61, %v2294_v50  ;;  %vm2306_vm13 = vweird.f32 %v6539_v57  ;;  %vm2600_vm14 = vcmp.eq.f32.partialorder %v2599_v25, 8.507059e+37  ;;  %v2279_v62 = vsel %vm6131_vm1, %v5547_v6, %v2275_v26  ;;  %v3684_v28 = vpop.eup %3683  ;;  %v6544_v50 = vld [vmem:[#allocation5_spill] sm:$0xff]  ;;  %v6547_v26 = vld [vmem:[#allocation10_spill] sm:$0xff] }
 0x3f3   : > { %v2579_v33 = vadd.f32 %v5969_v49, %v2578_v1  ;;  %vm2581_vm10 = vweird.f32 %v5969_v49  ;;  %v2603_v16 = vsel %vm2600_vm14, %v2602_v4, %v2598_v20  ;;  %v2586_v54 = vand.u32 2147483648, %v5913_v48  ;;  %vm6205_vm8 = vmor %vm2306_vm13, %vm2307_vm9  ;;  %2698 = vst [vmem:[#allocation3 + $0x40] sm:$0xff] (%p5444_p4), %v6136_v10 }
 0x3f4   : > { %3687 = vtanh.f32 %v2161_v11  ;;  %v1783_v55 = vadd.f32 %v1782_v8, %v6540_v17  ;;  %v2642_v52 = vmul.f32 %v2634_v24, %v2299_v29  ;;  %v2650_v18 = vmul.f32 %v3684_v28, %v2603_v16  ;;  %v6557_v16 = vld [vmem:[#allocation18_spill] sm:$0xff] }
 0x3f5   : > { %vm2580_vm15 = vweird.f32 %v5913_v48  ;;  %v2584_v31 = vand.u32 2147483647, %v5913_v48  ;;  %vm2444_vm4 = vweird.f32 %v5828_v56  ;;  %v6541_v6 = vand.u32 2147483647, %v6538_v35  ;;  %v3686_v25 = vpop.eup %3685 }
 0x3f6   : > { %v2406_v45 = vsel %vm6080_vm2, %v6544_v50, %v2401_v34  ;;  %vm2281_vm5 = vcmp.eq.f32.partialorder %v2280_v21, 8.507059e+37  ;;  %vm6166_vm6 = vmor %vm2580_vm15, %vm2581_vm10  ;;  %v1848_v38 = vadd.f32 %v1847_v51, %v1783_v55  ;;  %v6170_v22 = vadd.f32 %v2650_v18, %v2642_v52  ;;  %v6558_v55 = vld [vmem:[#allocation15_spill] sm:$0xff] }
 0x3f7   : > { %vm6152_vm0 = vcmp.eq.f32.partialorder %v6541_v6, 8.507059e+37  ;;  %v2284_v13 = vsel %vm2281_vm5, %v6547_v26, %v2279_v62  ;;  %v2583_v46 = vsel %vm6166_vm6, %v5969_v49, %v2579_v33  ;;  %v2608_v34 = vmul.f32 %v6024_v30, %v2607_v7  ;;  %v6550_v7 = vld [vmem:[#allocation8_spill] sm:$0xff]  ;;  %vm6194_vm2 = vmor %vm2443_vm11, %vm2444_vm4 }
 0x3f8   : > { %v2442_v39 = vadd.f32 %v5828_v56, %v6001_v37  ;;  %v6179_v2 = vmul.f32 %v3686_v25, %v2406_v45  ;;  %v2587_v42 = vor.u32 1.1754944e-38, %v2586_v54  ;;  %v2034_v40 = vadd.f32 %v2033_v9, %v1848_v38  ;;  %2692 = vst [vmem:[#allocation2 + $0x28] sm:$0xff] (%p5444_p4), %v6170_v22 }
 0x3f9   : > { %v2426_v61 = vmul.f32 %v5869_v59, %v2425_v32  ;;  %3689 = vtanh.f32 %v6170_v22  ;;  %vm2585_vm3 = vcmp.eq.f32.partialorder %v2584_v31, 8.507059e+37  ;;  %v2305_v49 = vadd.f32 %v6535_v47, %v6548_v27  ;;  %v2635_v31 = vld [vmem:[#allocation2 + $0x38] sm:$0xff] }
 0x3fa   : > { %v3688_v11 = vpop.eup %3687  ;;  %v2454_v20 = vmul.f32 %v6550_v7, %v6549_v19  ;;  %v2588_v1 = vsel %vm2585_vm3, %v2587_v42, %v2583_v46  ;;  %v2641_v37 = vmul.f32 %v2633_v36, %v2284_v13  ;;  %v2163_v8 = vadd.f32 %v6071_v14, %v2034_v40  ;;  %2697 = vst [vmem:[#allocation3 + $0x70] sm:$0xff] (%p5444_p4), %v6179_v2 }
 0x3fb   : > { %v2649_v32 = vmul.f32 %v3688_v11, %v2588_v1  ;;  %v2310_v58 = vand.u32 2147483647, %v6539_v57  ;;  %v2609_v24 = vadd.f32 %v6024_v30, %v2608_v34  ;;  %vm2611_vm7 = vweird.f32 %v6024_v30 }
 0x3fc   : > { %v2446_v35 = vsel %vm6194_vm2, %v5828_v56, %v2442_v39  ;;  %vm2428_vm12 = vweird.f32 %v5803_v12  ;;  %v2616_v29 = vand.u32 2147483648, %v5954_v43  ;;  %3691 = vtanh.f32 %v2163_v8 }
 0x3fd   : > { %v6214_v4 = vadd.f32 %v2649_v32, %v2641_v37  ;;  %v2309_v21 = vsel %vm6205_vm8, %v6535_v47, %v2305_v49  ;;  %vm2610_vm9 = vweird.f32 %v5954_v43  ;;  %v2614_v57 = vand.u32 2147483647, %v5954_v43 }
 0x3fe   : > { %v2427_v62 = vadd.f32 %v5869_v59, %v2426_v61  ;;  %vm2429_vm1 = vweird.f32 %v5869_v59  ;;  %v2434_v56 = vand.u32 2147483648, %v5803_v12  ;;  %v2455_v33 = vsub.f32 1.0, %v2454_v20  ;;  %vm6224_vm11 = vmor %vm2610_vm9, %vm2611_vm7 }
 0x3ff   : > { %v3690_v28 = vpop.eup %3689  ;;  %v2451_v47 = vsel %vm6152_vm0, %v6557_v16, %v2446_v35  ;;  %3693 = vtanh.f32 %v6214_v4  ;;  %vm2311_vm13 = vcmp.eq.f32.partialorder %v2310_v58, 8.507059e+37  ;;  %v2613_v43 = vsel %vm6224_vm11, %v6024_v30, %v2609_v24  ;;  %vm2430_vm14 = vmor %vm2428_vm12, %vm2429_vm1  ;;  %2691 = vst [vmem:[#allocation2 + $0x20] sm:$0xff] (%p5444_p4), %v6214_v4 }
 0x400   : > { %v2432_v54 = vand.u32 2147483647, %v5803_v12  ;;  %v6236_v17 = vmul.f32 %v3690_v28, %v2451_v47  ;;  %v2314_v52 = vsel %vm2311_vm13, %v6558_v55, %v2309_v21  ;;  %v2617_v18 = vor.u32 1.1754944e-38, %v2616_v29 }
 0x401   : > { %vm2615_vm10 = vcmp.eq.f32.partialorder %v2614_v57, 8.507059e+37  ;;  %v2431_v6 = vsel %vm2430_vm14, %v5869_v59, %v2427_v62  ;;  %v2456_v60 = vmul.f32 %v6550_v7, %v2455_v33  ;;  %v2435_v45 = vor.u32 1.1754944e-38, %v2434_v56 }
 0x402   : > { %v3692_v9 = vpop.eup %3691  ;;  %v2618_v50 = vsel %vm2615_vm10, %v2617_v18, %v2613_v43  ;;  %v2643_v30 = vmul.f32 %v2635_v31, %v2314_v52  ;;  %vm2433_vm15 = vcmp.eq.f32.partialorder %v2432_v54, 8.507059e+37  ;;  %vm2459_vm4 = vweird.f32 %v6550_v7  ;;  %2700 = vst [vmem:[#allocation3 + $0x48] sm:$0xff] (%p5444_p4), %v6236_v17 }
 0x403   : > { %v2651_v48 = vmul.f32 %v3692_v9, %v2618_v50  ;;  %v2436_v25 = vsel %vm2433_vm15, %v2435_v45, %v2431_v6  ;;  %v2457_v13 = vadd.f32 %v6550_v7, %v2456_v60  ;;  %v2464_v46 = vand.u32 2147483648, %v6549_v19 }
 0x404   : > { %vm2458_vm0 = vweird.f32 %v6549_v19  ;;  %v2462_v59 = vand.u32 2147483647, %v6549_v19 }
 0x405   : > { %v3694_v38 = vpop.eup %3693  ;;  %v2659_v26 = vadd.f32 %v2651_v48, %v2643_v30  ;;  %vm2460_vm5 = vmor %vm2458_vm0, %vm2459_vm4  ;;  %v2465_v34 = vor.u32 1.1754944e-38, %v2464_v46 }
 0x406   : > { %v2673_v12 = vmul.f32 %v3694_v38, %v2436_v25  ;;  %v2461_v36 = vsel %vm2460_vm5, %v6550_v7, %v2457_v13  ;;  %vm2463_vm6 = vcmp.eq.f32.partialorder %v2462_v59, 8.507059e+37 }
 0x407   : > { %3695 = vtanh.f32 %v2659_v26  ;;  %v2466_v42 = vsel %vm2463_vm6, %v2465_v34, %v2461_v36  ;;  %2693 = vst [vmem:[#allocation2 + $0x38] sm:$0xff] (%p5444_p4), %v2659_v26 }
 0x408   : > { %2699 = vst [vmem:[#allocation3 + $0x38] sm:$0xff] (%p5444_p4), %v2673_v12 }
 0x40a   : > { %2685 = sbr.rel (!%p5444_p4) target bundleno = 1041 (0x411), region = 48 }
 0x40d   : > { %v3696_v39 = vpop.eup %3695 }
 0x40e   : > { %v2675_v40 = vmul.f32 %v3696_v39, %v2466_v42 }
 0x410   : > { %2701 = vst [vmem:[#allocation3 + $0x78] sm:$0xff] %v2675_v40 }
 0x411 PF: > { %p2702_p5 = scmp.eq.s32.totalorder %s3731_s22, 1 }
 0x413   : > { %p2703_p6 = pnand %p2702_p5, %p2676_p12 }
 0x415   : > { %2706 = sbr.rel (%p2703_p6) target bundleno = 1066 (0x42a), region = 52 }
 0x41a   : > { %2707 = vst [vmem:[%s3857_s12] sm:$0xff] %v5938_v5 }
 0x41b   : > { %2708 = vst [vmem:[%s3857_s12 + $0x8] sm:$0xff] %v6004_v41 }
 0x41c   : > { %2709 = vst [vmem:[%s3857_s12 + $0x10] sm:$0xff] %v5966_v0 }
 0x41d   : > { %2710 = vst [vmem:[%s3857_s12 + $0x18] sm:$0xff] %v6099_v53 }
 0x41e   : > { %2711 = vst [vmem:[%s3857_s12 + $0x20] sm:$0xff] %v6058_v15 }
 0x41f   : > { %2712 = vst [vmem:[%s3857_s12 + $0x28] sm:$0xff] %v6214_v4 }
 0x420   : > { %2713 = vst [vmem:[%s3857_s12 + $0x30] sm:$0xff] %v6170_v22 }
 0x421   : > { %2714 = vst [vmem:[%s3857_s12 + $0x38] sm:$0xff] %v2659_v26 }
 0x422   : > { %2715 = vst [vmem:[%s3862_s16] sm:$0xff] %v6017_v23 }
 0x423   : > { %2716 = vst [vmem:[%s3862_s16 + $0x8] sm:$0xff] %v6075_v44 }
 0x424   : > { %2717 = vst [vmem:[%s3862_s16 + $0x10] sm:$0xff] %v6055_v63 }
 0x425   : > { %2718 = vst [vmem:[%s3862_s16 + $0x18] sm:$0xff] %v6179_v2 }
 0x426   : > { %2719 = vst [vmem:[%s3862_s16 + $0x20] sm:$0xff] %v6136_v10 }
 0x427   : > { %2720 = vst [vmem:[%s3862_s16 + $0x28] sm:$0xff] %v2673_v12 }
 0x428   : > { %2721 = vst [vmem:[%s3862_s16 + $0x30] sm:$0xff] %v6236_v17 }
 0x429   : > { %2722 = vst [vmem:[%s3862_s16 + $0x38] sm:$0xff] %v2675_v40 }
 0x42a PF: > { %s17_s27 = sadd.s32 1, %s3751_s27   ;;  %s6559_s12 = sld [smem:[#allocation4_spill]] }
 0x42b   : > { %p14_p7 = scmp.ge.s32.totalorder %s17_s27, 34   ;;  %s6560_s21 = smov %s3739_s24 }
 0x42c   : > { %s6561_s22 = smov %s3743_s25  ;;  %s6562_s23 = smov %s3747_s26 }
 0x42d   : > { %s6563_s24 = smov %s6567_s28  ;;  %s6564_s25 = smov %s6571_s29 }
 0x42e   :  { %16 = sbr.rel (!%p14_p7) target bundleno = 5 (0x5), region = 111 }
 0x430   : > { %s6565_s26 = smov %s6559_s12 }

</bundles_post_ra>
